<compile_context>
chip_gen: v6e
topology: v6e:2x2x1
jax: 0.10.0
libtpu: 0.0.40
codegen_flags: <defaults>
</compile_context>

<pallas_src>
import functools

import jax
import jax.numpy as jnp
from jax.experimental import pallas as pl
from jax.experimental.pallas import tpu as pltpu


# ----------------------------- helpers --------------------------------------

def _rmsnorm(v, eps=1e-6):
    # RMSNorm (no weight) in f32; matches RMSNorm.forward / QKNorm / LigerRMSNorm core.
    var = jnp.mean(v * v, axis=-1, keepdims=True)
    return v * jax.lax.rsqrt(var + eps)


def _vmem_limit_bytes():
    # Generation-aware budget: ~100 MiB on v5e/v6e (128 MiB physical VMEM),
    # ~48 MiB on v7x (64 MiB physical), leaving headroom for Mosaic scratch.
    try:
        cap = int(pltpu.get_tpu_info().vmem_capacity_bytes)
    except Exception:
        cap = 64 * 1024 * 1024
    return int(min(cap - 16 * 1024 * 1024, 100 * 1024 * 1024))


# ------------------ kernel 1: norm1 + QKV + RoPE + QKNorm -------------------

def qkv_rope_kernel(
    x_ref, shift_ref, scale_ref, cos_ref, sin_ref, norm1_w_ref,
    wqkv_ref, bqkv_ref,
    q_out_ref, k_out_ref, v_out_ref, *, num_heads, sm_scale,
):
    x = x_ref[...].astype(jnp.float32)
    nx = _rmsnorm(x) * norm1_w_ref[...]
    nx = nx * (1.0 + scale_ref[...]) + shift_ref[...]
    nx_bf = nx.astype(jnp.bfloat16)                      # MXU operand

    # One wide [tile, H] @ [H, 3H] matmul (fills the 256-wide MXU columns)
    # instead of 3*num_heads tiny per-head matmuls.
    qkv = jnp.dot(nx_bf, wqkv_ref[...],
                  preferred_element_type=jnp.float32) + bqkv_ref[...]

    cosf = cos_ref[...]                                  # [T, d] = [cos, cos]
    sinf = sin_ref[...]                                  # [T, d] = [sin, -sin]
    d = cosf.shape[-1]
    H = num_heads * d

    def rope(t):
        # [t1,t2]*[cos,cos] + [t2,t1]*[sin,-sin]  (== apply_rotary_emb)
        # NB: positive axis (pltpu.roll rejects axis=-1).
        return t * cosf + pltpu.roll(t, shift=d // 2, axis=1) * sinf

    # Per-head loop only for aligned lane slicing + RoPE/QKNorm (VPU/XLU work);
    # the expensive MXU contraction above is shared.  Slices are d(=128)-lane
    # aligned so no relayout is required.
    for hh in range(num_heads):
        q = qkv[:, hh * d:(hh + 1) * d]
        k = qkv[:, H + hh * d:H + (hh + 1) * d]
        v = qkv[:, 2 * H + hh * d:2 * H + (hh + 1) * d]
        q = _rmsnorm(rope(q)) * sm_scale                 # softmax scale folded into Q
        k = _rmsnorm(rope(k))
        q_out_ref[hh] = q.astype(q_out_ref.dtype)
        k_out_ref[hh] = k.astype(k_out_ref.dtype)
        v_out_ref[hh] = v.astype(v_out_ref.dtype)


# ------------------- kernel 2: flash attention (online softmax) -------------

def flash_attn_kernel(q_ref, k_ref, v_ref, o_ref, m_sc, l_sc, acc_sc, *, num_heads):
    j = pl.program_id(1)

    @pl.when(j == 0)
    def _():
        m_sc[...] = jnp.full_like(m_sc, -jnp.inf)
        l_sc[...] = jnp.zeros_like(l_sc)
        acc_sc[...] = jnp.zeros_like(acc_sc)

    # Q already carries the softmax scale.
    s = jnp.einsum("hqd,hkd->hqk", q_ref[...], k_ref[...],
                   preferred_element_type=jnp.float32)
    m_prev = m_sc[...]
    m_new = jnp.maximum(m_prev, s.max(axis=-1, keepdims=True))
    alpha = jnp.exp(m_prev - m_new)
    p = jnp.exp(s - m_new)
    l_sc[...] = alpha * l_sc[...] + p.sum(axis=-1, keepdims=True)
    acc_sc[...] = alpha * acc_sc[...] + jnp.einsum(
        "hqk,hkd->hqd", p.astype(jnp.bfloat16), v_ref[...],
        preferred_element_type=jnp.float32)
    m_sc[...] = m_new

    @pl.when(j == pl.num_programs(1) - 1)
    def _():
        o = acc_sc[...] * pl.reciprocal(l_sc[...], approx=True)   # [h, TQ, d] f32
        o_bf = o.astype(o_ref.dtype)
        # Concatenate the (128-lane aligned) per-head slabs into one lane-dense
        # [TQ, H] output; the head contraction happens in kernel 3's single
        # [TQ,H]@[H,H] projection (no [h,TQ,H] f32 intermediate, no VPU reduce).
        o_ref[...] = jnp.concatenate([o_bf[hh] for hh in range(num_heads)], axis=-1)
    # TODO(synk): multi-sequence cu_seqlens masking (flash_attn_varlen) is not
    # implemented; the packed tokens are treated as one sequence.
    # TODO(synk): on v5e, computing the Q tile in a j==0 prologue (dropping the
    # Q HBM round-trip) and emitting K pre-transposed would cut HBM traffic.


# -------- kernel 3: proj + residual + norm3 + SwiGLU MLP (streamed) ---------

def proj_mlp_kernel(
    x_ref, attn_ref, gate_sa_ref, shift_mlp_ref, scale_mlp_ref, gate_mlp_ref,
    norm3_w_ref, proj_w_ref, gate_w_ref, up_w_ref, down_w_ref,
    out_ref, x1_sc, nx_sc, acc_sc,
):
    m = pl.program_id(1)

    @pl.when(m == 0)
    def _():
        # Output projection: single [rows,H]@[H,H] MXU contraction over (h,d).
        attn = jnp.dot(attn_ref[...], proj_w_ref[...],
                       preferred_element_type=jnp.float32)
        x1 = x_ref[...].astype(jnp.float32) + attn * gate_sa_ref[...]
        x1_sc[...] = x1
        nx = _rmsnorm(x1) * norm3_w_ref[...]
        nx = nx * (1.0 + scale_mlp_ref[...]) + shift_mlp_ref[...]
        nx_sc[...] = nx.astype(nx_sc.dtype)
        acc_sc[...] = jnp.zeros_like(acc_sc)

    # SwiGLU streamed over MLP hidden column blocks: gate/up/down weights are
    # only ever resident one column block at a time (v7x VMEM friendly).
    nx_bf = nx_sc[...]
    g = jnp.dot(nx_bf, gate_w_ref[...], preferred_element_type=jnp.float32)
    u = jnp.dot(nx_bf, up_w_ref[...], preferred_element_type=jnp.float32)
    hidden = (jax.nn.silu(g) * u).astype(jnp.bfloat16)
    acc_sc[...] = acc_sc[...] + jnp.dot(hidden, down_w_ref[...],
                                        preferred_element_type=jnp.float32)

    @pl.when(m == pl.num_programs(1) - 1)
    def _():
        out_ref[...] = (x1_sc[...] + acc_sc[...] * gate_mlp_ref[...]).astype(out_ref.dtype)


# -------------------------------- wrapper ------------------------------------

def dit_block(x, mod, cos_half, sin_half, params, num_heads, *,
              tile_q=128, tile_kv=128, tile_mlp_rows=256, tile_mlp_cols=512):
    L, H = x.shape
    assert H % num_heads == 0
    d = H // num_heads
    assert d % 2 == 0
    mlp_hidden = params["gate_w"].shape[0]

    tile_q = min(tile_q, L)
    tile_kv = min(tile_kv, L)
    tile_mlp_rows = min(tile_mlp_rows, L)
    tile_mlp_cols = min(tile_mlp_cols, mlp_hidden)
    assert L % tile_q == 0 and L % tile_kv == 0 and L % tile_mlp_rows == 0
    assert mlp_hidden % tile_mlp_cols == 0
    assert tile_q % 16 == 0 and tile_kv % 16 == 0     # bf16 sublane packing

    sm_scale = d ** -0.5
    f32, bf16 = jnp.float32, jnp.bfloat16

    # ---- one-time parameter preprocessing (outside the kernels) ----
    # PyTorch qkv weight is [3H, H] with out-features ordered (k=3, h, d).
    wqkv = params["qkv_w"].T.astype(bf16)              # [H, 3H]
    bqkv = params["qkv_b"].reshape(1, 3 * H).astype(f32)
    proj_w = params["proj_w"].T.astype(bf16)           # [H, H], rows ordered (h, d)
    gate_w = params["gate_w"].T.astype(bf16)           # [H, M]
    up_w = params["up_w"].T.astype(bf16)               # [H, M]
    down_w = params["down_w"].T.astype(bf16)           # [M, H]
    norm1_w = params["norm1_w"].reshape(1, H).astype(f32)
    norm3_w = params["norm3_w"].reshape(1, H).astype(f32)

    # Full-width RoPE tables: [cos, cos] and [sin, -sin] (used with pltpu.roll).
    cos_f = jnp.concatenate([cos_half, cos_half], axis=-1).astype(f32)   # [L, d]
    sin_f = jnp.concatenate([sin_half, -sin_half], axis=-1).astype(f32)  # [L, d]

    # Only the modulation rows that are actually used (cross-attn rows skipped).
    shift_sa, scale_sa, gate_sa = mod[0], mod[1], mod[2]
    shift_mlp, scale_mlp, gate_mlp = mod[6], mod[7], mod[8]

    vmem_limit = _vmem_limit_bytes()

    # ---- kernel 1: norm1 + modulation + fused QKV + RoPE + QKNorm ----
    q, k, v = pl.pallas_call(
        functools.partial(qkv_rope_kernel, num_heads=num_heads, sm_scale=sm_scale),
        grid=(L // tile_q,),
        in_specs=[
            pl.BlockSpec((tile_q, H), lambda i: (i, 0)),             # x
            pl.BlockSpec((tile_q, H), lambda i: (i, 0)),             # shift_sa
            pl.BlockSpec((tile_q, H), lambda i: (i, 0)),             # scale_sa
            pl.BlockSpec((tile_q, d), lambda i: (i, 0)),             # cos_f
            pl.BlockSpec((tile_q, d), lambda i: (i, 0)),             # sin_f
            pl.BlockSpec((1, H), lambda i: (0, 0)),                  # norm1_w
            pl.BlockSpec((H, 3 * H), lambda i: (0, 0)),              # wqkv
            pl.BlockSpec((1, 3 * H), lambda i: (0, 0)),              # bqkv
        ],
        out_specs=[
            pl.BlockSpec((num_heads, tile_q, d), lambda i: (0, i, 0)),
            pl.BlockSpec((num_heads, tile_q, d), lambda i: (0, i, 0)),
            pl.BlockSpec((num_heads, tile_q, d), lambda i: (0, i, 0)),
        ],
        out_shape=[jax.ShapeDtypeStruct((num_heads, L, d), bf16)] * 3,
        compiler_params=pltpu.CompilerParams(
            dimension_semantics=("parallel",),
            vmem_limit_bytes=vmem_limit),
    )(x, shift_sa, scale_sa, cos_f, sin_f, norm1_w, wqkv, bqkv)

    # ---- kernel 2: flash attention (heads batched) ----
    attn_raw = pl.pallas_call(
        functools.partial(flash_attn_kernel, num_heads=num_heads),
        grid=(L // tile_q, L // tile_kv),
        in_specs=[
            pl.BlockSpec((num_heads, tile_q, d), lambda i, j: (0, i, 0)),   # q
            pl.BlockSpec((num_heads, tile_kv, d), lambda i, j: (0, j, 0)),  # k
            pl.BlockSpec((num_heads, tile_kv, d), lambda i, j: (0, j, 0)),  # v
        ],
        out_specs=pl.BlockSpec((tile_q, H), lambda i, j: (i, 0)),
        out_shape=jax.ShapeDtypeStruct((L, H), bf16),
        scratch_shapes=[
            pltpu.VMEM((num_heads, tile_q, 1), jnp.float32),   # running max
            pltpu.VMEM((num_heads, tile_q, 1), jnp.float32),   # running sum
            pltpu.VMEM((num_heads, tile_q, d), jnp.float32),   # output accumulator
        ],
        compiler_params=pltpu.CompilerParams(
            dimension_semantics=("parallel", "arbitrary"),
            vmem_limit_bytes=vmem_limit),
    )(q, k, v)

    # ---- kernel 3: proj + residual + norm3 + SwiGLU (streamed over M) ----
    out = pl.pallas_call(
        proj_mlp_kernel,
        grid=(L // tile_mlp_rows, mlp_hidden // tile_mlp_cols),
        in_specs=[
            pl.BlockSpec((tile_mlp_rows, H), lambda r, m: (r, 0)),        # x (residual)
            pl.BlockSpec((tile_mlp_rows, H), lambda r, m: (r, 0)),        # attn_raw
            pl.BlockSpec((tile_mlp_rows, H), lambda r, m: (r, 0)),        # gate_sa
            pl.BlockSpec((tile_mlp_rows, H), lambda r, m: (r, 0)),        # shift_mlp
            pl.BlockSpec((tile_mlp_rows, H), lambda r, m: (r, 0)),        # scale_mlp
            pl.BlockSpec((tile_mlp_rows, H), lambda r, m: (r, 0)),        # gate_mlp
            pl.BlockSpec((1, H), lambda r, m: (0, 0)),                    # norm3_w
            pl.BlockSpec((H, H), lambda r, m: (0, 0)),                    # proj_w
            pl.BlockSpec((H, tile_mlp_cols), lambda r, m: (0, m)),        # gate_w block
            pl.BlockSpec((H, tile_mlp_cols), lambda r, m: (0, m)),        # up_w block
            pl.BlockSpec((tile_mlp_cols, H), lambda r, m: (m, 0)),        # down_w block
        ],
        out_specs=pl.BlockSpec((tile_mlp_rows, H), lambda r, m: (r, 0)),
        out_shape=jax.ShapeDtypeStruct((L, H), x.dtype),
        scratch_shapes=[
            pltpu.VMEM((tile_mlp_rows, H), jnp.float32),   # x1 (post-attn residual)
            pltpu.VMEM((tile_mlp_rows, H), jnp.bfloat16),  # modulated norm3 activations
            pltpu.VMEM((tile_mlp_rows, H), jnp.float32),   # MLP accumulator
        ],
        compiler_params=pltpu.CompilerParams(
            dimension_semantics=("parallel", "arbitrary"),
            vmem_limit_bytes=vmem_limit),
    )(x, attn_raw, gate_sa, shift_mlp, scale_mlp, gate_mlp, norm3_w,
      proj_w, gate_w, up_w, down_w)
    return out


# --------------------------- pure-JAX reference ------------------------------
# Mirrors the kernel's mixed precision (bf16 MXU operands, f32 accumulation /
# norms / residuals) so the comparison validates structure tightly.

def dit_block_ref(x, mod, cos_half, sin_half, params, num_heads):
    L, H = x.shape
    d = H // num_heads
    scale = d ** -0.5
    bf16 = jnp.bfloat16
    x = x.astype(jnp.float32)

    shift_sa, scale_sa, gate_sa = mod[0], mod[1], mod[2]
    shift_mlp, scale_mlp, gate_mlp = mod[6], mod[7], mod[8]

    nx = _rmsnorm(x) * params["norm1_w"].reshape(1, H)
    nx = nx * (1.0 + scale_sa) + shift_sa

    qkv = jnp.dot(nx.astype(bf16), params["qkv_w"].astype(bf16).T,
                  preferred_element_type=jnp.float32) + params["qkv_b"]
    qkv = qkv.reshape(L, 3, num_heads, d).transpose(1, 2, 0, 3)    # [3, h, L, d]
    q, k, v = qkv[0], qkv[1], qkv[2]

    cos = cos_half[None]
    sin = sin_half[None]

    def rope(t):
        t1, t2 = t[..., :d // 2], t[..., d // 2:]
        return jnp.concatenate([t1 * cos + t2 * sin, -t1 * sin + t2 * cos], axis=-1)

    q = _rmsnorm(rope(q)).astype(bf16)
    k = _rmsnorm(rope(k)).astype(bf16)
    v = v.astype(bf16)

    s = jnp.einsum("hqd,hkd->hqk", q, k, preferred_element_type=jnp.float32) * scale
    p = jax.nn.softmax(s, axis=-1)
    o = jnp.einsum("hqk,hkd->hqd", p.astype(bf16), v,
                   preferred_element_type=jnp.float32)             # [h, L, d]
    attn = o.transpose(1, 0, 2).reshape(L, H)
    attn = jnp.dot(attn.astype(bf16), params["proj_w"].astype(bf16).T,
                   preferred_element_type=jnp.float32)
    x = x + attn * gate_sa

    nx = _rmsnorm(x) * params["norm3_w"].reshape(1, H)
    nx = nx * (1.0 + scale_mlp) + shift_mlp
    g = jnp.dot(nx.astype(bf16), params["gate_w"].astype(bf16).T,
                preferred_element_type=jnp.float32)
    u = jnp.dot(nx.astype(bf16), params["up_w"].astype(bf16).T,
                preferred_element_type=jnp.float32)
    mlp = jnp.dot((jax.nn.silu(g) * u).astype(bf16),
                  params["down_w"].astype(bf16).T,
                  preferred_element_type=jnp.float32)
    return x + mlp * gate_mlp


# ---------------------------------- main -------------------------------------

if __name__ == "__main__":
    L = 256           # packed tokens (single sequence: cu_seqlens = [0, L])
    H = 256           # hidden_size
    NUM_HEADS = 2
    HEAD_DIM = H // NUM_HEADS          # 128
    MLP_HIDDEN = int(H * 4.0)          # 1024

    key = jax.random.PRNGKey(0)
    ks = jax.random.split(key, 12)

    x = jax.random.normal(ks[0], (L, H), dtype=jnp.float32)
    mod = 0.1 * jax.random.normal(ks[1], (9, L, H), dtype=jnp.float32)

    # RoPE tables over head_dim // 2
    pos = jnp.arange(L, dtype=jnp.float32)[:, None]
    inv_freq = 1.0 / (10000.0 ** (jnp.arange(HEAD_DIM // 2, dtype=jnp.float32)
                                  / (HEAD_DIM // 2)))[None, :]
    ang = pos * inv_freq
    cos_half = jnp.cos(ang)            # [L, HEAD_DIM // 2]
    sin_half = jnp.sin(ang)

    params = {
        # LigerRMSNorm weights (init ones; perturbed slightly for a stronger test)
        "norm1_w": (1.0 + 0.05 * jax.random.normal(ks[2], (H,))).astype(jnp.float32),
        "norm3_w": (1.0 + 0.05 * jax.random.normal(ks[3], (H,))).astype(jnp.float32),
        # Attention: qkv (bias=True), proj (bias=False) -- PyTorch [out, in] layout
        "qkv_w": 0.05 * jax.random.normal(ks[4], (3 * H, H), dtype=jnp.float32),
        "qkv_b": 0.05 * jax.random.normal(ks[5], (3 * H,), dtype=jnp.float32),
        "proj_w": 0.05 * jax.random.normal(ks[6], (H, H), dtype=jnp.float32),
        # LigerSwiGLUMLP: gate/up/down, all bias-free
        "gate_w": 0.05 * jax.random.normal(ks[7], (MLP_HIDDEN, H), dtype=jnp.float32),
        "up_w": 0.05 * jax.random.normal(ks[8], (MLP_HIDDEN, H), dtype=jnp.float32),
        "down_w": 0.05 * jax.random.normal(ks[9], (H, MLP_HIDDEN), dtype=jnp.float32),
    }

    ref = jax.block_until_ready(dit_block_ref(x, mod, cos_half, sin_half,
                                              params, NUM_HEADS))

    out = dit_block(x, mod, cos_half, sin_half, params, NUM_HEADS)
    out = jax.block_until_ready(out)

    assert out.shape == (L, H)
    # bf16 MXU operands + approx reciprocal -> compare at mixed-precision tolerance
    assert jnp.allclose(out, ref, rtol=2e-2, atol=2e-2), "mismatch vs reference"

    # TODO(synk): cross-attention branch (do_cross_attn=True) not implemented;
    # the default DiTBlock config has norm2/cross_attn = None, which this reproduces.
    print("KERNEL_OK")
</pallas_src>

<mosaic_0001>
module attributes {stable_mosaic.version = 11 : i64} {
  func.func @qkv_rope_kernel(%arg0: i32, %arg1: memref<128x256xf32, #tpu.memory_space<vmem>>, %arg2: memref<128x256xf32, #tpu.memory_space<vmem>>, %arg3: memref<128x256xf32, #tpu.memory_space<vmem>>, %arg4: memref<128x128xf32, #tpu.memory_space<vmem>>, %arg5: memref<128x128xf32, #tpu.memory_space<vmem>>, %arg6: memref<1x256xf32, #tpu.memory_space<vmem>>, %arg7: memref<256x768xbf16, #tpu.memory_space<vmem>>, %arg8: memref<1x768xf32, #tpu.memory_space<vmem>>, %arg9: memref<2x128x128xbf16, #tpu.memory_space<vmem>>, %arg10: memref<2x128x128xbf16, #tpu.memory_space<vmem>>, %arg11: memref<2x128x128xbf16, #tpu.memory_space<vmem>>) attributes {dimension_semantics = [#tpu.dimension_semantics<parallel>], iteration_bounds = array<i64: 2>, scalar_prefetch = 0 : i64, scratch_operands = 0 : i64, tpu.core_type = #tpu.core_type<tc>, window_params = [{transform_indices = @transform_0, window_bounds = array<i64: 128, 256>}, {transform_indices = @transform_1, window_bounds = array<i64: 128, 256>}, {transform_indices = @transform_2, window_bounds = array<i64: 128, 256>}, {transform_indices = @transform_3, window_bounds = array<i64: 128, 128>}, {transform_indices = @transform_4, window_bounds = array<i64: 128, 128>}, {pipeline_mode = #tpu.pipeline_mode<synchronous>, transform_indices = @transform_5, window_bounds = array<i64: 1, 256>}, {pipeline_mode = #tpu.pipeline_mode<synchronous>, transform_indices = @transform_6, window_bounds = array<i64: 256, 768>}, {pipeline_mode = #tpu.pipeline_mode<synchronous>, transform_indices = @transform_7, window_bounds = array<i64: 1, 768>}, {transform_indices = @transform_8, window_bounds = array<i64: 2, 128, 128>}, {transform_indices = @transform_9, window_bounds = array<i64: 2, 128, 128>}, {transform_indices = @transform_10, window_bounds = array<i64: 2, 128, 128>}]} {
    %c0 = arith.constant 0 : index
    %c0_0 = arith.constant 0 : index
    %0 = vector.load %arg1[%c0, %c0_0] : memref<128x256xf32, #tpu.memory_space<vmem>>, vector<128x256xf32>
    %1 = arith.mulf %0, %0 : vector<128x256xf32>
    %cst = arith.constant dense<0.000000e+00> : vector<128xf32>
    %2 = vector.multi_reduction <add>, %1, %cst [1] : vector<128x256xf32> to vector<128xf32>
    %3 = vector.shape_cast %2 : vector<128xf32> to vector<128x1xf32>
    %cst_1 = arith.constant 2.560000e+02 : f32
    %4 = vector.broadcast %cst_1 : f32 to vector<128x1xf32>
    %5 = arith.divf %3, %4 : vector<128x1xf32>
    %cst_2 = arith.constant 9.99999997E-7 : f32
    %6 = vector.broadcast %cst_2 : f32 to vector<128x1xf32>
    %7 = arith.addf %5, %6 : vector<128x1xf32>
    %8 = math.rsqrt %7 : vector<128x1xf32>
    %9 = vector.broadcast %8 : vector<128x1xf32> to vector<128x256xf32>
    %10 = arith.mulf %0, %9 : vector<128x256xf32>
    %c0_3 = arith.constant 0 : index
    %c0_4 = arith.constant 0 : index
    %11 = vector.load %arg6[%c0_3, %c0_4] : memref<1x256xf32, #tpu.memory_space<vmem>>, vector<1x256xf32>
    %12 = vector.broadcast %11 : vector<1x256xf32> to vector<128x256xf32>
    %13 = arith.mulf %10, %12 : vector<128x256xf32>
    %c0_5 = arith.constant 0 : index
    %c0_6 = arith.constant 0 : index
    %14 = vector.load %arg3[%c0_5, %c0_6] : memref<128x256xf32, #tpu.memory_space<vmem>>, vector<128x256xf32>
    %cst_7 = arith.constant 1.000000e+00 : f32
    %15 = vector.broadcast %cst_7 : f32 to vector<128x256xf32>
    %16 = arith.addf %15, %14 : vector<128x256xf32>
    %17 = arith.mulf %13, %16 : vector<128x256xf32>
    %c0_8 = arith.constant 0 : index
    %c0_9 = arith.constant 0 : index
    %18 = vector.load %arg2[%c0_8, %c0_9] : memref<128x256xf32, #tpu.memory_space<vmem>>, vector<128x256xf32>
    %19 = arith.addf %17, %18 : vector<128x256xf32>
    %20 = arith.truncf %19 : vector<128x256xf32> to vector<128x256xbf16>
    %c0_10 = arith.constant 0 : index
    %c0_11 = arith.constant 0 : index
    %21 = vector.load %arg7[%c0_10, %c0_11] : memref<256x768xbf16, #tpu.memory_space<vmem>>, vector<256x768xbf16>
    %cst_12 = arith.constant dense<0.000000e+00> : vector<128x768xf32>
    %22 = tpu.matmul %20, %21, %cst_12 {dimension_numbers = #tpu.dot_dimension_numbers<[1], [0], [0], [1], [0, 0, 1, 1], [], []>} : vector<128x256xbf16>, vector<256x768xbf16>, vector<128x768xf32> -> vector<128x768xf32>
    %c0_13 = arith.constant 0 : index
    %c0_14 = arith.constant 0 : index
    %23 = vector.load %arg8[%c0_13, %c0_14] : memref<1x768xf32, #tpu.memory_space<vmem>>, vector<1x768xf32>
    %24 = vector.broadcast %23 : vector<1x768xf32> to vector<128x768xf32>
    %25 = arith.addf %22, %24 : vector<128x768xf32>
    %c0_15 = arith.constant 0 : index
    %c0_16 = arith.constant 0 : index
    %26 = vector.load %arg4[%c0_15, %c0_16] : memref<128x128xf32, #tpu.memory_space<vmem>>, vector<128x128xf32>
    %c0_17 = arith.constant 0 : index
    %c0_18 = arith.constant 0 : index
    %27 = vector.load %arg5[%c0_17, %c0_18] : memref<128x128xf32, #tpu.memory_space<vmem>>, vector<128x128xf32>
    %28 = vector.extract_strided_slice %25 {offsets = [0, 0], sizes = [128, 128], strides = [1, 1]} : vector<128x768xf32> to vector<128x128xf32>
    %29 = vector.extract_strided_slice %25 {offsets = [0, 256], sizes = [128, 128], strides = [1, 1]} : vector<128x768xf32> to vector<128x128xf32>
    %30 = vector.extract_strided_slice %25 {offsets = [0, 512], sizes = [128, 128], strides = [1, 1]} : vector<128x768xf32> to vector<128x128xf32>
    %31 = arith.mulf %28, %26 : vector<128x128xf32>
    %c64_i32 = arith.constant 64 : i32
    %32 = tpu.dynamic_rotate %28 by %c64_i32 dim 1 : vector<128x128xf32>, i32 -> vector<128x128xf32>
    %33 = arith.mulf %32, %27 : vector<128x128xf32>
    %34 = arith.addf %31, %33 : vector<128x128xf32>
    %35 = arith.mulf %34, %34 : vector<128x128xf32>
    %cst_19 = arith.constant dense<0.000000e+00> : vector<128xf32>
    %36 = vector.multi_reduction <add>, %35, %cst_19 [1] : vector<128x128xf32> to vector<128xf32>
    %37 = vector.shape_cast %36 : vector<128xf32> to vector<128x1xf32>
    %cst_20 = arith.constant 1.280000e+02 : f32
    %38 = vector.broadcast %cst_20 : f32 to vector<128x1xf32>
    %39 = arith.divf %37, %38 : vector<128x1xf32>
    %cst_21 = arith.constant 9.99999997E-7 : f32
    %40 = vector.broadcast %cst_21 : f32 to vector<128x1xf32>
    %41 = arith.addf %39, %40 : vector<128x1xf32>
    %42 = math.rsqrt %41 : vector<128x1xf32>
    %43 = vector.broadcast %42 : vector<128x1xf32> to vector<128x128xf32>
    %44 = arith.mulf %34, %43 : vector<128x128xf32>
    %cst_22 = arith.constant 0.0883883461 : f32
    %45 = vector.broadcast %cst_22 : f32 to vector<128x128xf32>
    %46 = arith.mulf %44, %45 : vector<128x128xf32>
    %47 = arith.mulf %29, %26 : vector<128x128xf32>
    %c64_i32_23 = arith.constant 64 : i32
    %48 = tpu.dynamic_rotate %29 by %c64_i32_23 dim 1 : vector<128x128xf32>, i32 -> vector<128x128xf32>
    %49 = arith.mulf %48, %27 : vector<128x128xf32>
    %50 = arith.addf %47, %49 : vector<128x128xf32>
    %51 = arith.mulf %50, %50 : vector<128x128xf32>
    %cst_24 = arith.constant dense<0.000000e+00> : vector<128xf32>
    %52 = vector.multi_reduction <add>, %51, %cst_24 [1] : vector<128x128xf32> to vector<128xf32>
    %53 = vector.shape_cast %52 : vector<128xf32> to vector<128x1xf32>
    %cst_25 = arith.constant 1.280000e+02 : f32
    %54 = vector.broadcast %cst_25 : f32 to vector<128x1xf32>
    %55 = arith.divf %53, %54 : vector<128x1xf32>
    %cst_26 = arith.constant 9.99999997E-7 : f32
    %56 = vector.broadcast %cst_26 : f32 to vector<128x1xf32>
    %57 = arith.addf %55, %56 : vector<128x1xf32>
    %58 = math.rsqrt %57 : vector<128x1xf32>
    %59 = vector.broadcast %58 : vector<128x1xf32> to vector<128x128xf32>
    %60 = arith.mulf %50, %59 : vector<128x128xf32>
    %61 = arith.truncf %46 : vector<128x128xf32> to vector<128x128xbf16>
    %c0_27 = arith.constant 0 : index
    %c0_28 = arith.constant 0 : index
    %c0_29 = arith.constant 0 : index
    %62 = vector.load %arg9[%c0_27, %c0_28, %c0_29] : memref<2x128x128xbf16, #tpu.memory_space<vmem>>, vector<1x128x128xbf16>
    %63 = vector.shape_cast %62 : vector<1x128x128xbf16> to vector<128x128xbf16>
    %64 = vector.shape_cast %61 : vector<128x128xbf16> to vector<1x128x128xbf16>
    tpu.vector_store %arg9[%c0_27, %c0_28, %c0_29], %64 {strides = array<i32>} : memref<2x128x128xbf16, #tpu.memory_space<vmem>>, vector<1x128x128xbf16>,
    %65 = arith.truncf %60 : vector<128x128xf32> to vector<128x128xbf16>
    %c0_30 = arith.constant 0 : index
    %c0_31 = arith.constant 0 : index
    %c0_32 = arith.constant 0 : index
    %66 = vector.load %arg10[%c0_30, %c0_31, %c0_32] : memref<2x128x128xbf16, #tpu.memory_space<vmem>>, vector<1x128x128xbf16>
    %67 = vector.shape_cast %66 : vector<1x128x128xbf16> to vector<128x128xbf16>
    %68 = vector.shape_cast %65 : vector<128x128xbf16> to vector<1x128x128xbf16>
    tpu.vector_store %arg10[%c0_30, %c0_31, %c0_32], %68 {strides = array<i32>} : memref<2x128x128xbf16, #tpu.memory_space<vmem>>, vector<1x128x128xbf16>,
    %69 = arith.truncf %30 : vector<128x128xf32> to vector<128x128xbf16>
    %c0_33 = arith.constant 0 : index
    %c0_34 = arith.constant 0 : index
    %c0_35 = arith.constant 0 : index
    %70 = vector.load %arg11[%c0_33, %c0_34, %c0_35] : memref<2x128x128xbf16, #tpu.memory_space<vmem>>, vector<1x128x128xbf16>
    %71 = vector.shape_cast %70 : vector<1x128x128xbf16> to vector<128x128xbf16>
    %72 = vector.shape_cast %69 : vector<128x128xbf16> to vector<1x128x128xbf16>
    tpu.vector_store %arg11[%c0_33, %c0_34, %c0_35], %72 {strides = array<i32>} : memref<2x128x128xbf16, #tpu.memory_space<vmem>>, vector<1x128x128xbf16>,
    %73 = vector.extract_strided_slice %25 {offsets = [0, 128], sizes = [128, 128], strides = [1, 1]} : vector<128x768xf32> to vector<128x128xf32>
    %74 = vector.extract_strided_slice %25 {offsets = [0, 384], sizes = [128, 128], strides = [1, 1]} : vector<128x768xf32> to vector<128x128xf32>
    %75 = vector.extract_strided_slice %25 {offsets = [0, 640], sizes = [128, 128], strides = [1, 1]} : vector<128x768xf32> to vector<128x128xf32>
    %76 = arith.mulf %73, %26 : vector<128x128xf32>
    %c64_i32_36 = arith.constant 64 : i32
    %77 = tpu.dynamic_rotate %73 by %c64_i32_36 dim 1 : vector<128x128xf32>, i32 -> vector<128x128xf32>
    %78 = arith.mulf %77, %27 : vector<128x128xf32>
    %79 = arith.addf %76, %78 : vector<128x128xf32>
    %80 = arith.mulf %79, %79 : vector<128x128xf32>
    %cst_37 = arith.constant dense<0.000000e+00> : vector<128xf32>
    %81 = vector.multi_reduction <add>, %80, %cst_37 [1] : vector<128x128xf32> to vector<128xf32>
    %82 = vector.shape_cast %81 : vector<128xf32> to vector<128x1xf32>
    %cst_38 = arith.constant 1.280000e+02 : f32
    %83 = vector.broadcast %cst_38 : f32 to vector<128x1xf32>
    %84 = arith.divf %82, %83 : vector<128x1xf32>
    %cst_39 = arith.constant 9.99999997E-7 : f32
    %85 = vector.broadcast %cst_39 : f32 to vector<128x1xf32>
    %86 = arith.addf %84, %85 : vector<128x1xf32>
    %87 = math.rsqrt %86 : vector<128x1xf32>
    %88 = vector.broadcast %87 : vector<128x1xf32> to vector<128x128xf32>
    %89 = arith.mulf %79, %88 : vector<128x128xf32>
    %cst_40 = arith.constant 0.0883883461 : f32
    %90 = vector.broadcast %cst_40 : f32 to vector<128x128xf32>
    %91 = arith.mulf %89, %90 : vector<128x128xf32>
    %92 = arith.mulf %74, %26 : vector<128x128xf32>
    %c64_i32_41 = arith.constant 64 : i32
    %93 = tpu.dynamic_rotate %74 by %c64_i32_41 dim 1 : vector<128x128xf32>, i32 -> vector<128x128xf32>
    %94 = arith.mulf %93, %27 : vector<128x128xf32>
    %95 = arith.addf %92, %94 : vector<128x128xf32>
    %96 = arith.mulf %95, %95 : vector<128x128xf32>
    %cst_42 = arith.constant dense<0.000000e+00> : vector<128xf32>
    %97 = vector.multi_reduction <add>, %96, %cst_42 [1] : vector<128x128xf32> to vector<128xf32>
    %98 = vector.shape_cast %97 : vector<128xf32> to vector<128x1xf32>
    %cst_43 = arith.constant 1.280000e+02 : f32
    %99 = vector.broadcast %cst_43 : f32 to vector<128x1xf32>
    %100 = arith.divf %98, %99 : vector<128x1xf32>
    %cst_44 = arith.constant 9.99999997E-7 : f32
    %101 = vector.broadcast %cst_44 : f32 to vector<128x1xf32>
    %102 = arith.addf %100, %101 : vector<128x1xf32>
    %103 = math.rsqrt %102 : vector<128x1xf32>
    %104 = vector.broadcast %103 : vector<128x1xf32> to vector<128x128xf32>
    %105 = arith.mulf %95, %104 : vector<128x128xf32>
    %106 = arith.truncf %91 : vector<128x128xf32> to vector<128x128xbf16>
    %c1 = arith.constant 1 : index
    %c0_45 = arith.constant 0 : index
    %c0_46 = arith.constant 0 : index
    %107 = vector.load %arg9[%c1, %c0_45, %c0_46] : memref<2x128x128xbf16, #tpu.memory_space<vmem>>, vector<1x128x128xbf16>
    %108 = vector.shape_cast %107 : vector<1x128x128xbf16> to vector<128x128xbf16>
    %109 = vector.shape_cast %106 : vector<128x128xbf16> to vector<1x128x128xbf16>
    tpu.vector_store %arg9[%c1, %c0_45, %c0_46], %109 {strides = array<i32>} : memref<2x128x128xbf16, #tpu.memory_space<vmem>>, vector<1x128x128xbf16>,
    %110 = arith.truncf %105 : vector<128x128xf32> to vector<128x128xbf16>
    %c1_47 = arith.constant 1 : index
    %c0_48 = arith.constant 0 : index
    %c0_49 = arith.constant 0 : index
    %111 = vector.load %arg10[%c1_47, %c0_48, %c0_49] : memref<2x128x128xbf16, #tpu.memory_space<vmem>>, vector<1x128x128xbf16>
    %112 = vector.shape_cast %111 : vector<1x128x128xbf16> to vector<128x128xbf16>
    %113 = vector.shape_cast %110 : vector<128x128xbf16> to vector<1x128x128xbf16>
    tpu.vector_store %arg10[%c1_47, %c0_48, %c0_49], %113 {strides = array<i32>} : memref<2x128x128xbf16, #tpu.memory_space<vmem>>, vector<1x128x128xbf16>,
    %114 = arith.truncf %75 : vector<128x128xf32> to vector<128x128xbf16>
    %c1_50 = arith.constant 1 : index
    %c0_51 = arith.constant 0 : index
    %c0_52 = arith.constant 0 : index
    %115 = vector.load %arg11[%c1_50, %c0_51, %c0_52] : memref<2x128x128xbf16, #tpu.memory_space<vmem>>, vector<1x128x128xbf16>
    %116 = vector.shape_cast %115 : vector<1x128x128xbf16> to vector<128x128xbf16>
    %117 = vector.shape_cast %114 : vector<128x128xbf16> to vector<1x128x128xbf16>
    tpu.vector_store %arg11[%c1_50, %c0_51, %c0_52], %117 {strides = array<i32>} : memref<2x128x128xbf16, #tpu.memory_space<vmem>>, vector<1x128x128xbf16>,
    return
  }
  func.func @transform_0(%arg0: i32) -> (i32, i32) {
    %c0_i32 = arith.constant 0 : i32
    %c0_i32_0 = arith.constant 0 : i32
    return %arg0, %c0_i32 : i32, i32
  }
  func.func @transform_1(%arg0: i32) -> (i32, i32) {
    %c0_i32 = arith.constant 0 : i32
    %c0_i32_0 = arith.constant 0 : i32
    return %arg0, %c0_i32 : i32, i32
  }
  func.func @transform_2(%arg0: i32) -> (i32, i32) {
    %c0_i32 = arith.constant 0 : i32
    %c0_i32_0 = arith.constant 0 : i32
    return %arg0, %c0_i32 : i32, i32
  }
  func.func @transform_3(%arg0: i32) -> (i32, i32) {
    %c0_i32 = arith.constant 0 : i32
    %c0_i32_0 = arith.constant 0 : i32
    return %arg0, %c0_i32 : i32, i32
  }
  func.func @transform_4(%arg0: i32) -> (i32, i32) {
    %c0_i32 = arith.constant 0 : i32
    %c0_i32_0 = arith.constant 0 : i32
    return %arg0, %c0_i32 : i32, i32
  }
  func.func @transform_5(%arg0: i32) -> (i32, i32) {
    %c0_i32 = arith.constant 0 : i32
    %c0_i32_0 = arith.constant 0 : i32
    %c0_i32_1 = arith.constant 0 : i32
    return %c0_i32, %c0_i32_0 : i32, i32
  }
  func.func @transform_6(%arg0: i32) -> (i32, i32) {
    %c0_i32 = arith.constant 0 : i32
    %c0_i32_0 = arith.constant 0 : i32
    %c0_i32_1 = arith.constant 0 : i32
    return %c0_i32, %c0_i32_0 : i32, i32
  }
  func.func @transform_7(%arg0: i32) -> (i32, i32) {
    %c0_i32 = arith.constant 0 : i32
    %c0_i32_0 = arith.constant 0 : i32
    %c0_i32_1 = arith.constant 0 : i32
    return %c0_i32, %c0_i32_0 : i32, i32
  }
  func.func @transform_8(%arg0: i32) -> (i32, i32, i32) {
    %c0_i32 = arith.constant 0 : i32
    %c0_i32_0 = arith.constant 0 : i32
    %c0_i32_1 = arith.constant 0 : i32
    return %c0_i32, %arg0, %c0_i32_0 : i32, i32, i32
  }
  func.func @transform_9(%arg0: i32) -> (i32, i32, i32) {
    %c0_i32 = arith.constant 0 : i32
    %c0_i32_0 = arith.constant 0 : i32
    %c0_i32_1 = arith.constant 0 : i32
    return %c0_i32, %arg0, %c0_i32_0 : i32, i32, i32
  }
  func.func @transform_10(%arg0: i32) -> (i32, i32, i32) {
    %c0_i32 = arith.constant 0 : i32
    %c0_i32_0 = arith.constant 0 : i32
    %c0_i32_1 = arith.constant 0 : i32
    return %c0_i32, %arg0, %c0_i32_0 : i32, i32, i32
  }
}

</mosaic_0001>

<bundles_post_ra>
// kernel: tpu_custom_call.1
= control target key start
LH: loop header
LB: loop body
LE: loop exit
PB: predicated region body
PF: predicated region fallthrough
CT: control target
= control target key end

     0   :  { %s6876_s0 = inlined_call_operand.hbm [shape: f32[256,256], index: 0, kind: input, shape index: {}]   ;;  %s6877_s1 = inlined_call_operand.hbm [shape: f32[256,256], index: 1, kind: input, shape index: {}]   ;;  %s6878_s2 = inlined_call_operand.hbm [shape: f32[256,256], index: 2, kind: input, shape index: {}]   ;;  %s6879_s3 = inlined_call_operand.hbm [shape: f32[256,128], index: 3, kind: input, shape index: {}]   ;;  %s6880_s4 = inlined_call_operand.hbm [shape: f32[256,128], index: 4, kind: input, shape index: {}]   ;;  %s6881_s5 = inlined_call_operand.vmem [shape: f32[1,256], index: 5, kind: input, shape index: {}]   ;;  %s6882_s6 = inlined_call_operand.hbm [shape: bf16[256,768], index: 6, kind: input, shape index: {}]   ;;  %s6883_s7 = inlined_call_operand.vmem [shape: f32[1,768], index: 7, kind: input, shape index: {}]   ;;  %s6884_s8 = inlined_call_operand.hbm [shape: bf16[2,256,128], index: 8, kind: output, shape index: {0}]   ;;  %s6885_s9 = inlined_call_operand.hbm [shape: bf16[2,256,128], index: 9, kind: output, shape index: {1}]   ;;  %s6886_s10 = inlined_call_operand.hbm [shape: bf16[2,256,128], index: 10, kind: output, shape index: {2}]  }
   0x1   :  { %6970 = sst [smem:[#allocation75_spill]] %s6877_s1 }
   0x2   :  { %6971 = sst [smem:[#allocation76_spill]] %s6879_s3 }
   0x3   :  { %6972 = sst [smem:[#allocation77_spill]] %s6881_s5 }
   0x4   :  { %6973 = sst [smem:[#allocation78_spill]] %s6883_s7 }
   0x5   :  { %6974 = sst [smem:[#allocation79_spill]] %s6884_s8 }
   0x6   :  { %6975 = sst [smem:[#allocation80_spill]] %s6885_s9 }
   0x7   :  { %6976 = sst [smem:[#allocation81_spill]] %s6886_s10 }
   0x8   :  { %16 = vsyncpa [#allocation3], 0 }
   0x9   :  { %18 = vsyncpa [#allocation3 + $0x1], 0 }
   0xa   :  { %19 = vsyncpa [#allocation6], 0 }
   0xb   :  { %21 = vsyncpa [#allocation6 + $0x1], 0 }
   0xc   :  { %22 = vsyncpa [#allocation9], 0 }
   0xd   :  { %24 = vsyncpa [#allocation9 + $0x1], 0 }
   0xe   :  { %25 = vsyncpa [#allocation12], 0 }
   0xf   :  { %26 = vsyncpa [#allocation4], 0 }
  0x10   :  { %28 = vsyncpa [#allocation4 + $0x1], 0 }
  0x11   :  { %29 = vsyncpa [#allocation15], 0 }
  0x12   :  { %31 = vsyncpa [#allocation15 + $0x1], 0  ;;  %s5075_s13 = smov 0   ;;  %s5077_s14 = smov 0  }
  0x13   :  { %s5079_s15 = smov 0   ;;  %s5081_s16 = smov 0  }
  0x14 LB: > { %6977 = sst [smem:[#allocation29_spill]] %s4972_s13  ;;  %s5096_s17 = sadd.s32 1, %s4984_s16   ;;  %s4984_s16 = sphi %s5081_s16, %s7138_s16   ;;  %s4980_s15 = sphi %s5079_s15, %s7140_s15   ;;  %s4976_s14 = sphi %s5077_s14, %s7142_s14   ;;  %s4972_s13 = sphi %s5075_s13, %s7141_s13  }
  0x15   : > { %6978 = sst [smem:[#allocation30_spill]] %s4980_s15  ;;  %s44_s18 = sadd.s32 1, %s4980_s15 }
  0x16   : > { %6979 = sst [smem:[#allocation31_spill]] %s4984_s16  ;;  %s41_s19 = ssub.s32 %s4984_s16, %s5096_s17 }
  0x17   : > { %6980 = sst [smem:[#allocation32_spill]] %s5096_s17  ;;  %p6890_p0 = scmp.ne.s32.totalorder %s4980_s15, %s4976_s14 }
  0x18   : > { %p42_p1 = scmp.eq.s32.totalorder %s41_s19, 0  ;;  %p52_p2 = scmp.eq.s32.totalorder %s4984_s16, 0 }
  0x19   : > { %p4383_p4 = scmp.lt.s32.totalorder %s4984_s16, 2  ;;  %s5113_s21 = sand.u32 1, %s4980_s15  }
  0x1a   : > { %s5107_s20 = scalar_select %p42_p1, %s4980_s15, %s44_s18  }
  0x1b   : > { %p53_p5 = por %p52_p2, %p6890_p0  ;;  %s5116_s22 = sshll.u32 %s5113_s21, 8 }
  0x1c   : > { %6981 = sst [smem:[#allocation33_spill]] %s5107_s20  ;;  %s5119_s23 = sshll.u32 %s4984_s16, 12 }
  0x1d   : > { %p5121_p6 = pnand %p4383_p4, %p53_p5  ;;  %s6887_s25 = sand.u32 1, %s4984_s16  }
  0x1e   : > { %s6983_s1 = sld [smem:[#allocation75_spill]]  ;;  %s371_s29 = scalar_lea.vmem [#allocation5], %s5116_s22 }
  0x1f   : > { %s379_s30 = sshll.u32 %s371_s29, 4  ;;  %s5138_s12 = scalar_lea.sflag [#allocation6], %s6887_s25  ;;  %s5133_s30 = int_to_ptr.vmem [resolvable:$true] %s379_s30 }
  0x20   : > { %p5144_p8 = pneg %p5121_p6 }
  0x24   : > { %s5130_s28 = scalar_lea.hbm %s6983_s1, %s5119_s23  ;;  %s4769_s29 = scalar_lea.hbm %s6983_s1, 8192 }
  0x25   : > { %s4764_s18 = scalar_lea.hbm %s5130_s28, 4096  ;;  %p4770_p11 = scmp.lt.s32.totalorder %s5130_s28, %s6983_s1 }
  0x26   : > { %p4765_p7 = scmp.ne.s32.totalorder %s5130_s28, %s4764_s18  ;;  %p4771_p12 = scmp.lt.s32.totalorder %s4769_s29, %s4764_s18 }
  0x28   : > { %p4767_p9 = pnand %p5144_p8, %p4765_p7  ;;  %p4772_p13 = por %p4771_p12, %p4770_p11 }
  0x2a   : > { %p4768_p10 = pneg %p4767_p9 }
  0x2c   : > { %p4773_p1 = pnand %p4772_p13, %p4768_p10 }
  0x2e   : > { %4776 = shalt.err (!%p4773_p1)
}
  0x2f   : > { %s4777_s25 = scalar_lea.vmem %s5133_s30, 4096  ;;  %s4986_s17 = smov [#allocation5]  }
  0x30   : > { %p4778_p2 = scmp.ne.s32.totalorder %s5133_s30, %s4777_s25  ;;  %s4782_s26 = sshll.u32 %s4986_s17, 4  ;;  %s4783_s26 = int_to_ptr.vmem [resolvable:$false] %s4782_s26 }
  0x31   : > { %s4784_s27 = scalar_lea.vmem %s4783_s26, 8192  ;;  %p4785_p7 = scmp.lt.s32.totalorder %s5133_s30, %s4783_s26 }
  0x32   : > { %p4780_p4 = pnand %p4778_p2, %p5144_p8  ;;  %p4786_p9 = scmp.lt.s32.totalorder %s4784_s27, %s4777_s25 }
  0x34   : > { %p4781_p5 = pneg %p4780_p4  ;;  %p4787_p3 = por %p4786_p9, %p4785_p7 }
  0x36   : > { %p4788_p0 = pnand %p4787_p3, %p4781_p5 }
  0x38   : > { %4791 = shalt.err (!%p4788_p0)
}
  0x39   : > { %s6891_s20 = smov 256   ;;  %s6893_s11 = smov 16  }
  0x3a   : > { %4362 = dma.hbm_to_vmem [thread:$0]  (!%p5121_p6), %s5130_s28, 4096, %s5133_s30, %s5138_s12, %s6891_s20, %s6891_s20, %s6893_s11  }
  0x3b   : > { %s3896_s17 = sshll.u32 %s4984_s16, 11  ;;  %s6985_s3 = sld [smem:[#allocation76_spill]] }
  0x3c   : > { %s6986_s26 = sshll.u32 %s5113_s21, 7  ;;  %s6987_s10 = sand.u32 1, %s4984_s16  }
  0x3d   : > { %s415_s27 = scalar_lea.vmem [#allocation8], %s6986_s26  ;;  %s5184_s9 = scalar_lea.sflag [#allocation9], %s6987_s10 }
  0x3e   : > { %s422_s1 = sshll.u32 %s415_s27, 4  ;;  %s5180_s1 = int_to_ptr.vmem [resolvable:$true] %s422_s1 }
  0x41   : > { %s5176_s29 = scalar_lea.hbm %s6985_s3, %s3896_s17  ;;  %s4797_s25 = scalar_lea.hbm %s6985_s3, 4096 }
  0x42   : > { %s4792_s8 = scalar_lea.hbm %s5176_s29, 2048  ;;  %p4798_p11 = scmp.lt.s32.totalorder %s5176_s29, %s6985_s3 }
  0x43   : > { %p4793_p0 = scmp.ne.s32.totalorder %s5176_s29, %s4792_s8  ;;  %p4799_p12 = scmp.lt.s32.totalorder %s4797_s25, %s4792_s8 }
  0x45   : > { %p4795_p3 = pnand %p4793_p0, %p5144_p8  ;;  %p4800_p13 = por %p4799_p12, %p4798_p11 }
  0x47   : > { %p4796_p10 = pneg %p4795_p3 }
  0x49   : > { %p4801_p1 = pnand %p4800_p13, %p4796_p10 }
  0x4b   : > { %4804 = shalt.err (!%p4801_p1)
}
  0x4c   : > { %s4805_s10 = scalar_lea.vmem %s5180_s1, 2048  ;;  %s4989_s26 = smov [#allocation8]  }
  0x4d   : > { %p4806_p2 = scmp.ne.s32.totalorder %s5180_s1, %s4805_s10  ;;  %s4810_s27 = sshll.u32 %s4989_s26, 4  ;;  %s4811_s27 = int_to_ptr.vmem [resolvable:$false] %s4810_s27 }
  0x4e   : > { %s4812_s28 = scalar_lea.vmem %s4811_s27, 4096  ;;  %p4813_p7 = scmp.lt.s32.totalorder %s5180_s1, %s4811_s27 }
  0x4f   : > { %p4808_p4 = pnand %p4806_p2, %p5144_p8  ;;  %p4814_p9 = scmp.lt.s32.totalorder %s4812_s28, %s4805_s10 }
  0x51   : > { %p4809_p5 = pneg %p4808_p4  ;;  %p4815_p0 = por %p4814_p9, %p4813_p7 }
  0x53   : > { %p4816_p3 = pnand %p4815_p0, %p4809_p5 }
  0x55   : > { %4819 = shalt.err (!%p4816_p3)
}
  0x56   : > { %s6896_s8 = smov 128   ;;  %s6897_s20 = smov 8  }
  0x57   : > { %4368 = dma.hbm_to_vmem [thread:$0]  (!%p5121_p6), %s5176_s29, 2048, %s5180_s1, %s5184_s9, %s6896_s8, %s6896_s8, %s6897_s20  }
  0x58   : > { %s5215_s18 = scalar_lea.hbm %s6880_s4, %s3896_s17  ;;  %s6988_s10 = sshll.u32 %s5113_s21, 7 }
  0x59   : > { %s436_s26 = scalar_lea.vmem [#allocation10], %s6988_s10  ;;  %s5222_s28 = sadd.s32 4294967295, %s4984_s16  }
  0x5a   : > { %s443_s27 = sshll.u32 %s436_s26, 4  ;;  %6989 = sst [smem:[#allocation34_spill]] %s5222_s28  ;;  %s5219_s27 = int_to_ptr.vmem [resolvable:$true] %s443_s27 }
  0x5b   : > { %s6895_s11 = sadd.s32 4294967294, %s4984_s16   ;;  %p57_p10 = scmp.ne.s32.totalorder %s4976_s14, %s4972_s13 }
  0x5c   : > { %p6899_p11 = scmp.eq.s32.totalorder %s5222_s28, 0  ;;  %p248_p12 = scmp.eq.s32.totalorder %s5222_s28, 1 }
  0x5d   : > { %p254_p13 = scmp.eq.s32.totalorder %s6895_s11, 1  ;;  %p3608_p1 = scmp.ge.s32.totalorder %s4984_s16, 1 }
  0x5e   : > { %p5234_p2 = por %p6899_p11, %p57_p10  ;;  %p6991_p4 = scmp.ne.s32.totalorder %s4980_s15, %s4976_s14 }
  0x5f   : > { %p5245_p7 = por %p254_p13, %p57_p10  ;;  %p313_p9 = scmp.lt.s32.totalorder %s4984_s16, 3 }
  0x60   : > { %s6990_s1 = scalar_select %p5234_p2, 1, 0 }
  0x61   : > { %p5241_p5 = por %p248_p12, %p6991_p4  ;;  %p5250_p0 = pnand %p3608_p1, %p313_p9 }
  0x62   : > { %s6994_s29 = scalar_select %p5245_p7, 1, 0 }
  0x63   : > { %s6992_s17 = scalar_select %p5241_p5, 1, 0 }
  0x64   : > { %6995 = sst [smem:[#allocation36_spill]] %s6994_s29  ;;  %s4992_s25 = smov [#allocation11]  }
  0x65   : > { %6993 = sst [smem:[#allocation35_spill]] %s6992_s17  ;;  %s328_s10 = sshll.u32 %s4992_s25, 4  ;;  %s329_s10 = int_to_ptr.vmem [resolvable:$true] %s328_s10 }
  0x66   : > { %s6996_s30 = scalar_select %p5250_p0, 1, 0 }
  0x67   : > { %p4352_p3 = pneg %p5250_p0  ;;  %s5266_s20 = scalar_lea.hbm %s6876_s0, %s5119_s23 }
  0x68   : > { %s349_s3 = scalar_lea.vmem [#allocation2], %s5116_s22  ;;  %s4831_s25 = scalar_lea.vmem %s329_s10, 12288 }
  0x69   : > { %p5258_p12 = pnand %p4352_p3, %p6899_p11  ;;  %s357_s15 = sshll.u32 %s349_s3, 4  ;;  %s5269_s15 = int_to_ptr.vmem [resolvable:$true] %s357_s15 }
  0x6a   : > { %p4832_p13 = scmp.ne.s32.totalorder %s329_s10, %s4831_s25  ;;  %p4839_p9 = scmp.lt.s32.totalorder %s329_s10, %s329_s10 }
  0x6b   : > { %p4822_p10 = pneg %p5258_p12  ;;  %p4840_p3 = scmp.lt.s32.totalorder %s4831_s25, %s4831_s25 }
  0x6d   : > { %p4834_p1 = pnand %p4832_p13, %p4822_p10  ;;  %p4841_p11 = por %p4840_p3, %p4839_p9 }
  0x6f   : > { %p4835_p4 = pneg %p4834_p1 }
  0x71   : > { %p4842_p7 = pnand %p4841_p11, %p4835_p4 }
  0x73   : > { %4845 = shalt.err (!%p4842_p7)
}
  0x74   : > { %s4993_s16 = smov 384   ;;  %s4994_s3 = smov 24  }
  0x75   : > { %4355 = dma.hbm_to_vmem [thread:$0]  (!%p5258_p12), %s6882_s6, 12288, %s329_s10, [#allocation12], %s4993_s16, %s4993_s16, %s4994_s3  }
  0x76   : > { %s346_s29 = scalar_lea.sflag [#allocation3], %s5113_s21  ;;  %s4846_s13 = scalar_lea.hbm %s5266_s20, 4096 }
  0x77   : > { %p4847_p10 = scmp.ne.s32.totalorder %s5266_s20, %s4846_s13  ;;  %s4851_s7 = scalar_lea.hbm %s6876_s0, 8192 }
  0x78   : > { %p4852_p7 = scmp.lt.s32.totalorder %s5266_s20, %s6876_s0  ;;  %p4853_p1 = scmp.lt.s32.totalorder %s4851_s7, %s4846_s13 }
  0x79   : > { %p4849_p13 = pnand %p4847_p10, %p5144_p8 }
  0x7a   : > { %p4854_p4 = por %p4853_p1, %p4852_p7 }
  0x7b   : > { %p4850_p11 = pneg %p4849_p13 }
  0x7d   : > { %p4855_p9 = pnand %p4854_p4, %p4850_p11 }
  0x7f   : > { %4858 = shalt.err (!%p4855_p9)
}
  0x80   : > { %s4859_s16 = scalar_lea.vmem %s5269_s15, 4096  ;;  %s4995_s21 = smov [#allocation2]  }
  0x81   : > { %p4860_p12 = scmp.ne.s32.totalorder %s5269_s15, %s4859_s16  ;;  %s4864_s17 = sshll.u32 %s4995_s21, 4  ;;  %s4865_s17 = int_to_ptr.vmem [resolvable:$false] %s4864_s17 }
  0x82   : > { %s4866_s10 = scalar_lea.vmem %s4865_s17, 8192  ;;  %p4867_p13 = scmp.lt.s32.totalorder %s5269_s15, %s4865_s17 }
  0x83   : > { %p4862_p3 = pnand %p4860_p12, %p5144_p8  ;;  %p4868_p5 = scmp.lt.s32.totalorder %s4866_s10, %s4859_s16 }
  0x85   : > { %p4863_p10 = pneg %p4862_p3  ;;  %p4869_p2 = por %p4868_p5, %p4867_p13 }
  0x87   : > { %p4870_p0 = pnand %p4869_p2, %p4863_p10 }
  0x89   : > { %4873 = shalt.err (!%p4870_p0)
}
  0x8a   : > { %s6998_s5 = smov 16   ;;  %s6999_s7 = smov 256  }
  0x8b   : > { %4359 = dma.hbm_to_vmem [thread:$0]  (!%p5121_p6), %s5266_s20, 4096, %s5269_s15, %s346_s29, %s6999_s7, %s6999_s7, %s6998_s5  }
  0x8c   : > { %s5306_s26 = scalar_lea.hbm %s6878_s2, %s5119_s23  ;;  %s393_s3 = scalar_lea.vmem [#allocation7], %s5116_s22 }
  0x8d   : > { %s401_s11 = sshll.u32 %s393_s3, 4  ;;  %s4874_s8 = scalar_lea.hbm %s5306_s26, 4096  ;;  %s402_s11 = int_to_ptr.vmem [resolvable:$true] %s401_s11 }
  0x8e   : > { %p4875_p2 = scmp.ne.s32.totalorder %s5306_s26, %s4874_s8  ;;  %s4879_s15 = scalar_lea.hbm %s6878_s2, 8192 }
  0x8f   : > { %p4880_p11 = scmp.lt.s32.totalorder %s5306_s26, %s6878_s2  ;;  %p4881_p7 = scmp.lt.s32.totalorder %s4879_s15, %s4874_s8 }
  0x90   : > { %p4877_p5 = pnand %p4875_p2, %p5144_p8 }
  0x91   : > { %p4882_p1 = por %p4881_p7, %p4880_p11 }
  0x92   : > { %p4878_p0 = pneg %p4877_p5 }
  0x94   : > { %p4883_p4 = pnand %p4882_p1, %p4878_p0 }
  0x96   : > { %4886 = shalt.err (!%p4883_p4)
}
  0x97   : > { %s4887_s22 = scalar_lea.vmem %s402_s11, 4096  ;;  %s4996_s23 = smov [#allocation7]  }
  0x98   : > { %p4888_p9 = scmp.ne.s32.totalorder %s402_s11, %s4887_s22  ;;  %s4892_s21 = sshll.u32 %s4996_s23, 4  ;;  %s4893_s21 = int_to_ptr.vmem [resolvable:$false] %s4892_s21 }
  0x99   : > { %s4894_s17 = scalar_lea.vmem %s4893_s21, 8192  ;;  %p4895_p10 = scmp.lt.s32.totalorder %s402_s11, %s4893_s21 }
  0x9a   : > { %p4890_p12 = pnand %p4888_p9, %p5144_p8  ;;  %p4896_p13 = scmp.lt.s32.totalorder %s4894_s17, %s4887_s22 }
  0x9c   : > { %p4891_p3 = pneg %p4890_p12  ;;  %p4897_p2 = por %p4896_p13, %p4895_p10 }
  0x9e   : > { %p4898_p5 = pnand %p4897_p2, %p4891_p3 }
  0xa0   : > { %4901 = shalt.err (!%p4898_p5)
}
  0xa1   : > { %4365 = dma.hbm_to_vmem [thread:$0]  (!%p5121_p6), %s5306_s26, 4096, %s402_s11, %s5138_s12, %s6999_s7, %s6999_s7, %s6998_s5  }
  0xa2   : > { %s4902_s10 = scalar_lea.hbm %s5215_s18, 2048  ;;  %s4907_s3 = scalar_lea.hbm %s6880_s4, 4096 }
  0xa3   : > { %p4903_p0 = scmp.ne.s32.totalorder %s5215_s18, %s4902_s10  ;;  %p4908_p1 = scmp.lt.s32.totalorder %s5215_s18, %s6880_s4 }
  0xa4   : > { %p4909_p4 = scmp.lt.s32.totalorder %s4907_s3, %s4902_s10 }
  0xa5   : > { %p4905_p11 = pnand %p4903_p0, %p5144_p8 }
  0xa6   : > { %p4910_p9 = por %p4909_p4, %p4908_p1 }
  0xa7   : > { %p4906_p7 = pneg %p4905_p11 }
  0xa9   : > { %p4911_p12 = pnand %p4910_p9, %p4906_p7 }
  0xab   : > { %4914 = shalt.err (!%p4911_p12)
}
  0xac   : > { %s4915_s12 = scalar_lea.vmem %s5219_s27, 2048  ;;  %s4997_s5 = smov [#allocation10]  }
  0xad   : > { %p4916_p3 = scmp.ne.s32.totalorder %s5219_s27, %s4915_s12  ;;  %s4920_s7 = sshll.u32 %s4997_s5, 4  ;;  %s4921_s7 = int_to_ptr.vmem [resolvable:$false] %s4920_s7 }
  0xae   : > { %s4922_s26 = scalar_lea.vmem %s4921_s7, 4096  ;;  %p4923_p2 = scmp.lt.s32.totalorder %s5219_s27, %s4921_s7 }
  0xaf   : > { %p4918_p10 = pnand %p4916_p3, %p5144_p8  ;;  %p4924_p5 = scmp.lt.s32.totalorder %s4922_s26, %s4915_s12 }
  0xb1   : > { %p4919_p13 = pneg %p4918_p10  ;;  %p4925_p0 = por %p4924_p5, %p4923_p2 }
  0xb3   : > { %p4926_p11 = pnand %p4925_p0, %p4919_p13 }
  0xb5   : > { %4929 = shalt.err (!%p4926_p11)
}
  0xb6   : > { %s7000_s11 = smov 8   ;;  %s7001_s16 = smov 128  }
  0xb7   : > { %4371 = dma.hbm_to_vmem [thread:$0]  (!%p5121_p6), %s5215_s18, 2048, %s5219_s27, %s5184_s9, %s7001_s16, %s7001_s16, %s7000_s11  }
  0xb8   : > { %p7002_p8 = scmp.ne.s32.totalorder %s6996_s30, 0 }
  0xba   : > { %455 = sbr.rel (%p7002_p8) target bundleno = 1064 (0x428), region = 52 }
  0xbf   : > { %s5356_s19 = sand.u32 1, %s4976_s14   ;;  %p7003_p7 = scmp.ne.s32.totalorder %s6990_s1, 0 }
  0xc0   : > { %s3630_s15 = sshll.u32 %s5356_s19, 8  ;;  %s458_s20 = scalar_lea.sflag [#allocation3], %s5356_s19 }
  0xc1   : > { %s5360_s29 = scalar_lea.vmem [#allocation2], %s3630_s15 }
  0xc2   : > { %4947 = dma.done.wait (%p7003_p7), %s458_s20, 4096  }
  0xc3   : > { %4949 = vsyncadd (%p7003_p7), %s458_s20, 4294963200  ;;  %s7004_s24 = sld [smem:[#allocation34_spill]]  ;;  %s5370_s27 = scalar_lea.vmem [#allocation5], %s3630_s15 }
  0xc9   : > { %s5367_s9 = sand.u32 1, %s7004_s24  }
  0xca   : > { %s467_s18 = scalar_lea.sflag [#allocation6], %s5367_s9 }
  0xcb   : > { %4951 = dma.done.wait (%p7003_p7), %s467_s18, 8192  }
  0xcc   : > { %4953 = vsyncadd (%p7003_p7), %s467_s18, 4294959104  ;;  %s5377_s30 = sshll.u32 %s5356_s19, 7  ;;  %s5379_s22 = scalar_lea.vmem [#allocation7], %s3630_s15 }
  0xcd   : > { %s485_s23 = scalar_lea.sflag [#allocation9], %s5367_s9  ;;  %s5383_s21 = scalar_lea.vmem [#allocation8], %s5377_s30 }
  0xce   : > { %4955 = dma.done.wait (%p7003_p7), %s485_s23, 4096  }
  0xcf   : > { %4957 = vsyncadd (%p7003_p7), %s485_s23, 4294963200  ;;  %s5390_s17 = scalar_lea.vmem [#allocation10], %s5377_s30  ;;  %p7005_p6 = scmp.eq.s32.totalorder %s7004_s24, 0 }
  0xd1   : > { %4959 = dma.done.wait (%p7005_p6), [#allocation12], 12288   ;;  %p7006_p1 = pmov %p7005_p6 }
  0xd2   : > { %v5397_v0 = vld [vmem:[%s5360_s29] sm:$0xff]  ;;  %v5400_v1 = vld [vmem:[%s5360_s29 + $0x8] sm:$0xff]  ;;  %v5403_v2 = vld [vmem:[%s5360_s29 + $0x10] sm:$0xff]  ;;  %s7007_s13 = sld [smem:[#allocation77_spill]]  ;;  %s4998_s25 = smov 64  }
  0xd3   : > { %4961 = vsyncadd (%p7006_p1), [#allocation12], 4294955008  ;;  %v608_v3 = vmul.f32 %v5397_v0, %v5397_v0  ;;  %v609_v4 = vmul.f32 %v5400_v1, %v5400_v1  ;;  %v5410_v5 = vld [vmem:[%s5360_s29 + $0x18] sm:$0xff]  ;;  %v610_v6 = vmul.f32 %v5403_v2, %v5403_v2  ;;  %v5415_v7 = vld [vmem:[%s5360_s29 + $0x20] sm:$0xff]  ;;  %s7008_s8 = sld [smem:[#allocation78_spill]]  ;;  %s6054_s12 = scalar_lea.vmem [#allocation16], %s5377_s30 }
  0xd4   : > { %v5418_v8 = vld [vmem:[%s5360_s29 + $0x28] sm:$0xff]  ;;  %v611_v9 = vmul.f32 %v5410_v5, %v5410_v5  ;;  %v612_v10 = vmul.f32 %v5415_v7, %v5415_v7  ;;  %v5427_v12 = vld [vmem:[%s5360_s29 + $0x30] sm:$0xff]  ;;  %v5430_v13 = vld [vmem:[%s5360_s29 + $0x38] sm:$0xff]  ;;  %s6698_s5 = scalar_lea.vmem [#allocation13], %s5377_s30  ;;  %s6704_s7 = scalar_lea.vmem [#allocation14], %s5377_s30 }
  0xd5   : > { %v613_v11 = vmul.f32 %v5418_v8, %v5418_v8  ;;  %v5433_v14 = vld [vmem:[%s5360_s29 + $0x50] sm:$0xff]  ;;  %v640_v15 = vadd.f32 %v609_v4, %v608_v3  ;;  %v614_v16 = vmul.f32 %v5427_v12, %v5427_v12  ;;  %v615_v17 = vmul.f32 %v5430_v13, %v5430_v13  ;;  %v5440_v18 = vld [vmem:[%s5360_s29 + $0x58] sm:$0xff]  ;;  %v5443_v19 = vld [vmem:[%s5360_s29 + $0x40] sm:$0xff]  ;;  %s3253_s26 = scalar_lea.sflag [#allocation4], %s5356_s19  ;;  %s3258_s11 = scalar_lea.sflag [#allocation15], %s5367_s9 }
  0xd6   : > { %v5446_v20 = vld [vmem:[%s5360_s29 + $0x48] sm:$0xff]  ;;  %v643_v22 = vadd.f32 %v611_v9, %v610_v6  ;;  %v616_v23 = vmul.f32 %v5443_v19, %v5443_v19  ;;  %v618_v26 = vmul.f32 %v5433_v14, %v5433_v14  ;;  %v619_v27 = vmul.f32 %v5440_v18, %v5440_v18  ;;  %v5457_v28 = vld [vmem:[%s5360_s29 + $0x60] sm:$0xff]  ;;  %v5463_v30 = vld [vmem:[%s5360_s29 + $0x70] sm:$0xff] }
  0xd7   : > { %v646_v21 = vadd.f32 %v613_v11, %v612_v10  ;;  %641 = vadd.xlane.f32.xlu0 %v640_v15  ;;  %v617_v24 = vmul.f32 %v5446_v20, %v5446_v20  ;;  %v649_v25 = vadd.f32 %v615_v17, %v614_v16  ;;  %v5460_v29 = vld [vmem:[%s5360_s29 + $0x68] sm:$0xff]  ;;  %v5466_v31 = vld [vmem:[%s5360_s29 + $0x78] sm:$0xff]  ;;  %v620_v33 = vmul.f32 %v5457_v28, %v5457_v28  ;;  %v594_v35 = vld [vmem:[%s5360_s29 + $0x90] sm:$0xff] }
  0xd8   : > { %v621_v34 = vmul.f32 %v5460_v29, %v5460_v29  ;;  %v5474_v36 = vld [vmem:[%s5360_s29 + $0x98] sm:$0xff]  ;;  %v655_v37 = vadd.f32 %v619_v27, %v618_v26  ;;  %v622_v38 = vmul.f32 %v5463_v30, %v5463_v30  ;;  %v623_v39 = vmul.f32 %v5466_v31, %v5466_v31  ;;  %v5481_v40 = vld [vmem:[%s5360_s29 + $0x80] sm:$0xff]  ;;  %v5484_v41 = vld [vmem:[%s5360_s29 + $0x88] sm:$0xff] }
  0xd9   : > { %647 = vadd.xlane.f32.xlu1 %v646_v21  ;;  %v652_v32 = vadd.f32 %v617_v24, %v616_v23  ;;  %v4447_v42 = vld [vmem:[#allocation11 + $0x154] ss:$24 sps:$4 sm:$0xff]   ;;  %v596_v43 = vld [vmem:[%s5360_s29 + $0xa0] sm:$0xff]  ;;  %v4451_v46 = vld [vmem:[#allocation11 + $0x150] ss:$24 sps:$4 sm:$0xff]   ;;  %v624_v48 = vmul.f32 %v5481_v40, %v5481_v40  ;;  %v625_v49 = vmul.f32 %v5484_v41, %v5484_v41  ;;  %v626_v54 = vmul.f32 %v594_v35, %v594_v35 }
  0xda   : > { %v597_v44 = vld [vmem:[%s5360_s29 + $0xa8] sm:$0xff]  ;;  %v4449_v45 = vld [vmem:[#allocation11 + $0x15c] ss:$24 sps:$4 sm:$0xff]   ;;  %v658_v47 = vadd.f32 %v621_v34, %v620_v33  ;;  %1597 = vmatprep.subr.bf16.mxu0 %v4447_v42  ;;  %v4452_v52 = vld [vmem:[#allocation11 + $0x158] ss:$24 sps:$4 sm:$0xff]   ;;  %v661_v53 = vadd.f32 %v623_v39, %v622_v38  ;;  %v627_v55 = vmul.f32 %v5474_v36, %v5474_v36  ;;  %v628_v63 = vmul.f32 %v596_v43, %v596_v43 }
  0xdb   : > { %644 = vadd.xlane.f32.xlu0 %v643_v22  ;;  %v598_v50 = vld [vmem:[%s5360_s29 + $0xb0] sm:$0xff]  ;;  %v599_v51 = vld [vmem:[%s5360_s29 + $0xb8] sm:$0xff]  ;;  %1710 = vmatprep.subr.bf16.mxu1 %v4449_v45  ;;  %v4455_v57 = vld [vmem:[#allocation11 + $0x12c] ss:$24 sps:$4 sm:$0xff]   ;;  %v664_v62 = vadd.f32 %v625_v49, %v624_v48  ;;  %v629_v3 = vmul.f32 %v597_v44, %v597_v44 }
  0xdc   : > { %v4453_v56 = vld [vmem:[#allocation11 + $0x124] ss:$24 sps:$4 sm:$0xff]   ;;  %1598 = vmatpush1.bf16.msra.mxu0 %v4451_v46  ;;  %1711 = vmatpush1.bf16.msra.mxu1 %v4452_v52  ;;  %v4457_v58 = vld [vmem:[#allocation11 + $0x120] ss:$24 sps:$4 sm:$0xff]   ;;  %v4459_v61 = vld [vmem:[#allocation11 + $0xf4] ss:$24 sps:$4 sm:$0xff]   ;;  %v667_v10 = vadd.f32 %v627_v55, %v626_v54  ;;  %v630_v11 = vmul.f32 %v598_v50, %v598_v50  ;;  %v631_v15 = vmul.f32 %v599_v51, %v599_v51 }
  0xdd   : > { %650 = vadd.xlane.f32.xlu1 %v649_v25  ;;  %v4458_v59 = vld [vmem:[#allocation11 + $0x128] ss:$24 sps:$4 sm:$0xff]   ;;  %1599 = vmatprep.subr.bf16.mxu0 %v4453_v56  ;;  %v602_v4 = vld [vmem:[%s5360_s29 + $0xd0] sm:$0xff]  ;;  %v603_v6 = vld [vmem:[%s5360_s29 + $0xd8] sm:$0xff]  ;;  %v670_v24 = vadd.f32 %v629_v3, %v628_v63 }
  0xde   : > { %v600_v60 = vld [vmem:[%s5360_s29 + $0xc0] sm:$0xff]  ;;  %1712 = vmatprep.subr.bf16.mxu1 %v4455_v57  ;;  %v4461_v9 = vld [vmem:[#allocation11 + $0xfc] ss:$24 sps:$4 sm:$0xff]   ;;  %v601_v16 = vld [vmem:[%s5360_s29 + $0xc8] sm:$0xff]  ;;  %v673_v34 = vadd.f32 %v631_v15, %v630_v11  ;;  %v634_v35 = vmul.f32 %v602_v4, %v602_v4 }
  0xdf   : > { %653 = vadd.xlane.f32.xlu0 %v652_v32  ;;  %v4463_v17 = vld [vmem:[#allocation11 + $0xf0] ss:$24 sps:$4 sm:$0xff]   ;;  %v4465_v22 = vld [vmem:[#allocation11 + $0xc4] ss:$24 sps:$4 sm:$0xff]   ;;  %v632_v25 = vmul.f32 %v600_v60, %v600_v60  ;;  %v633_v26 = vmul.f32 %v601_v16, %v601_v16  ;;  %v4469_v39 = vld [vmem:[#allocation11 + $0xc0] ss:$24 sps:$4 sm:$0xff]  }
  0xe0   : > { %1600 = vmatpush1.bf16.msra.mxu0 %v4457_v58  ;;  %1713 = vmatpush1.bf16.msra.mxu1 %v4458_v59  ;;  %v4464_v21 = vld [vmem:[#allocation11 + $0xf8] ss:$24 sps:$4 sm:$0xff]   ;;  %v4467_v23 = vld [vmem:[#allocation11 + $0xcc] ss:$24 sps:$4 sm:$0xff]   ;;  %v4470_v42 = vld [vmem:[#allocation11 + $0xc8] ss:$24 sps:$4 sm:$0xff]  }
  0xe1   : > { %656 = vadd.xlane.f32.xlu1 %v655_v37  ;;  %1601 = vmatprep.subr.bf16.mxu0 %v4459_v61  ;;  %v606_v27 = vld [vmem:[%s5360_s29 + $0xf0] sm:$0xff]  ;;  %v607_v32 = vld [vmem:[%s5360_s29 + $0xf8] sm:$0xff]  ;;  %v604_v33 = vld [vmem:[%s5360_s29 + $0xe0] sm:$0xff]  ;;  %v635_v37 = vmul.f32 %v603_v6, %v603_v6  ;;  %v676_v45 = vadd.f32 %v633_v26, %v632_v25 }
  0xe2   : > { %1714 = vmatprep.subr.bf16.mxu1 %v4461_v9  ;;  %v605_v38 = vld [vmem:[%s5360_s29 + $0xe8] sm:$0xff]  ;;  %v4473_v44 = vld [vmem:[#allocation11 + $0x9c] ss:$24 sps:$4 sm:$0xff]   ;;  %v636_v46 = vmul.f32 %v604_v33, %v604_v33  ;;  %v638_v49 = vmul.f32 %v606_v27, %v606_v27  ;;  %v639_v50 = vmul.f32 %v607_v32, %v607_v32  ;;  %v4476_v52 = vld [vmem:[#allocation11 + $0x98] ss:$24 sps:$4 sm:$0xff]  }
  0xe3   : > { %659 = vadd.xlane.f32.xlu0 %v658_v47  ;;  %v4471_v43 = vld [vmem:[#allocation11 + $0x94] ss:$24 sps:$4 sm:$0xff]   ;;  %v637_v47 = vmul.f32 %v605_v38, %v605_v38  ;;  %v679_v48 = vadd.f32 %v635_v37, %v634_v35  ;;  %v4475_v51 = vld [vmem:[#allocation11 + $0x90] ss:$24 sps:$4 sm:$0xff]   ;;  %v4481_v57 = vld [vmem:[#allocation11 + $0x60] ss:$24 sps:$4 sm:$0xff]  }
  0xe4   : > { %1602 = vmatpush1.bf16.msra.mxu0 %v4463_v17  ;;  %1715 = vmatpush1.bf16.msra.mxu1 %v4464_v21  ;;  %v4479_v54 = vld [vmem:[#allocation11 + $0x6c] ss:$24 sps:$4 sm:$0xff]   ;;  %v685_v56 = vadd.f32 %v639_v50, %v638_v49  ;;  %v4482_v58 = vld [vmem:[#allocation11 + $0x68] ss:$24 sps:$4 sm:$0xff]   ;;  %v4485_v60 = vld [vmem:[#allocation11 + $0x3c] ss:$24 sps:$4 sm:$0xff]  }
  0xe5   : > { %662 = vadd.xlane.f32.xlu1 %v661_v53  ;;  %1603 = vmatprep.subr.bf16.mxu0 %v4465_v22  ;;  %v4477_v53 = vld [vmem:[#allocation11 + $0x64] ss:$24 sps:$4 sm:$0xff]   ;;  %v682_v55 = vadd.f32 %v637_v47, %v636_v46  ;;  %v4483_v59 = vld [vmem:[#allocation11 + $0x34] ss:$24 sps:$4 sm:$0xff]   ;;  %v4487_v61 = vld [vmem:[#allocation11 + $0x30] ss:$24 sps:$4 sm:$0xff]  }
  0xe6   : > { %1716 = vmatprep.subr.bf16.mxu1 %v4467_v23  ;;  %v4489_v63 = vld [vmem:[#allocation11 + $0x4] ss:$24 sps:$4 sm:$0xff]   ;;  %v4493_v4 = vld [vmem:[#allocation11] ss:$24 sps:$4 sm:$0xff]   ;;  %v4495_v9 = vld [vmem:[#allocation11 + $0x2d4] ss:$24 sps:$4 sm:$0xff]  }
  0xe7   : > { %665 = vadd.xlane.f32.xlu0 %v664_v62  ;;  %v4488_v62 = vld [vmem:[#allocation11 + $0x38] ss:$24 sps:$4 sm:$0xff]   ;;  %v4491_v3 = vld [vmem:[#allocation11 + $0xc] ss:$24 sps:$4 sm:$0xff]   ;;  %v4494_v6 = vld [vmem:[#allocation11 + $0x8] ss:$24 sps:$4 sm:$0xff]  }
  0xe8   : > { %1604 = vmatpush1.bf16.msra.mxu0 %v4469_v39  ;;  %1717 = vmatpush1.bf16.msra.mxu1 %v4470_v42  ;;  %v4499_v11 = vld [vmem:[#allocation11 + $0x2d0] ss:$24 sps:$4 sm:$0xff]   ;;  %v4501_v16 = vld [vmem:[#allocation11 + $0x2a4] ss:$24 sps:$4 sm:$0xff]   ;;  %v4505_v21 = vld [vmem:[#allocation11 + $0x2a0] ss:$24 sps:$4 sm:$0xff]  }
  0xe9   : > { %668 = vadd.xlane.f32.xlu1 %v667_v10  ;;  %1605 = vmatprep.subr.bf16.mxu0 %v4471_v43  ;;  %v4497_v10 = vld [vmem:[#allocation11 + $0x2dc] ss:$24 sps:$4 sm:$0xff]   ;;  %v4500_v15 = vld [vmem:[#allocation11 + $0x2d8] ss:$24 sps:$4 sm:$0xff]   ;;  %v4503_v17 = vld [vmem:[#allocation11 + $0x2ac] ss:$24 sps:$4 sm:$0xff]  }
  0xea   : > { %1718 = vmatprep.subr.bf16.mxu1 %v4473_v44  ;;  %v4506_v22 = vld [vmem:[#allocation11 + $0x2a8] ss:$24 sps:$4 sm:$0xff]   ;;  %v4507_v23 = vld [vmem:[#allocation11 + $0x274] ss:$24 sps:$4 sm:$0xff]   ;;  %v4512_v26 = vld [vmem:[#allocation11 + $0x278] ss:$24 sps:$4 sm:$0xff]  }
  0xeb   : > { %671 = vadd.xlane.f32.xlu0 %v670_v24  ;;  %v4509_v24 = vld [vmem:[#allocation11 + $0x27c] ss:$24 sps:$4 sm:$0xff]   ;;  %v4511_v25 = vld [vmem:[#allocation11 + $0x270] ss:$24 sps:$4 sm:$0xff]   ;;  %v4515_v32 = vld [vmem:[#allocation11 + $0x24c] ss:$24 sps:$4 sm:$0xff]  }
  0xec   : > { %1606 = vmatpush1.bf16.msra.mxu0 %v4475_v51  ;;  %1719 = vmatpush1.bf16.msra.mxu1 %v4476_v52  ;;  %v4513_v27 = vld [vmem:[#allocation11 + $0x244] ss:$24 sps:$4 sm:$0xff]   ;;  %v4517_v33 = vld [vmem:[#allocation11 + $0x240] ss:$24 sps:$4 sm:$0xff]   ;;  %v4519_v35 = vld [vmem:[#allocation11 + $0x214] ss:$24 sps:$4 sm:$0xff]  }
  0xed   : > { %674 = vadd.xlane.f32.xlu1 %v673_v34  ;;  %1607 = vmatprep.subr.bf16.mxu0 %v4477_v53  ;;  %v4518_v34 = vld [vmem:[#allocation11 + $0x248] ss:$24 sps:$4 sm:$0xff]   ;;  %v4521_v37 = vld [vmem:[#allocation11 + $0x21c] ss:$24 sps:$4 sm:$0xff]   ;;  %v4524_v39 = vld [vmem:[#allocation11 + $0x218] ss:$24 sps:$4 sm:$0xff]  }
  0xee   : > { %1720 = vmatprep.subr.bf16.mxu1 %v4479_v54  ;;  %v4523_v38 = vld [vmem:[#allocation11 + $0x210] ss:$24 sps:$4 sm:$0xff]   ;;  %v4525_v42 = vld [vmem:[#allocation11 + $0x1e4] ss:$24 sps:$4 sm:$0xff]   ;;  %v4529_v44 = vld [vmem:[#allocation11 + $0x1e0] ss:$24 sps:$4 sm:$0xff]  }
  0xef   : > { %677 = vadd.xlane.f32.xlu0 %v676_v45  ;;  %v4527_v43 = vld [vmem:[#allocation11 + $0x1ec] ss:$24 sps:$4 sm:$0xff]   ;;  %v4530_v45 = vld [vmem:[#allocation11 + $0x1e8] ss:$24 sps:$4 sm:$0xff]   ;;  %v4533_v47 = vld [vmem:[#allocation11 + $0x1bc] ss:$24 sps:$4 sm:$0xff]  }
  0xf0   : > { %1608 = vmatpush1.bf16.msra.mxu0 %v4481_v57  ;;  %1721 = vmatpush1.bf16.msra.mxu1 %v4482_v58  ;;  %v4531_v46 = vld [vmem:[#allocation11 + $0x1b4] ss:$24 sps:$4 sm:$0xff]   ;;  %v4536_v49 = vld [vmem:[#allocation11 + $0x1b8] ss:$24 sps:$4 sm:$0xff]   ;;  %v4537_v50 = vld [vmem:[#allocation11 + $0x184] ss:$24 sps:$4 sm:$0xff]  }
  0xf1   : > { %680 = vadd.xlane.f32.xlu1 %v679_v48  ;;  %1609 = vmatprep.subr.bf16.mxu0 %v4483_v59  ;;  %v4535_v48 = vld [vmem:[#allocation11 + $0x1b0] ss:$24 sps:$4 sm:$0xff]   ;;  %v4539_v51 = vld [vmem:[#allocation11 + $0x18c] ss:$24 sps:$4 sm:$0xff]   ;;  %v4541_v52 = vld [vmem:[#allocation11 + $0x180] ss:$24 sps:$4 sm:$0xff]  }
  0xf2   : > { %1722 = vmatprep.subr.bf16.mxu1 %v4485_v60  ;;  %v4542_v53 = vld [vmem:[#allocation11 + $0x188] ss:$24 sps:$4 sm:$0xff]   ;;  %v4545_v54 = vld [vmem:[#allocation11 + $0x164] ss:$24 sps:$4 sm:$0xff]   ;;  %v771_v60 = vlaneseq }
  0xf3   : > { %683 = vadd.xlane.f32.xlu0 %v682_v55 }
  0xf4   : > { %1610 = vmatpush1.bf16.msra.mxu0 %v4487_v61  ;;  %1723 = vmatpush1.bf16.msra.mxu1 %v4488_v62 }
  0xf5   : > { %686 = vadd.xlane.f32.xlu1 %v685_v56  ;;  %1611 = vmatprep.subr.bf16.mxu0 %v4489_v63 }
  0xf6   : > { %1724 = vmatprep.subr.bf16.mxu1 %v4491_v3 }
  0xf8   : > { %1612 = vmatpush1.bf16.msra.mxu0 %v4493_v4  ;;  %1725 = vmatpush1.bf16.msra.mxu1 %v4494_v6 }
  0xf9   : > { %1613 = vmatprep.subr.bf16.mxu0 %v4495_v9  ;;  %1726 = vmatprep.subr.bf16.mxu1 %v4497_v10  ;;  %v5504_v9 = vshrl.u32 %v771_v60, 7 }
  0xfc   : > { %1614 = vmatpush2.bf16.msra.mxu0 %v4499_v11  ;;  %1727 = vmatpush2.bf16.msra.mxu1 %v4500_v15 }
  0xfd   : > { %1615 = vmatprep.subr.bf16.mxu0 %v4501_v16  ;;  %1728 = vmatprep.subr.bf16.mxu1 %v4503_v17 }
 0x100   : > { %1616 = vmatpush2.bf16.msra.mxu0 %v4505_v21  ;;  %1729 = vmatpush2.bf16.msra.mxu1 %v4506_v22  ;;  %v777_v22 = vsub.s32 1, %v5504_v9 }
 0x101   : > { %1617 = vmatprep.subr.bf16.mxu0 %v4507_v23  ;;  %1730 = vmatprep.subr.bf16.mxu1 %v4509_v24 }
 0x104   : > { %1618 = vmatpush2.bf16.msra.mxu0 %v4511_v25  ;;  %1731 = vmatpush2.bf16.msra.mxu1 %v4512_v26  ;;  %v769_v25 = vld [vmem:[%s7007_s13] sm:$0x3]  ;;  %v814_v26 = vld [vmem:[%s5379_s22 + $0x8] sm:$0xff] }
 0x105   : > { %1619 = vmatprep.subr.bf16.mxu0 %v4513_v27  ;;  %1732 = vmatprep.subr.bf16.mxu1 %v4515_v32  ;;  %v773_v27 = vsub.s32 0, %v5504_v9 }
 0x108   : > { %1620 = vmatpush2.bf16.msra.mxu0 %v4517_v33  ;;  %1733 = vmatpush2.bf16.msra.mxu1 %v4518_v34  ;;  %v816_v34 = vld [vmem:[%s5379_s22 + $0x18] sm:$0xff] }
 0x109   : > { %1621 = vmatprep.subr.bf16.mxu0 %v4519_v35  ;;  %1734 = vmatprep.subr.bf16.mxu1 %v4521_v37  ;;  %v813_v35 = vld [vmem:[%s5379_s22] sm:$0xff] }
 0x10c   : > { %1622 = vmatpush2.bf16.msra.mxu0 %v4523_v38  ;;  %1735 = vmatpush2.bf16.msra.mxu1 %v4524_v39  ;;  %v815_v38 = vld [vmem:[%s5379_s22 + $0x10] sm:$0xff]  ;;  %v818_v39 = vld [vmem:[%s5379_s22 + $0x28] sm:$0xff] }
 0x10d   : > { %1623 = vmatprep.subr.bf16.mxu0 %v4525_v42  ;;  %1736 = vmatprep.subr.bf16.mxu1 %v4527_v43  ;;  %v820_v42 = vld [vmem:[%s5379_s22 + $0x38] sm:$0xff] }
 0x110   : > { %1624 = vmatpush2.bf16.msra.mxu0 %v4529_v44  ;;  %1737 = vmatpush2.bf16.msra.mxu1 %v4530_v45  ;;  %v5519_v44 = vrot.slane %v769_v25, %v777_v22  ;;  %v846_v45 = vadd.f32 1.0, %v814_v26 }
 0x111   : > { %1625 = vmatprep.subr.bf16.mxu0 %v4531_v46  ;;  %1738 = vmatprep.subr.bf16.mxu1 %v4533_v47  ;;  %v817_v46 = vld [vmem:[%s5379_s22 + $0x20] sm:$0xff]  ;;  %v819_v47 = vld [vmem:[%s5379_s22 + $0x30] sm:$0xff] }
 0x114   : > { %1626 = vmatpush2.bf16.msra.mxu0 %v4535_v48  ;;  %1739 = vmatpush2.bf16.msra.mxu1 %v4536_v49  ;;  %v848_v49 = vadd.f32 1.0, %v816_v34 }
 0x115   : > { %1627 = vmatprep.subr.bf16.mxu0 %v4537_v50  ;;  %1740 = vmatprep.subr.bf16.mxu1 %v4539_v51  ;;  %v5525_v50 = vrot.slane %v769_v25, %v773_v27  ;;  %v845_v51 = vadd.f32 1.0, %v813_v35 }
 0x118   : > { %1628 = vmatpush2.bf16.msra.mxu0 %v4541_v52  ;;  %1741 = vmatpush2.bf16.msra.mxu1 %v4542_v53  ;;  %v822_v53 = vld [vmem:[%s5379_s22 + $0x48] sm:$0xff] }
 0x119   : > { %1823 = vmatprep.subr.bf16.mxu0 %v4545_v54  ;;  %4282 = vmatprep.subr.bf16.mxu1 %v4545_v54  ;;  %v847_v54 = vadd.f32 1.0, %v815_v38  ;;  %v910_v38 = vld [vmem:[%s5370_s27 + $0x8] sm:$0xff] }
 0x160   : > { %v642_v55 = vpop.xlane.xlu0 %641 }
 0x161   : > { %v689_v56 = vmul.f32 0.00390625, %v642_v55 }
 0x162   : > { %v648_v57 = vpop.xlane.xlu1 %647 }
 0x163   : > { %v691_v58 = vmul.f32 0.00390625, %v648_v57  ;;  %v705_v59 = vadd.f32 1e-06, %v689_v56  ;;  %v850_v57 = vadd.f32 1.0, %v818_v39 }
 0x164   : > { %v645_v61 = vpop.xlane.xlu0 %644 }
 0x165   : > { %v707_v62 = vadd.f32 1e-06, %v691_v58  ;;  %4591 = vrsqrt.f32 %v705_v59  ;;  %v690_v63 = vmul.f32 0.00390625, %v645_v61  ;;  %v852_v58 = vadd.f32 1.0, %v820_v42 }
 0x166   : > { %v651_v3 = vpop.xlane.xlu1 %650  ;;  %v849_v61 = vadd.f32 1.0, %v817_v46 }
 0x167   : > { %4593 = vrsqrt.f32 %v707_v62  ;;  %v692_v4 = vmul.f32 0.00390625, %v651_v3  ;;  %v706_v6 = vadd.f32 1e-06, %v690_v63  ;;  %v851_v62 = vadd.f32 1.0, %v819_v47  ;;  %v824_v63 = vld [vmem:[%s5379_s22 + $0x58] sm:$0xff] }
 0x168   : > { %v654_v11 = vpop.xlane.xlu0 %653  ;;  %v5537_v25 = vadd.f32 1.0, %v824_v63 }
 0x169   : > { %v708_v10 = vadd.f32 1e-06, %v692_v4  ;;  %4595 = vrsqrt.f32 %v706_v6  ;;  %v693_v16 = vmul.f32 0.00390625, %v654_v11  ;;  %v5531_v11 = vadd.f32 1.0, %v822_v53 }
 0x16a   : > { %v657_v15 = vpop.xlane.xlu1 %656 }
 0x16b   : > { %4597 = vrsqrt.f32 %v708_v10  ;;  %v694_v17 = vmul.f32 0.00390625, %v657_v15  ;;  %v709_v21 = vadd.f32 1e-06, %v693_v16 }
 0x16c   : > { %v660_v24 = vpop.xlane.xlu0 %659 }
 0x16d   : > { %v710_v23 = vadd.f32 1e-06, %v694_v17  ;;  %4599 = vrsqrt.f32 %v709_v21  ;;  %v695_v33 = vmul.f32 0.00390625, %v660_v24 }
 0x16e   : > { %v663_v32 = vpop.xlane.xlu1 %662 }
 0x16f   : > { %4601 = vrsqrt.f32 %v710_v23  ;;  %v696_v37 = vmul.f32 0.00390625, %v663_v32  ;;  %v711_v43 = vadd.f32 1e-06, %v695_v33 }
 0x170   : > { %v666_v52 = vpop.xlane.xlu0 %665 }
 0x171   : > { %v712_v48 = vadd.f32 1e-06, %v696_v37  ;;  %v697_v56 = vmul.f32 0.00390625, %v666_v52  ;;  %4603 = vrsqrt.f32 %v711_v43  ;;  %v909_v43 = vld [vmem:[%s5370_s27] sm:$0xff] }
 0x172   : > { %v669_v55 = vpop.xlane.xlu1 %668  ;;  %v4592_v59 = vpop.eup %4591 }
 0x173   : > { %v698_v60 = vmul.f32 0.00390625, %v669_v55  ;;  %v738_v4 = vmul.f32 %v4592_v59, %v5400_v1  ;;  %v737_v6 = vmul.f32 %v4592_v59, %v5397_v0  ;;  %v713_v10 = vadd.f32 1e-06, %v697_v56  ;;  %v821_v0 = vld [vmem:[%s5379_s22 + $0x40] sm:$0xff]  ;;  %v911_v56 = vld [vmem:[%s5370_s27 + $0x10] sm:$0xff] }
 0x174   : > { %v4594_v3 = vpop.eup %4593  ;;  %4605 = vrsqrt.f32 %v712_v48  ;;  %v672_v21 = vpop.xlane.xlu0 %671  ;;  %v5548_v48 = vadd.f32 1.0, %v821_v0  ;;  %v915_v0 = vld [vmem:[%s5370_s27 + $0x30] sm:$0xff] }
 0x175   : > { %v714_v15 = vadd.f32 1e-06, %v698_v60  ;;  %v742_v16 = vmul.f32 %v4594_v3, %v5418_v8  ;;  %v741_v17 = vmul.f32 %v4594_v3, %v5415_v7  ;;  %v782_v23 = vmul.f32 %v5519_v44, %v738_v4 }
 0x176   : > { %v781_v24 = vmul.f32 %v5525_v50, %v737_v6  ;;  %4607 = vrsqrt.f32 %v713_v10  ;;  %v675_v1 = vpop.xlane.xlu1 %674  ;;  %v4596_v26 = vpop.eup %4595  ;;  %v699_v34 = vmul.f32 0.00390625, %v672_v21  ;;  %v916_v6 = vld [vmem:[%s5370_s27 + $0x38] sm:$0xff]  ;;  %v913_v10 = vld [vmem:[%s5370_s27 + $0x20] sm:$0xff] }
 0x177   : > { %v786_v32 = vmul.f32 %v5519_v44, %v742_v16  ;;  %v785_v33 = vmul.f32 %v5525_v50, %v741_v17  ;;  %v700_v8 = vmul.f32 0.00390625, %v675_v1  ;;  %v740_v35 = vmul.f32 %v4596_v26, %v5410_v5 }
 0x178   : > { %v4598_v7 = vpop.eup %4597  ;;  %v878_v37 = vmul.f32 %v846_v45, %v782_v23  ;;  %v739_v39 = vmul.f32 %v4596_v26, %v5403_v2  ;;  %v877_v42 = vmul.f32 %v845_v51, %v781_v24  ;;  %4609 = vrsqrt.f32 %v714_v15  ;;  %v912_v2 = vld [vmem:[%s5370_s27 + $0x18] sm:$0xff] }
 0x179   : > { %v744_v46 = vmul.f32 %v4598_v7, %v5430_v13  ;;  %v743_v47 = vmul.f32 %v4598_v7, %v5427_v12  ;;  %v784_v52 = vmul.f32 %v5519_v44, %v740_v35  ;;  %v882_v45 = vmul.f32 %v850_v57, %v786_v32  ;;  %v914_v13 = vld [vmem:[%s5370_s27 + $0x28] sm:$0xff] }
 0x17a   : > { %v783_v5 = vmul.f32 %v5525_v50, %v739_v39  ;;  %v881_v53 = vmul.f32 %v849_v61, %v785_v33  ;;  %v4600_v55 = vpop.eup %4599  ;;  %v942_v51 = vadd.f32 %v910_v38, %v878_v37  ;;  %v941_v59 = vadd.f32 %v909_v43, %v877_v42  ;;  %v681_v33 = vpop.xlane.xlu1 %680  ;;  %v4548_v35 = vld [vmem:[#allocation11 + $0x134] ss:$24 sps:$4 sm:$0xff]  }
 0x17b   : > { %v788_v60 = vmul.f32 %v5519_v44, %v744_v46  ;;  %v787_v12 = vmul.f32 %v5525_v50, %v743_v47  ;;  %v880_v3 = vmul.f32 %v848_v49, %v784_v52  ;;  %v716_v15 = vadd.f32 1e-06, %v700_v8  ;;  %v918_v39 = vld [vmem:[%s5370_s27 + $0x48] sm:$0xff]  ;;  %v920_v47 = vld [vmem:[%s5370_s27 + $0x58] sm:$0xff] }
 0x17c   : > { %v4602_v63 = vpop.eup %4601  ;;  %v879_v4 = vmul.f32 %v847_v54, %v783_v5  ;;  %v715_v16 = vadd.f32 1e-06, %v699_v34  ;;  %v746_v17 = vmul.f32 %v4600_v55, %v5446_v20  ;;  %v946_v1 = vadd.f32 %v914_v13, %v882_v45 }
 0x17d   : > { %v884_v57 = vmul.f32 %v852_v58, %v788_v60  ;;  %v883_v61 = vmul.f32 %v851_v62, %v787_v12  ;;  %v748_v21 = vmul.f32 %v4602_v63, %v5440_v18  ;;  %v944_v23 = vadd.f32 %v912_v2, %v880_v3  ;;  %v678_v58 = vpop.xlane.xlu0 %677  ;;  %v4543_v18 = vld [vmem:[#allocation11 + $0x160] ss:$24 sps:$4 sm:$0xff]   ;;  %v826_v2 = vld [vmem:[%s5379_s22 + $0x68] sm:$0xff]  ;;  %v4551_v60 = vld [vmem:[#allocation11 + $0x104] ss:$24 sps:$4 sm:$0xff]  }
 0x17e   : > { %v943_v24 = vadd.f32 %v911_v56, %v879_v4  ;;  %v745_v26 = vmul.f32 %v4600_v55, %v5443_v19  ;;  %v945_v49 = vadd.f32 %v913_v10, %v881_v53  ;;  %4611 = vrsqrt.f32 %v716_v15  ;;  %v4604_v62 = vpop.eup %4603  ;;  %v823_v19 = vld [vmem:[%s5379_s22 + $0x50] sm:$0xff]  ;;  %v825_v4 = vld [vmem:[%s5379_s22 + $0x60] sm:$0xff] }
 0x17f   : > { %v948_v32 = vadd.f32 %v916_v6, %v884_v57  ;;  %v790_v54 = vmul.f32 %v5519_v44, %v746_v17  ;;  %v5564_v8 = vpack.c.bf16 %v944_v23, %v942_v51  ;;  %v792_v34 = vmul.f32 %v5519_v44, %v748_v21  ;;  %v828_v51 = vld [vmem:[%s5379_s22 + $0x78] sm:$0xff]  ;;  %v687_v6 = vpop.xlane.xlu1 %686  ;;  %v917_v15 = vld [vmem:[%s5370_s27 + $0x40] sm:$0xff] }
 0x180   : > { %v5566_v20 = vpack.c.bf16 %v943_v24, %v941_v59  ;;  %v747_v7 = vmul.f32 %v4602_v63, %v5433_v14  ;;  %v947_v37 = vadd.f32 %v915_v0, %v883_v61  ;;  %4613 = vrsqrt.f32 %v715_v16  ;;  %v4549_v24 = vld [vmem:[#allocation11 + $0x100] ss:$24 sps:$4 sm:$0xff]   ;;  %v827_v0 = vld [vmem:[%s5379_s22 + $0x70] sm:$0xff] }
 0x181   : > { %v886_v38 = vmul.f32 %v5531_v11, %v790_v54  ;;  %v789_v42 = vmul.f32 %v5525_v50, %v745_v26  ;;  %v4606_v43 = vpop.eup %4605  ;;  %1629 = vmatprep.mubr.bf16.mxu0 %v5564_v8  ;;  %1742 = vmatprep.mubr.bf16.mxu1 %v5564_v8  ;;  %v5576_v46 = vpack.c.bf16 %v948_v32, %v946_v1  ;;  %v702_v52 = vmul.f32 0.00390625, %v681_v33  ;;  %v684_v61 = vpop.xlane.xlu0 %683  ;;  %v919_v1 = vld [vmem:[%s5370_s27 + $0x50] sm:$0xff]  ;;  %v830_v33 = vld [vmem:[%s5379_s22 + $0x88] sm:$0xff] }
 0x182   : > { %v888_v14 = vmul.f32 %v5537_v25, %v792_v34  ;;  %v701_v5 = vmul.f32 0.00390625, %v678_v58  ;;  %1630 = vmatmul.mubr.bf16.vlgmr.msra.gmra.mxu0 %v5566_v20  ;;  %1743 = vmatmul.mubr.bf16.vlgmr.msra.gmra.mxu1 %v5566_v20  ;;  %v791_v11 = vmul.f32 %v5525_v50, %v747_v7  ;;  %v855_v53 = vadd.f32 1.0, %v823_v19  ;;  %v4546_v25 = vld [vmem:[#allocation11 + $0x130] ss:$24 sps:$4 sm:$0xff]   ;;  %v832_v7 = vld [vmem:[%s5379_s22 + $0x98] sm:$0xff] }
 0x183   : > { %v5580_v45 = vpop.eup %4607  ;;  %v750_v55 = vmul.f32 %v4604_v62, %v5460_v29  ;;  %1824 = vmatpush1.bf16.msra.mxu0 %v4543_v18  ;;  %4298 = vmatpush1.bf16.msra.mxu1 %v4543_v18  ;;  %v950_v56 = vadd.f32 %v918_v39, %v886_v38  ;;  %v718_v59 = vadd.f32 1e-06, %v702_v52  ;;  %v885_v12 = vmul.f32 %v5548_v48, %v789_v42 }
 0x184   : > { %1825 = vmatprep.subr.bf16.mxu0 %v4548_v35  ;;  %4283 = vmatprep.subr.bf16.mxu1 %v4548_v35  ;;  %v952_v13 = vadd.f32 %v920_v47, %v888_v14  ;;  %v717_v63 = vadd.f32 1e-06, %v701_v5  ;;  %v752_v3 = vmul.f32 %v4606_v43, %v5466_v31  ;;  %v5595_v10 = vpack.c.bf16 %v947_v37, %v945_v49  ;;  %v4554_v49 = vld [vmem:[#allocation11 + $0xd4] ss:$24 sps:$4 sm:$0xff]   ;;  %v924_v37 = vld [vmem:[%s5370_s27 + $0x78] sm:$0xff] }
 0x185   : > { %v5591_v29 = vpop.eup %4609  ;;  %1639 = vmatprep.mubr.bf16.mxu0 %v5576_v46  ;;  %1752 = vmatprep.mubr.bf16.mxu1 %v5576_v46  ;;  %v794_v16 = vmul.f32 %v5519_v44, %v750_v55  ;;  %v858_v57 = vadd.f32 1.0, %v826_v2  ;;  %v860_v48 = vadd.f32 1.0, %v828_v51  ;;  %v887_v17 = vmul.f32 %v855_v53, %v791_v11  ;;  %v922_v35 = vld [vmem:[%s5370_s27 + $0x68] sm:$0xff]  ;;  %v4557_v47 = vld [vmem:[#allocation11 + $0xa4] ss:$24 sps:$4 sm:$0xff]  }
 0x186   : > { %v796_v31 = vmul.f32 %v5519_v44, %v752_v3  ;;  %v749_v21 = vmul.f32 %v4604_v62, %v5457_v28  ;;  %v751_v23 = vmul.f32 %v4606_v43, %v5463_v30  ;;  %4615 = vrsqrt.f32 %v718_v59 }
 0x187   : > { %1826 = vmatpush1.bf16.msra.mxu0 %v4546_v25  ;;  %4299 = vmatpush1.bf16.msra.mxu1 %v4546_v25  ;;  %v857_v26 = vadd.f32 1.0, %v825_v4  ;;  %v704_v32 = vmul.f32 0.00390625, %v687_v6  ;;  %v5604_v54 = vpack.c.bf16 %v952_v13, %v950_v56  ;;  %v949_v28 = vadd.f32 %v917_v15, %v885_v12  ;;  %v829_v56 = vld [vmem:[%s5379_s22 + $0x80] sm:$0xff]  ;;  %v923_v6 = vld [vmem:[%s5370_s27 + $0x70] sm:$0xff] }
 0x188   : > { %1827 = vmatprep.subr.bf16.mxu0 %v4551_v60  ;;  %4284 = vmatprep.subr.bf16.mxu1 %v4551_v60  ;;  %4617 = vrsqrt.f32 %v717_v63  ;;  %v703_v30 = vmul.f32 0.00390625, %v684_v61  ;;  %v890_v58 = vmul.f32 %v858_v57, %v794_v16  ;;  %v892_v62 = vmul.f32 %v860_v48, %v796_v31  ;;  %v4555_v60 = vld [vmem:[#allocation11 + $0xa0] ss:$24 sps:$4 sm:$0xff]   ;;  %v4751_v63 = vld [vmem:[%s5360_s29 + $0x90] sm:$0xff]  ;;  %v4752_v31 = vld [vmem:[%s5360_s29 + $0xa8] sm:$0xff] }
 0x189   : > { %v754_v18 = vmul.f32 %v5580_v45, %v5484_v41  ;;  %v756_v34 = vmul.f32 %v5591_v29, %v5474_v36  ;;  %v951_v19 = vadd.f32 %v919_v1, %v887_v17  ;;  %v793_v38 = vmul.f32 %v5525_v50, %v749_v21  ;;  %v4552_v41 = vld [vmem:[#allocation11 + $0xd0] ss:$24 sps:$4 sm:$0xff]   ;;  %v921_v4 = vld [vmem:[%s5370_s27 + $0x60] sm:$0xff]  ;;  %v928_v61 = vld [vmem:[%s5370_s27 + $0x98] sm:$0xff] }
 0x18a   : > { %1640 = vmatmul.mubr.bf16.gmra.mxu0 %v5595_v10  ;;  %1753 = vmatmul.mubr.bf16.gmra.mxu1 %v5595_v10  ;;  %v795_v39 = vmul.f32 %v5525_v50, %v751_v23  ;;  %v859_v42 = vadd.f32 1.0, %v827_v0  ;;  %v720_v36 = vadd.f32 1e-06, %v704_v32  ;;  %v862_v14 = vadd.f32 1.0, %v830_v33  ;;  %v831_v15 = vld [vmem:[%s5379_s22 + $0x90] sm:$0xff]  ;;  %v4753_v23 = vld [vmem:[%s5360_s29 + $0xb8] sm:$0xff] }
 0x18b   : > { %v5618_v43 = vpop.eup %4611  ;;  %1828 = vmatpush1.bf16.msra.mxu0 %v4549_v24  ;;  %4300 = vmatpush1.bf16.msra.mxu1 %v4549_v24  ;;  %v719_v52 = vadd.f32 1e-06, %v703_v30  ;;  %v798_v5 = vmul.f32 %v5519_v44, %v754_v18  ;;  %v800_v11 = vmul.f32 %v5519_v44, %v756_v34  ;;  %v864_v53 = vadd.f32 1.0, %v832_v7  ;;  %v834_v1 = vld [vmem:[%s5379_s22 + $0xa8] sm:$0xff] }
 0x18c   : > { %1829 = vmatprep.subr.bf16.mxu0 %v4554_v49  ;;  %4285 = vmatprep.subr.bf16.mxu1 %v4554_v49  ;;  %v954_v2 = vadd.f32 %v922_v35, %v890_v58  ;;  %v956_v51 = vadd.f32 %v924_v37, %v892_v62  ;;  %v753_v25 = vmul.f32 %v5580_v45, %v5481_v40  ;;  %4619 = vrsqrt.f32 %v720_v36  ;;  %v4560_v40 = vld [vmem:[#allocation11 + $0x74] ss:$24 sps:$4 sm:$0xff]   ;;  %v4558_v30 = vld [vmem:[#allocation11 + $0x70] ss:$24 sps:$4 sm:$0xff]   ;;  %v4563_v58 = vld [vmem:[#allocation11 + $0x44] ss:$24 sps:$4 sm:$0xff]  }
 0x18d   : > { %v5622_v55 = vpop.eup %4613  ;;  %1649 = vmatprep.mubr.bf16.mxu0 %v5604_v54  ;;  %1762 = vmatprep.mubr.bf16.mxu1 %v5604_v54  ;;  %v5629_v59 = vpack.c.bf16 %v951_v19, %v949_v28  ;;  %v889_v13 = vmul.f32 %v857_v26, %v793_v38  ;;  %v891_v12 = vmul.f32 %v859_v42, %v795_v39  ;;  %4621 = vrsqrt.f32 %v719_v52  ;;  %v836_v28 = vld [vmem:[%s5379_s22 + $0xb8] sm:$0xff]  ;;  %v833_v39 = vld [vmem:[%s5379_s22 + $0xa0] sm:$0xff]  ;;  %v4755_v52 = vld [vmem:[%s5360_s29 + $0xb0] sm:$0xff] }
 0x18e   : > { %v755_v3 = vmul.f32 %v4751_v63, %v5591_v29  ;;  %v894_v45 = vmul.f32 %v862_v14, %v798_v5  ;;  %v896_v16 = vmul.f32 %v864_v53, %v800_v11  ;;  %v861_v57 = vadd.f32 1.0, %v829_v56  ;;  %v926_v29 = vld [vmem:[%s5370_s27 + $0x88] sm:$0xff]  ;;  %v925_v36 = vld [vmem:[%s5370_s27 + $0x80] sm:$0xff]  ;;  %v927_v53 = vld [vmem:[%s5370_s27 + $0x90] sm:$0xff] }
 0x18f   : > { %1830 = vmatpush1.bf16.msra.mxu0 %v4552_v41  ;;  %4301 = vmatpush1.bf16.msra.mxu1 %v4552_v41  ;;  %v5636_v48 = vpack.c.bf16 %v956_v51, %v954_v2  ;;  %v797_v17 = vmul.f32 %v5525_v50, %v753_v25  ;;  %v758_v21 = vmul.f32 %v4752_v31, %v5622_v55  ;;  %v863_v49 = vadd.f32 1.0, %v831_v15  ;;  %v4754_v14 = vld [vmem:[%s5360_s29 + $0xa0] sm:$0xff]  ;;  %v835_v2 = vld [vmem:[%s5379_s22 + $0xb0] sm:$0xff]  ;;  %v4757_v63 = vld [vmem:[%s5360_s29 + $0xc8] sm:$0xff] }
 0x190   : > { %1831 = vmatprep.subr.bf16.mxu0 %v4557_v47  ;;  %4286 = vmatprep.subr.bf16.mxu1 %v4557_v47  ;;  %v760_v24 = vmul.f32 %v4753_v23, %v5618_v43  ;;  %v953_v0 = vadd.f32 %v921_v4, %v889_v13  ;;  %v955_v26 = vadd.f32 %v923_v6, %v891_v12  ;;  %v866_v34 = vadd.f32 1.0, %v834_v1  ;;  %v4561_v11 = vld [vmem:[#allocation11 + $0x40] ss:$24 sps:$4 sm:$0xff]   ;;  %v4566_v51 = vld [vmem:[#allocation11 + $0x14] ss:$24 sps:$4 sm:$0xff]  }
 0x191   : > { %v799_v32 = vmul.f32 %v5525_v50, %v755_v3  ;;  %v958_v62 = vadd.f32 %v926_v29, %v894_v45  ;;  %v960_v18 = vadd.f32 %v928_v61, %v896_v16  ;;  %v893_v19 = vmul.f32 %v861_v57, %v797_v17  ;;  %v840_v4 = vld [vmem:[%s5379_s22 + $0xd8] sm:$0xff]  ;;  %v930_v15 = vld [vmem:[%s5370_s27 + $0xa8] sm:$0xff] }
 0x192   : > { %1650 = vmatmul.mubr.bf16.gmra.mxu0 %v5629_v59  ;;  %1763 = vmatmul.mubr.bf16.gmra.mxu1 %v5629_v59  ;;  %v802_v35 = vmul.f32 %v5519_v44, %v758_v21  ;;  %v804_v37 = vmul.f32 %v5519_v44, %v760_v24  ;;  %v868_v38 = vadd.f32 1.0, %v836_v28  ;;  %v5657_v42 = vpack.c.bf16 %v955_v26, %v953_v0  ;;  %v838_v29 = vld [vmem:[%s5379_s22 + $0xc8] sm:$0xff]  ;;  %v4569_v31 = vld [vmem:[#allocation11 + $0x2e4] ss:$24 sps:$4 sm:$0xff]  }
 0x193   : > { %1832 = vmatpush1.bf16.msra.mxu0 %v4555_v60  ;;  %4302 = vmatpush1.bf16.msra.mxu1 %v4555_v60  ;;  %v5650_v33 = vpop.eup %4615  ;;  %v895_v41 = vmul.f32 %v863_v49, %v799_v32  ;;  %v757_v47 = vmul.f32 %v4754_v14, %v5622_v55  ;;  %v759_v5 = vmul.f32 %v4755_v52, %v5618_v43  ;;  %v865_v56 = vadd.f32 1.0, %v833_v39  ;;  %v4756_v60 = vld [vmem:[%s5360_s29 + $0xd8] sm:$0xff]  ;;  %v4564_v61 = vld [vmem:[#allocation11 + $0x10] ss:$24 sps:$4 sm:$0xff]   ;;  %v4758_v24 = vld [vmem:[%s5360_s29 + $0xc0] sm:$0xff] }
 0x194   : > { %1833 = vmatprep.subr.bf16.mxu0 %v4560_v40  ;;  %4287 = vmatprep.subr.bf16.mxu1 %v4560_v40  ;;  %v5666_v25 = vpack.c.bf16 %v960_v18, %v958_v62  ;;  %v764_v55 = vmul.f32 %v4756_v60, %v5650_v33  ;;  %v957_v43 = vadd.f32 %v925_v36, %v893_v19  ;;  %v932_v40 = vld [vmem:[%s5370_s27 + $0xb8] sm:$0xff]  ;;  %v867_v57 = vadd.f32 1.0, %v835_v2  ;;  %v4572_v39 = vld [vmem:[#allocation11 + $0x2b4] ss:$24 sps:$4 sm:$0xff]  }
 0x195   : > { %v4618_v7 = vpop.eup %4617  ;;  %1659 = vmatprep.mubr.bf16.mxu0 %v5636_v48  ;;  %1772 = vmatprep.mubr.bf16.mxu1 %v5636_v48  ;;  %v898_v13 = vmul.f32 %v866_v34, %v802_v35  ;;  %v900_v12 = vmul.f32 %v868_v38, %v804_v37  ;;  %v959_v6 = vadd.f32 %v927_v53, %v895_v41  ;;  %v872_v23 = vadd.f32 1.0, %v840_v4  ;;  %v4567_v62 = vld [vmem:[#allocation11 + $0x2e0] ss:$24 sps:$4 sm:$0xff]   ;;  %v931_v37 = vld [vmem:[%s5370_s27 + $0xb0] sm:$0xff] }
 0x196   : > { %v762_v3 = vmul.f32 %v4757_v63, %v4618_v7  ;;  %v801_v45 = vmul.f32 %v5525_v50, %v757_v47  ;;  %v803_v16 = vmul.f32 %v5525_v50, %v759_v5  ;;  %v808_v21 = vmul.f32 %v5519_v44, %v764_v55  ;;  %v929_v35 = vld [vmem:[%s5370_s27 + $0xa0] sm:$0xff]  ;;  %v839_v38 = vld [vmem:[%s5379_s22 + $0xd0] sm:$0xff]  ;;  %v4760_v5 = vld [vmem:[%s5360_s29 + $0xe8] sm:$0xff] }
 0x197   : > { %1834 = vmatpush1.bf16.msra.mxu0 %v4558_v30  ;;  %4303 = vmatpush1.bf16.msra.mxu1 %v4558_v30  ;;  %v761_v1 = vmul.f32 %v4758_v24, %v4618_v7  ;;  %v962_v26 = vadd.f32 %v930_v15, %v898_v13  ;;  %v964_v32 = vadd.f32 %v932_v40, %v900_v12  ;;  %v870_v28 = vadd.f32 1.0, %v838_v29  ;;  %v837_v30 = vld [vmem:[%s5379_s22 + $0xc0] sm:$0xff]  ;;  %v4759_v7 = vld [vmem:[%s5360_s29 + $0xd0] sm:$0xff]  ;;  %v4761_v53 = vld [vmem:[%s5360_s29 + $0xf8] sm:$0xff] }
 0x198   : > { %1835 = vmatprep.subr.bf16.mxu0 %v4563_v58  ;;  %4288 = vmatprep.subr.bf16.mxu1 %v4563_v58  ;;  %v806_v49 = vmul.f32 %v5519_v44, %v762_v3  ;;  %v5687_v58 = vpack.c.bf16 %v959_v6, %v957_v43  ;;  %v897_v18 = vmul.f32 %v865_v56, %v801_v45  ;;  %v869_v14 = vadd.f32 1.0, %v837_v30  ;;  %v934_v55 = vld [vmem:[%s5370_s27 + $0xc8] sm:$0xff]  ;;  %v844_v12 = vld [vmem:[%s5379_s22 + $0xf8] sm:$0xff]  ;;  %v841_v29 = vld [vmem:[%s5379_s22 + $0xe0] sm:$0xff] }
 0x199   : > { %v5679_v17 = vpop.eup %4619  ;;  %v899_v34 = vmul.f32 %v867_v57, %v803_v16  ;;  %v763_v19 = vmul.f32 %v4759_v7, %v5650_v33  ;;  %v904_v41 = vmul.f32 %v872_v23, %v808_v21  ;;  %v805_v36 = vmul.f32 %v5525_v50, %v761_v1  ;;  %v936_v33 = vld [vmem:[%s5370_s27 + $0xd8] sm:$0xff]  ;;  %v4570_v63 = vld [vmem:[#allocation11 + $0x2b0] ss:$24 sps:$4 sm:$0xff]   ;;  %v933_v21 = vld [vmem:[%s5370_s27 + $0xc0] sm:$0xff] }
 0x19a   : > { %1660 = vmatmul.mubr.bf16.gmra.mxu0 %v5657_v42  ;;  %1773 = vmatmul.mubr.bf16.gmra.mxu1 %v5657_v42  ;;  %v4622_v0 = vpop.eup %4621  ;;  %v5695_v47 = vpack.c.bf16 %v964_v32, %v962_v26  ;;  %v902_v52 = vmul.f32 %v870_v28, %v806_v49  ;;  %v768_v2 = vmul.f32 %v4761_v53, %v5679_v17  ;;  %v871_v13 = vadd.f32 1.0, %v839_v38  ;;  %v4575_v3 = vld [vmem:[#allocation11 + $0x284] ss:$24 sps:$4 sm:$0xff]   ;;  %v4763_v1 = vld [vmem:[%s5360_s29 + $0xf0] sm:$0xff]  ;;  %v4573_v32 = vld [vmem:[#allocation11 + $0x280] ss:$24 sps:$4 sm:$0xff]  }
 0x19b   : > { %1836 = vmatpush1.bf16.msra.mxu0 %v4561_v11  ;;  %4304 = vmatpush1.bf16.msra.mxu1 %v4561_v11  ;;  %v766_v11 = vmul.f32 %v4760_v5, %v4622_v0  ;;  %v961_v56 = vadd.f32 %v929_v35, %v897_v18  ;;  %v963_v60 = vadd.f32 %v931_v37, %v899_v34  ;;  %v876_v57 = vadd.f32 1.0, %v844_v12  ;;  %v4762_v23 = vld [vmem:[%s5360_s29 + $0xe0] sm:$0xff]  ;;  %v935_v49 = vld [vmem:[%s5370_s27 + $0xd0] sm:$0xff] }
 0x19c   : > { %1837 = vmatprep.subr.bf16.mxu0 %v4566_v51  ;;  %4289 = vmatprep.subr.bf16.mxu1 %v4566_v51  ;;  %v842_v51 = vld [vmem:[%s5379_s22 + $0xe8] sm:$0xff]  ;;  %v807_v43 = vmul.f32 %v5525_v50, %v763_v19  ;;  %v968_v4 = vadd.f32 %v936_v33, %v904_v41  ;;  %v901_v6 = vmul.f32 %v869_v14, %v805_v36  ;;  %v843_v28 = vld [vmem:[%s5379_s22 + $0xf0] sm:$0xff]  ;;  %v873_v30 = vadd.f32 1.0, %v841_v29  ;;  %v940_v19 = vld [vmem:[%s5370_s27 + $0xf8] sm:$0xff] }
 0x19d   : > { %1669 = vmatprep.mubr.bf16.mxu0 %v5666_v25  ;;  %1782 = vmatprep.mubr.bf16.mxu1 %v5666_v25  ;;  %v874_v15 = vadd.f32 1.0, %v842_v51  ;;  %v966_v40 = vadd.f32 %v934_v55, %v902_v52  ;;  %v810_v45 = vmul.f32 %v5519_v44, %v766_v11  ;;  %v812_v16 = vmul.f32 %v5519_v44, %v768_v2  ;;  %v4578_v44 = vld [vmem:[#allocation11 + $0x254] ss:$24 sps:$4 sm:$0xff]   ;;  %v4581_v41 = vld [vmem:[#allocation11 + $0x224] ss:$24 sps:$4 sm:$0xff]  }
 0x19e   : > { %v765_v24 = vmul.f32 %v4762_v23, %v4622_v0  ;;  %v767_v26 = vmul.f32 %v4763_v1, %v5679_v17  ;;  %v965_v18 = vadd.f32 %v933_v21, %v901_v6  ;;  %v938_v0 = vld [vmem:[%s5370_s27 + $0xe8] sm:$0xff]  ;;  %v875_v38 = vadd.f32 1.0, %v843_v28  ;;  %v937_v11 = vld [vmem:[%s5370_s27 + $0xe0] sm:$0xff]  ;;  %v939_v53 = vld [vmem:[%s5370_s27 + $0xf0] sm:$0xff] }
 0x19f   : > { %1838 = vmatpush1.bf16.msra.mxu0 %v4564_v61  ;;  %4305 = vmatpush1.bf16.msra.mxu1 %v4564_v61  ;;  %v5712_v61 = vpack.c.bf16 %v963_v60, %v961_v56  ;;  %v906_v34 = vmul.f32 %v874_v15, %v810_v45  ;;  %v908_v7 = vmul.f32 %v876_v57, %v812_v16  ;;  %v4584_v2 = vld [vmem:[#allocation11 + $0x1f4] ss:$24 sps:$4 sm:$0xff]   ;;  %v4582_v55 = vld [vmem:[#allocation11 + $0x1f0] ss:$24 sps:$4 sm:$0xff]   ;;  %v4585_v12 = vld [vmem:[#allocation11 + $0x1c0] ss:$24 sps:$4 sm:$0xff]  }
 0x1a0   : > { %1839 = vmatprep.subr.bf16.mxu0 %v4569_v31  ;;  %4290 = vmatprep.subr.bf16.mxu1 %v4569_v31  ;;  %v903_v31 = vmul.f32 %v871_v13, %v807_v43  ;;  %v809_v35 = vmul.f32 %v5525_v50, %v765_v24  ;;  %v811_v37 = vmul.f32 %v5525_v50, %v767_v26  ;;  %v4579_v50 = vld [vmem:[#allocation11 + $0x220] ss:$24 sps:$4 sm:$0xff]   ;;  %v4587_v43 = vld [vmem:[#allocation11 + $0x1c4] ss:$24 sps:$4 sm:$0xff]   ;;  %v1101_v15 = vsub.s32 3, %v5504_v9 }
 0x1a1   : > { %v970_v36 = vadd.f32 %v938_v0, %v906_v34  ;;  %v972_v14 = vadd.f32 %v940_v19, %v908_v7 }
 0x1a2   : > { %1670 = vmatmul.mubr.bf16.gmra.mxu0 %v5687_v58  ;;  %1783 = vmatmul.mubr.bf16.gmra.mxu1 %v5687_v58  ;;  %v967_v17 = vadd.f32 %v935_v49, %v903_v31  ;;  %v905_v33 = vmul.f32 %v873_v30, %v809_v35  ;;  %v907_v5 = vmul.f32 %v875_v38, %v811_v37 }
 0x1a3   : > { %1840 = vmatpush2.bf16.msra.mxu0 %v4567_v62  ;;  %4306 = vmatpush2.bf16.msra.mxu1 %v4567_v62  ;;  %v5720_v62 = vpack.c.bf16 %v968_v4, %v966_v40  ;;  %v988_v51 = vpack.c.bf16 %v972_v14, %v970_v36 }
 0x1a4   : > { %1841 = vmatprep.subr.bf16.mxu0 %v4572_v39  ;;  %4291 = vmatprep.subr.bf16.mxu1 %v4572_v39  ;;  %v4576_v39 = vld [vmem:[#allocation11 + $0x250] ss:$24 sps:$4 sm:$0xff]   ;;  %v985_v52 = vpack.c.bf16 %v967_v17, %v965_v18  ;;  %v969_v56 = vadd.f32 %v937_v11, %v905_v33  ;;  %v971_v60 = vadd.f32 %v939_v53, %v907_v5 }
 0x1a5   : > { %1679 = vmatprep.mubr.bf16.mxu0 %v5695_v47  ;;  %1792 = vmatprep.mubr.bf16.mxu1 %v5695_v47 }
 0x1a6   : > { %v987_v13 = vpack.c.bf16 %v971_v60, %v969_v56 }
 0x1a7   : > { %1842 = vmatpush2.bf16.msra.mxu0 %v4570_v63  ;;  %4307 = vmatpush2.bf16.msra.mxu1 %v4570_v63  ;;  %v4590_v63 = vld [vmem:[#allocation11 + $0x194] ss:$24 sps:$4 sm:$0xff]  }
 0x1a8   : > { %1843 = vmatprep.subr.bf16.mxu0 %v4575_v3  ;;  %4292 = vmatprep.subr.bf16.mxu1 %v4575_v3  ;;  %v4588_v3 = vld [vmem:[#allocation11 + $0x190] ss:$24 sps:$4 sm:$0xff]  }
 0x1aa   : > { %1680 = vmatmul.mubr.bf16.gmra.mxu0 %v5712_v61  ;;  %1793 = vmatmul.mubr.bf16.gmra.mxu1 %v5712_v61 }
 0x1ab   : > { %1844 = vmatpush2.bf16.msra.mxu0 %v4573_v32  ;;  %4308 = vmatpush2.bf16.msra.mxu1 %v4573_v32 }
 0x1ac   : > { %1845 = vmatprep.subr.bf16.mxu0 %v4578_v44  ;;  %4293 = vmatprep.subr.bf16.mxu1 %v4578_v44 }
 0x1ad   : > { %1689 = vmatprep.mubr.bf16.mxu0 %v5720_v62  ;;  %1802 = vmatprep.mubr.bf16.mxu1 %v5720_v62 }
 0x1af   : > { %1846 = vmatpush2.bf16.msra.mxu0 %v4576_v39  ;;  %4309 = vmatpush2.bf16.msra.mxu1 %v4576_v39 }
 0x1b0   : > { %1847 = vmatprep.subr.bf16.mxu0 %v4581_v41  ;;  %4294 = vmatprep.subr.bf16.mxu1 %v4581_v41 }
 0x1b2   : > { %1690 = vmatmul.mubr.bf16.gmra.mxu0 %v985_v52  ;;  %1803 = vmatmul.mubr.bf16.gmra.mxu1 %v985_v52 }
 0x1b3   : > { %1848 = vmatpush2.bf16.msra.mxu0 %v4579_v50  ;;  %4310 = vmatpush2.bf16.msra.mxu1 %v4579_v50 }
 0x1b4   : > { %1849 = vmatprep.subr.bf16.mxu0 %v4584_v2  ;;  %4295 = vmatprep.subr.bf16.mxu1 %v4584_v2 }
 0x1b5   : > { %1699 = vmatprep.mubr.bf16.mxu0 %v988_v51  ;;  %1812 = vmatprep.mubr.bf16.mxu1 %v988_v51 }
 0x1b7   : > { %1850 = vmatpush2.bf16.msra.mxu0 %v4582_v55  ;;  %4311 = vmatpush2.bf16.msra.mxu1 %v4582_v55 }
 0x1b8   : > { %1851 = vmatprep.subr.bf16.mxu0 %v4587_v43  ;;  %4296 = vmatprep.subr.bf16.mxu1 %v4587_v43 }
 0x1ba   : > { %1700 = vmatmul.mubr.bf16.gmra.mxu0 %v987_v13  ;;  %1813 = vmatmul.mubr.bf16.gmra.mxu1 %v987_v13 }
 0x1bb   : > { %1852 = vmatpush2.bf16.msra.mxu0 %v4585_v12  ;;  %4312 = vmatpush2.bf16.msra.mxu1 %v4585_v12 }
 0x1bc   : > { %1855 = vmatprep.mubr.bf16.mxu0 %v5564_v8  ;;  %1853 = vmatprep.subr.bf16.mxu0 %v4590_v63  ;;  %v5748_v8 = vld [vmem:[%s7008_s8] sm:$0x3f] }
 0x1bd   : > { %4297 = vmatprep.subr.bf16.mxu1 %v4590_v63  ;;  %1895 = vmatprep.mubr.bf16.mxu1 %v5666_v25  ;;  %v5773_v6 = vrot.slane %v5748_v8, %v777_v22  ;;  %v5787_v22 = vrot.slane %v5748_v8, %v1101_v15 }
 0x1bf   : > { %1854 = vmatpush2.bf16.msra.mxu0 %v4588_v3  ;;  %4313 = vmatpush2.bf16.msra.mxu1 %v4588_v3 }
 0x1c2   : > { %1856 = vmatmul.mubr.bf16.vlgmr.msra.gmra.mxu0 %v5566_v20  ;;  %1896 = vmatmul.mubr.bf16.vlgmr.msra.gmra.mxu1 %v5687_v58  ;;  %v5753_v20 = vrot.slane %v5748_v8, %v773_v27 }
 0x1c3   : > { %1865 = vmatprep.mubr.bf16.mxu0 %v5576_v46  ;;  %1905 = vmatprep.mubr.bf16.mxu1 %v5695_v47  ;;  %v1097_v46 = vsub.s32 2, %v5504_v9 }
 0x1ca   : > { %1866 = vmatmul.mubr.bf16.gmra.mxu0 %v5595_v10  ;;  %1906 = vmatmul.mubr.bf16.gmra.mxu1 %v5712_v61 }
 0x1cb   : > { %1875 = vmatprep.mubr.bf16.mxu0 %v5604_v54  ;;  %1915 = vmatprep.mubr.bf16.mxu1 %v5720_v62 }
 0x1d2   : > { %1876 = vmatmul.mubr.bf16.gmra.mxu0 %v5629_v59  ;;  %1916 = vmatmul.mubr.bf16.gmra.mxu1 %v985_v52 }
 0x1d3   : > { %1885 = vmatprep.mubr.bf16.mxu0 %v5636_v48  ;;  %1925 = vmatprep.mubr.bf16.mxu1 %v988_v51  ;;  %v5760_v48 = vrot.slane %v5748_v8, %v1097_v46 }
 0x1da   : > { %1886 = vmatmul.mubr.bf16.gmra.mxu0 %v5657_v42  ;;  %1926 = vmatmul.mubr.bf16.gmra.mxu1 %v987_v13 }
 0x242   : > { %v1631_v10 = vpop.f32.mrf.mxu0  ;;  %v1744_v54 = vpop.f32.mrf.mxu1 }
 0x243   : > { %v5757_v59 = vadd.f32 %v1631_v10, %v5753_v20  ;;  %v5768_v4 = vadd.f32 %v1744_v54, %v5760_v48 }
 0x244   : > { %v1633_v42 = vpop.f32.mrf.mxu0  ;;  %v1746_v25 = vpop.f32.mrf.mxu1 }
 0x245   : > { %1984 = vrot.lane.b32.xlu0 %v5757_v59, %s4998_s25  ;;  %v5784_v61 = vadd.f32 %v1633_v42, %v5773_v6  ;;  %v5797_v26 = vadd.f32 %v1746_v25, %v5787_v22 }
 0x246   : > { %v1635_v58 = vpop.f32.mrf.mxu0  ;;  %v1748_v47 = vpop.f32.mrf.mxu1 }
 0x247   : > { %v5765_v27 = vadd.f32 %v1635_v58, %v5753_v20  ;;  %v5781_v29 = vadd.f32 %v1748_v47, %v5760_v48 }
 0x248   : > { %v1637_v40 = vpop.f32.mrf.mxu0  ;;  %v1750_v45 = vpop.f32.mrf.mxu1 }
 0x249   : > { %1986 = vrot.lane.b32.xlu1 %v5765_v27, %s4998_s25  ;;  %2193 = vrot.lane.b32.xlu0 %v5768_v4, %s4998_s25  ;;  %7009 = vst [vmem:[#allocation37_spill] sm:$0xff] %v5781_v29  ;;  %v5794_v1 = vadd.f32 %v1637_v40, %v5773_v6  ;;  %v5807_v62 = vadd.f32 %v1750_v45, %v5787_v22 }
 0x24a   : > { %v1641_v16 = vpop.f32.mrf.mxu0  ;;  %v1754_v57 = vpop.f32.mrf.mxu1 }
 0x24b   : > { %7010 = vst [vmem:[#allocation38_spill] sm:$0xff] %v5794_v1  ;;  %7011 = vst [vmem:[#allocation39_spill] sm:$0xff] %v5807_v62  ;;  %v5819_v19 = vadd.f32 %v1641_v16, %v5753_v20  ;;  %v5833_v36 = vadd.f32 %v1754_v57, %v5760_v48 }
 0x24c   : > { %v1643_v31 = vpop.f32.mrf.mxu0  ;;  %v1756_v21 = vpop.f32.mrf.mxu1 }
 0x24d   : > { %2195 = vrot.lane.b32.xlu1 %v5781_v29, %s4998_s25  ;;  %2625 = vrot.lane.b32.xlu0 %v5784_v61, %s4998_s25  ;;  %v5802_v28 = vadd.f32 %v1756_v21, %v5787_v22  ;;  %v5847_v11 = vadd.f32 %v1643_v31, %v5773_v6 }
 0x24e   : > { %v1645_v23 = vpop.f32.mrf.mxu0  ;;  %v1758_v24 = vpop.f32.mrf.mxu1 }
 0x24f   : > { %v5858_v60 = vadd.f32 %v1645_v23, %v5753_v20  ;;  %v5877_v46 = vadd.f32 %v1758_v24, %v5760_v48 }
 0x250   : > { %v1647_v32 = vpop.f32.mrf.mxu0  ;;  %v1760_v49 = vpop.f32.mrf.mxu1 }
 0x251   : > { %2627 = vrot.lane.b32.xlu1 %v5794_v1, %s4998_s25  ;;  %2833 = vrot.lane.b32.xlu0 %v5797_v26, %s4998_s25  ;;  %7015 = vst [vmem:[#allocation43_spill] sm:$0xff] %v5858_v60  ;;  %7018 = vst [vmem:[#allocation46_spill] sm:$0xff] %v5877_v46  ;;  %v5895_v47 = vadd.f32 %v1647_v32, %v5773_v6  ;;  %v5913_v31 = vadd.f32 %v1760_v49, %v5787_v22 }
 0x252   : > { %v1651_v44 = vpop.f32.mrf.mxu0  ;;  %v1764_v30 = vpop.f32.mrf.mxu1 }
 0x253   : > { %v5812_v7 = vadd.f32 %v1651_v44, %v5753_v20  ;;  %v5828_v38 = vadd.f32 %v1764_v30, %v5760_v48  ;;  %7020 = vst [vmem:[#allocation48_spill] sm:$0xff] %v5895_v47  ;;  %7022 = vst [vmem:[#allocation50_spill] sm:$0xff] %v5913_v31 }
 0x254   : > { %v1653_v18 = vpop.f32.mrf.mxu0  ;;  %v1766_v34 = vpop.f32.mrf.mxu1 }
 0x255   : > { %2835 = vrot.lane.b32.xlu1 %v5807_v62, %s4998_s25  ;;  %7012 = vst [vmem:[#allocation40_spill] sm:$0xff] %v5812_v7  ;;  %2837 = vrot.lane.b32.xlu0 %v5802_v28, %s4998_s25  ;;  %7013 = vst [vmem:[#allocation41_spill] sm:$0xff] %v5828_v38  ;;  %v5838_v33 = vadd.f32 %v1653_v18, %v5773_v6  ;;  %v5861_v55 = vadd.f32 %v1766_v34, %v5787_v22 }
 0x256   : > { %v1655_v17 = vpop.f32.mrf.mxu0  ;;  %v5816_v0 = vpop.f32.mrf.mxu1 }
 0x257   : > { %7014 = vst [vmem:[#allocation42_spill] sm:$0xff] %v5838_v33  ;;  %7016 = vst [vmem:[#allocation44_spill] sm:$0xff] %v5861_v55  ;;  %v5928_v44 = vadd.f32 %v1655_v17, %v5753_v20 }
 0x258   : > { %v5821_v35 = vpop.f32.mrf.mxu0  ;;  %v5823_v37 = vpop.f32.mrf.mxu1 }
 0x259   : > { %1988 = vrot.lane.b32.xlu1 %v5819_v19, %s4998_s25  ;;  %1992 = vrot.lane.b32.xlu0 %v5812_v7, %s4998_s25  ;;  %7023 = vst [vmem:[#allocation51_spill] sm:$0xff] %v5928_v44 }
 0x25a   : > { %v1661_v39 = vpop.f32.mrf.mxu0  ;;  %v1774_v41 = vpop.f32.mrf.mxu1 }
 0x25b   : > { %v5868_v12 = vadd.f32 %v1661_v39, %v5753_v20  ;;  %v5886_v42 = vadd.f32 %v1774_v41, %v5760_v48  ;;  %v5948_v41 = vadd.f32 %v5816_v0, %v5760_v48 }
 0x25c   : > { %v1663_v14 = vpop.f32.mrf.mxu0  ;;  %v1776_v52 = vpop.f32.mrf.mxu1 }
 0x25d   : > { %2197 = vrot.lane.b32.xlu1 %v5833_v36, %s4998_s25  ;;  %2201 = vrot.lane.b32.xlu0 %v5828_v38, %s4998_s25  ;;  %7017 = vst [vmem:[#allocation45_spill] sm:$0xff] %v5868_v12  ;;  %7019 = vst [vmem:[#allocation47_spill] sm:$0xff] %v5886_v42  ;;  %v5904_v45 = vadd.f32 %v1663_v14, %v5773_v6  ;;  %v5931_v49 = vadd.f32 %v1776_v52, %v5787_v22 }
 0x25e   : > { %v5842_v5 = vpop.f32.mrf.mxu0  ;;  %v5844_v50 = vpop.f32.mrf.mxu1  ;;  %7026 = vst [vmem:[#allocation54_spill] sm:$0xff] %v5948_v41 }
 0x25f   : > { %7021 = vst [vmem:[#allocation49_spill] sm:$0xff] %v5904_v45  ;;  %7024 = vst [vmem:[#allocation52_spill] sm:$0xff] %v5931_v49 }
 0x260   : > { %v5849_v53 = vpop.f32.mrf.mxu0  ;;  %v5851_v2 = vpop.f32.mrf.mxu1 }
 0x261   : > { %2629 = vrot.lane.b32.xlu1 %v5847_v11, %s4998_s25  ;;  %2633 = vrot.lane.b32.xlu0 %v5838_v33, %s4998_s25 }
 0x262   : > { %v1671_v51 = vpop.f32.mrf.mxu0  ;;  %v1784_v56 = vpop.f32.mrf.mxu1 }
 0x263   : > { %v5940_v34 = vadd.f32 %v1671_v51, %v5753_v20 }
 0x264   : > { %v1673_v43 = vpop.f32.mrf.mxu0  ;;  %v5863_v13 = vpop.f32.mrf.mxu1 }
 0x265   : > { %1990 = vrot.lane.b32.xlu1 %v5858_v60, %s4998_s25  ;;  %2841 = vrot.lane.b32.xlu0 %v5861_v55, %s4998_s25  ;;  %7025 = vst [vmem:[#allocation53_spill] sm:$0xff] %v5940_v34  ;;  %v5987_v55 = vadd.f32 %v5823_v37, %v5787_v22 }
 0x266   : > { %v5872_v63 = vpop.f32.mrf.mxu0  ;;  %v5874_v3 = vpop.f32.mrf.mxu1 }
 0x267   : > { %7030 = vst [vmem:[#allocation58_spill] sm:$0xff] %v5987_v55 }
 0x268   : > { %v5879_v10 = vpop.f32.mrf.mxu0  ;;  %v5881_v54 = vpop.f32.mrf.mxu1 }
 0x269   : > { %2199 = vrot.lane.b32.xlu1 %v5877_v46, %s4998_s25  ;;  %1996 = vrot.lane.b32.xlu0 %v5868_v12, %s4998_s25 }
 0x26a   : > { %v5890_v25 = vpop.f32.mrf.mxu0  ;;  %v5892_v58 = vpop.f32.mrf.mxu1 }
 0x26c   : > { %v5897_v15 = vpop.f32.mrf.mxu0  ;;  %v5899_v40 = vpop.f32.mrf.mxu1 }
 0x26d   : > { %2631 = vrot.lane.b32.xlu1 %v5895_v47, %s4998_s25  ;;  %2205 = vrot.lane.b32.xlu0 %v5886_v42, %s4998_s25 }
 0x26e   : > { %v5908_v16 = vpop.f32.mrf.mxu0  ;;  %v5910_v57 = vpop.f32.mrf.mxu1 }
 0x270   : > { %v5915_v21 = vpop.f32.mrf.mxu0  ;;  %v5917_v23 = vpop.f32.mrf.mxu1 }
 0x271   : > { %2839 = vrot.lane.b32.xlu1 %v5913_v31, %s4998_s25  ;;  %2637 = vrot.lane.b32.xlu0 %v5904_v45, %s4998_s25  ;;  %v1109_v31 = vsub.s32 5, %v5504_v9 }
 0x272   : > { %v5923_v24 = vpop.f32.mrf.mxu0  ;;  %v5925_v32 = vpop.f32.mrf.mxu1 }
 0x274   : > { %v5933_v30 = vpop.f32.mrf.mxu0  ;;  %v5935_v18 = vpop.f32.mrf.mxu1 }
 0x275   : > { %1994 = vrot.lane.b32.xlu1 %v5928_v44, %s4998_s25  ;;  %2845 = vrot.lane.b32.xlu0 %v5931_v49, %s4998_s25  ;;  %v5962_v49 = vadd.f32 %v1784_v56, %v5760_v48  ;;  %v5981_v56 = vadd.f32 %v1673_v43, %v5773_v6 }
 0x276   : > { %v5944_v39 = vpop.f32.mrf.mxu0  ;;  %v1808_v17 = vpop.f32.mrf.mxu1 }
 0x277   : > { %v5951_v14 = vadd.f32 %v1808_v17, %v5760_v48  ;;  %7027 = vst [vmem:[#allocation55_spill] sm:$0xff] %v5962_v49  ;;  %7029 = vst [vmem:[#allocation57_spill] sm:$0xff] %v5981_v56 }
 0x278   : > { %v1697_v52 = vpop.f32.mrf.mxu0  ;;  %v1810_v45 = vpop.f32.mrf.mxu1 }
 0x279   : > { %v5954_v42 = vadd.f32 %v1697_v52, %v5773_v6  ;;  %v5957_v51 = vadd.f32 %v1810_v45, %v5787_v22  ;;  %2203 = vrot.lane.b32.xlu1 %v5948_v41, %s4998_s25  ;;  %2000 = vrot.lane.b32.xlu0 %v5940_v34, %s4998_s25  ;;  %v5972_v52 = vadd.f32 %v5821_v35, %v5773_v6 }
 0x27a   : > { %v5966_v0 = vpop.f32.mrf.mxu0  ;;  %v5968_v17 = vpop.f32.mrf.mxu1 }
 0x27b   : > { %7028 = vst [vmem:[#allocation56_spill] sm:$0xff] %v5972_v52 }
 0x27c   : > { %v5974_v12 = vpop.f32.mrf.mxu0  ;;  %v5976_v45 = vpop.f32.mrf.mxu1 }
 0x27d   : > { %2635 = vrot.lane.b32.xlu1 %v5972_v52, %s4998_s25  ;;  %2209 = vrot.lane.b32.xlu0 %v5962_v49, %s4998_s25  ;;  %v1105_v52 = vsub.s32 4, %v5504_v9 }
 0x27e   : > { %v1705_v34 = vpop.f32.mrf.mxu0  ;;  %v1818_v41 = vpop.f32.mrf.mxu1 }
 0x27f   : > { %v5990_v35 = vadd.f32 %v1705_v34, %v5753_v20  ;;  %v5993_v44 = vadd.f32 %v1818_v41, %v5760_v48  ;;  %v6009_v41 = vadd.f32 %v5842_v5, %v5753_v20  ;;  %v6012_v9 = vrot.slane %v5748_v8, %v1105_v52 }
 0x280   : > { %v1707_v33 = vpop.f32.mrf.mxu0  ;;  %v1820_v43 = vpop.f32.mrf.mxu1  ;;  %v6029_v5 = vadd.f32 %v5890_v25, %v5753_v20 }
 0x281   : > { %7031 = vst [vmem:[#allocation59_spill] sm:$0xff] %v5990_v35  ;;  %7032 = vst [vmem:[#allocation60_spill] sm:$0xff] %v5993_v44  ;;  %v5998_v49 = vadd.f32 %v1707_v33, %v5773_v6  ;;  %v6001_v38 = vadd.f32 %v1820_v43, %v5787_v22  ;;  %2843 = vrot.lane.b32.xlu1 %v5987_v55, %s4998_s25  ;;  %2641 = vrot.lane.b32.xlu0 %v5981_v56, %s4998_s25 }
 0x282   : > { %v1857_v37 = vpop.f32.mrf.mxu0  ;;  %v1897_v34 = vpop.f32.mrf.mxu1  ;;  %7035 = vst [vmem:[#allocation63_spill] sm:$0xff] %v6009_v41  ;;  %v6016_v33 = vadd.f32 %v5863_v13, %v5787_v22  ;;  %v6019_v43 = vrot.slane %v5748_v8, %v1109_v31  ;;  %v6025_v56 = vadd.f32 %v5844_v50, %v5760_v48 }
 0x283   : > { %7033 = vst [vmem:[#allocation61_spill] sm:$0xff] %v5998_v49  ;;  %7034 = vst [vmem:[#allocation62_spill] sm:$0xff] %v6001_v38  ;;  %v1858_v8 = vadd.f32 %v1857_v37, %v6012_v9  ;;  %v1898_v31 = vadd.f32 %v1897_v34, %v6012_v9  ;;  %v6045_v37 = vadd.f32 %v5892_v58, %v5760_v48 }
 0x284   : > { %7036 = vst [vmem:[#allocation64_spill] sm:$0xff] %v6016_v33  ;;  %v1859_v55 = vpop.f32.mrf.mxu0  ;;  %v1899_v7 = vpop.f32.mrf.mxu1 }
 0x285   : > { %1998 = vrot.lane.b32.xlu1 %v6009_v41, %s4998_s25  ;;  %2849 = vrot.lane.b32.xlu0 %v6016_v33, %s4998_s25  ;;  %v1860_v50 = vadd.f32 %v1859_v55, %v6019_v43  ;;  %v1900_v47 = vadd.f32 %v1899_v7, %v6019_v43 }
 0x286   : > { %v1861_v13 = vpop.f32.mrf.mxu0  ;;  %v1901_v52 = vpop.f32.mrf.mxu1 }
 0x287   : > { %v1862_v62 = vadd.f32 %v1861_v13, %v6012_v9  ;;  %v1902_v41 = vadd.f32 %v1901_v52, %v6012_v9 }
 0x288   : > { %v1863_v25 = vpop.f32.mrf.mxu0  ;;  %v1903_v1 = vpop.f32.mrf.mxu1 }
 0x289   : > { %v4080_v46 = vpack.c.bf16 %v1862_v62, %v1858_v8  ;;  %v4100_v29 = vpack.c.bf16 %v1902_v41, %v1898_v31  ;;  %v1864_v33 = vadd.f32 %v1863_v25, %v6019_v43  ;;  %v1904_v60 = vadd.f32 %v1903_v1, %v6019_v43  ;;  %2207 = vrot.lane.b32.xlu1 %v6025_v56, %s4998_s25 }
 0x28a   : > { %2004 = vrot.lane.b32.xlu0 %v6029_v5, %s4998_s25  ;;  %v1867_v55 = vpop.f32.mrf.mxu0  ;;  %v1907_v7 = vpop.f32.mrf.mxu1  ;;  %v6051_v62 = vadd.f32 %v5849_v53, %v5773_v6  ;;  %v6065_v53 = vadd.f32 %v5897_v15, %v5773_v6 }
 0x28b   : > { %4081 = vst [vmem:[%s6054_s12] sm:$0xff] %v4080_v46   ;;  %4254 = vst [vmem:[%s6054_s12 + $0x20] sm:$0xff] %v4100_v29   ;;  %v4200_v1 = vpack.c.bf16 %v1864_v33, %v1860_v50  ;;  %v4220_v58 = vpack.c.bf16 %v1904_v60, %v1900_v47  ;;  %v1908_v13 = vadd.f32 %v1907_v7, %v6012_v9 }
 0x28c   : > { %v1869_v34 = vpop.f32.mrf.mxu0  ;;  %v1909_v41 = vpop.f32.mrf.mxu1  ;;  %v6071_v60 = vadd.f32 %v5851_v2, %v5787_v22  ;;  %v1868_v47 = vadd.f32 %v1867_v55, %v6012_v9 }
 0x28d   : > { %4274 = vst [vmem:[%s6054_s12 + $0x40] sm:$0xff] %v4200_v1   ;;  %4278 = vst [vmem:[%s6054_s12 + $0x60] sm:$0xff] %v4220_v58   ;;  %2639 = vrot.lane.b32.xlu1 %v6051_v62, %s4998_s25  ;;  %v1870_v15 = vadd.f32 %v1869_v34, %v6019_v43  ;;  %v1910_v8 = vadd.f32 %v1909_v41, %v6019_v43  ;;  %v6086_v34 = vadd.f32 %v5872_v63, %v5753_v20 }
 0x28e   : > { %2213 = vrot.lane.b32.xlu0 %v6045_v37, %s4998_s25  ;;  %v1871_v46 = vpop.f32.mrf.mxu0  ;;  %v1911_v29 = vpop.f32.mrf.mxu1  ;;  %v6101_v63 = vadd.f32 %v5874_v3, %v5760_v48 }
 0x28f   : > { %v1872_v33 = vadd.f32 %v1871_v46, %v6012_v9  ;;  %v1912_v52 = vadd.f32 %v1911_v29, %v6012_v9  ;;  %v6092_v46 = vadd.f32 %v5899_v40, %v5787_v22 }
 0x290   : > { %v1873_v31 = vpop.f32.mrf.mxu0  ;;  %v1913_v50 = vpop.f32.mrf.mxu1 }
 0x291   : > { %v4085_v25 = vpack.c.bf16 %v1872_v33, %v1868_v47  ;;  %v4105_v7 = vpack.c.bf16 %v1912_v52, %v1908_v13  ;;  %v1874_v2 = vadd.f32 %v1873_v31, %v6019_v43  ;;  %v1914_v55 = vadd.f32 %v1913_v50, %v6019_v43  ;;  %2847 = vrot.lane.b32.xlu1 %v6071_v60, %s4998_s25 }
 0x292   : > { %2645 = vrot.lane.b32.xlu0 %v6065_v53, %s4998_s25  ;;  %v1877_v1 = vpop.f32.mrf.mxu0  ;;  %v1917_v58 = vpop.f32.mrf.mxu1  ;;  %v6105_v52 = vadd.f32 %v5923_v24, %v5753_v20 }
 0x293   : > { %4251 = vst [vmem:[%s6054_s12 + $0x8] sm:$0xff] %v4085_v25   ;;  %4255 = vst [vmem:[%s6054_s12 + $0x28] sm:$0xff] %v4105_v7   ;;  %v4205_v41 = vpack.c.bf16 %v1874_v2, %v1870_v15  ;;  %v4225_v13 = vpack.c.bf16 %v1914_v55, %v1910_v8  ;;  %v1918_v33 = vadd.f32 %v1917_v58, %v6012_v9 }
 0x294   : > { %v1879_v29 = vpop.f32.mrf.mxu0  ;;  %v1919_v47 = vpop.f32.mrf.mxu1  ;;  %v1878_v8 = vadd.f32 %v1877_v1, %v6012_v9 }
 0x295   : > { %4275 = vst [vmem:[%s6054_s12 + $0x48] sm:$0xff] %v4205_v41   ;;  %4279 = vst [vmem:[%s6054_s12 + $0x68] sm:$0xff] %v4225_v13   ;;  %2002 = vrot.lane.b32.xlu1 %v6086_v34, %s4998_s25  ;;  %v1920_v50 = vadd.f32 %v1919_v47, %v6019_v43  ;;  %v1880_v3 = vadd.f32 %v1879_v29, %v6019_v43  ;;  %v6120_v41 = vadd.f32 %v5925_v32, %v5760_v48 }
 0x296   : > { %2853 = vrot.lane.b32.xlu0 %v6092_v46, %s4998_s25  ;;  %v1881_v40 = vpop.f32.mrf.mxu0  ;;  %v1921_v15 = vpop.f32.mrf.mxu1  ;;  %v6126_v47 = vadd.f32 %v5879_v10, %v5773_v6  ;;  %v6141_v10 = vadd.f32 %v5933_v30, %v5773_v6 }
 0x297   : > { %v1882_v31 = vadd.f32 %v1881_v40, %v6012_v9  ;;  %v1922_v25 = vadd.f32 %v1921_v15, %v6012_v9 }
 0x298   : > { %v1883_v7 = vpop.f32.mrf.mxu0  ;;  %v1923_v24 = vpop.f32.mrf.mxu1 }
 0x299   : > { %v4090_v2 = vpack.c.bf16 %v1882_v31, %v1878_v8  ;;  %v1884_v55 = vadd.f32 %v1883_v7, %v6019_v43  ;;  %2211 = vrot.lane.b32.xlu1 %v6101_v63, %s4998_s25  ;;  %v4110_v1 = vpack.c.bf16 %v1922_v25, %v1918_v33  ;;  %v1924_v58 = vadd.f32 %v1923_v24, %v6019_v43 }
 0x29a   : > { %2008 = vrot.lane.b32.xlu0 %v6105_v52, %s4998_s25  ;;  %v1887_v13 = vpop.f32.mrf.mxu0  ;;  %v1927_v29 = vpop.f32.mrf.mxu1  ;;  %v6137_v31 = vadd.f32 %v5881_v54, %v5787_v22 }
 0x29b   : > { %4252 = vst [vmem:[%s6054_s12 + $0x10] sm:$0xff] %v4090_v2   ;;  %v4210_v40 = vpack.c.bf16 %v1884_v55, %v1880_v3  ;;  %4256 = vst [vmem:[%s6054_s12 + $0x30] sm:$0xff] %v4110_v1   ;;  %v4230_v15 = vpack.c.bf16 %v1924_v58, %v1920_v50  ;;  %v1928_v32 = vadd.f32 %v1927_v29, %v6012_v9 }
 0x29c   : > { %v1889_v33 = vpop.f32.mrf.mxu0  ;;  %v1929_v8 = vpop.f32.mrf.mxu1  ;;  %v1888_v3 = vadd.f32 %v1887_v13, %v6012_v9 }
 0x29d   : > { %4276 = vst [vmem:[%s6054_s12 + $0x50] sm:$0xff] %v4210_v40   ;;  %2643 = vrot.lane.b32.xlu1 %v6126_v47, %s4998_s25  ;;  %4280 = vst [vmem:[%s6054_s12 + $0x70] sm:$0xff] %v4230_v15   ;;  %v1930_v24 = vadd.f32 %v1929_v8, %v6019_v43  ;;  %v1890_v2 = vadd.f32 %v1889_v33, %v6019_v43  ;;  %v6164_v33 = vadd.f32 %v5935_v18, %v5787_v22 }
 0x29e   : > { %2217 = vrot.lane.b32.xlu0 %v6120_v41, %s4998_s25  ;;  %v1891_v50 = vpop.f32.mrf.mxu0  ;;  %v1931_v25 = vpop.f32.mrf.mxu1  ;;  %v6184_v18 = vadd.f32 %v5968_v17, %v5760_v48 }
 0x29f   : > { %v1892_v7 = vadd.f32 %v1891_v50, %v6012_v9  ;;  %v1932_v54 = vadd.f32 %v1931_v25, %v6012_v9  ;;  %v6158_v9 = vadd.f32 %v5908_v16, %v5753_v20  ;;  %v6178_v16 = vadd.f32 %v5910_v57, %v5760_v48  ;;  %v1936_v25 = vld [vmem:[%s5383_s21] sm:$0xff] }
 0x2a0   : > { %v1893_v30 = vpop.f32.mrf.mxu0  ;;  %v1933_v55 = vpop.f32.mrf.mxu1  ;;  %v6196_v57 = vadd.f32 %v5974_v12, %v5773_v6  ;;  %v6202_v48 = vadd.f32 %v5917_v23, %v5787_v22 }
 0x2a1   : > { %v4095_v1 = vpack.c.bf16 %v1892_v7, %v1888_v3  ;;  %v1894_v58 = vadd.f32 %v1893_v30, %v6019_v43  ;;  %2851 = vrot.lane.b32.xlu1 %v6137_v31, %s4998_s25  ;;  %v4115_v13 = vpack.c.bf16 %v1932_v54, %v1928_v32  ;;  %v1934_v29 = vadd.f32 %v1933_v55, %v6019_v43  ;;  %v1952_v32 = vld [vmem:[%s5390_s17] sm:$0xff] }
 0x2a2   : > { %2649 = vrot.lane.b32.xlu0 %v6141_v10, %s4998_s25  ;;  %v6172_v43 = vadd.f32 %v5966_v0, %v5753_v20  ;;  %v6190_v0 = vadd.f32 %v5915_v21, %v5773_v6  ;;  %v6210_v21 = vadd.f32 %v5944_v39, %v5753_v20  ;;  %v6214_v6 = vadd.f32 %v5976_v45, %v5787_v22 }
 0x2a3   : > { %4253 = vst [vmem:[%s6054_s12 + $0x18] sm:$0xff] %v4095_v1   ;;  %v4215_v40 = vpack.c.bf16 %v1894_v58, %v1890_v2  ;;  %4257 = vst [vmem:[%s6054_s12 + $0x38] sm:$0xff] %v4115_v13   ;;  %v4235_v15 = vpack.c.bf16 %v1934_v29, %v1930_v24  ;;  %v1968_v54 = vmul.f32 %v1936_v25, %v5757_v59 }
 0x2a4   : > { %7037 = vst [vmem:[#allocation65_spill] sm:$0xff] %v6214_v6  ;;  %v2177_v58 = vmul.f32 %v1936_v25, %v5768_v4 }
 0x2a5   : > { %4277 = vst [vmem:[%s6054_s12 + $0x58] sm:$0xff] %v4215_v40   ;;  %2006 = vrot.lane.b32.xlu1 %v6158_v9, %s4998_s25  ;;  %4281 = vst [vmem:[%s6054_s12 + $0x78] sm:$0xff] %v4235_v15  }
 0x2a6   : > { %2857 = vrot.lane.b32.xlu0 %v6164_v33, %s4998_s25 }
 0x2a9   : > { %2215 = vrot.lane.b32.xlu1 %v6178_v16, %s4998_s25 }
 0x2aa   : > { %2012 = vrot.lane.b32.xlu0 %v6172_v43, %s4998_s25 }
 0x2ad   : > { %2647 = vrot.lane.b32.xlu1 %v6190_v0, %s4998_s25 }
 0x2ae   : > { %2221 = vrot.lane.b32.xlu0 %v6184_v18, %s4998_s25 }
 0x2b1   : > { %2855 = vrot.lane.b32.xlu1 %v6202_v48, %s4998_s25 }
 0x2b2   : > { %2653 = vrot.lane.b32.xlu0 %v6196_v57, %s4998_s25 }
 0x2b5   : > { %2010 = vrot.lane.b32.xlu1 %v6210_v21, %s4998_s25 }
 0x2b6   : > { %2861 = vrot.lane.b32.xlu0 %v6214_v6, %s4998_s25 }
 0x2b7   : > { %v1985_v12 = vpop.permute.xlu0 %1984 }
 0x2b8   : > { %v2016_v3 = vmul.f32 %v1985_v12, %v1952_v32  ;;  %v2609_v12 = vmul.f32 %v1936_v25, %v5784_v61 }
 0x2b9   : > { %2219 = vrot.lane.b32.xlu1 %v5951_v14, %s4998_s25 }
 0x2ba   : > { %v6245_v55 = vadd.f32 %v2016_v3, %v1968_v54 }
 0x2bb   : > { %v6222_v23 = vpop.permute.xlu1 %1986  ;;  %v2194_v20 = vpop.permute.xlu0 %2193 }
 0x2bc   : > { %v2225_v2 = vmul.f32 %v2194_v20, %v1952_v32  ;;  %7038 = vst [vmem:[#allocation66_spill] sm:$0xff] %v6245_v55  ;;  %v2048_v59 = vmul.f32 %v6245_v55, %v6245_v55  ;;  %v1938_v55 = vld [vmem:[%s5383_s21 + $0x10] sm:$0xff] }
 0x2bd   : > { %2651 = vrot.lane.b32.xlu1 %v5954_v42, %s4998_s25 }
 0x2be   : > { %v6254_v40 = vadd.f32 %v2225_v2, %v2177_v58  ;;  %v1954_v2 = vld [vmem:[%s5390_s17 + $0x10] sm:$0xff] }
 0x2bf   : > { %v6226_v39 = vpop.permute.xlu1 %2195  ;;  %v2626_v22 = vpop.permute.xlu0 %2625 }
 0x2c0   : > { %v2657_v13 = vmul.f32 %v2626_v22, %v1952_v32  ;;  %7039 = vst [vmem:[#allocation67_spill] sm:$0xff] %v6254_v40  ;;  %v2257_v4 = vmul.f32 %v6254_v40, %v6254_v40  ;;  %v2817_v22 = vmul.f32 %v1936_v25, %v5797_v26  ;;  %v2819_v40 = vmul.f32 %v1938_v55, %v5802_v28 }
 0x2c1   : > { %2859 = vrot.lane.b32.xlu1 %v5957_v51, %s4998_s25 }
 0x2c2   : > { %v6261_v54 = vadd.f32 %v2657_v13, %v2609_v12 }
 0x2c3   : > { %v6230_v17 = vpop.permute.xlu1 %2627  ;;  %v2834_v45 = vpop.permute.xlu0 %2833 }
 0x2c4   : > { %v2865_v20 = vmul.f32 %v2834_v45, %v1952_v32  ;;  %7040 = vst [vmem:[#allocation68_spill] sm:$0xff] %v6261_v54  ;;  %v2689_v61 = vmul.f32 %v6261_v54, %v6261_v54  ;;  %v1970_v45 = vmul.f32 %v1938_v55, %v5819_v19  ;;  %v1937_v54 = vld [vmem:[%s5383_s21 + $0x8] sm:$0xff] }
 0x2c5   : > { %2014 = vrot.lane.b32.xlu1 %v5990_v35, %s4998_s25 }
 0x2c7   : > { %v6234_v8 = vpop.permute.xlu1 %2835  ;;  %v2838_v50 = vpop.permute.xlu0 %2837 }
 0x2c9   : > { %2223 = vrot.lane.b32.xlu1 %v5993_v44, %s4998_s25 }
 0x2cb   : > { %v1989_v7 = vpop.permute.xlu1 %1988  ;;  %v6240_v24 = vpop.permute.xlu0 %1992 }
 0x2cc   : > { %v2018_v58 = vmul.f32 %v1989_v7, %v1954_v2  ;;  %v2179_v7 = vmul.f32 %v1938_v55, %v5833_v36 }
 0x2cd   : > { %2655 = vrot.lane.b32.xlu1 %v5998_v49, %s4998_s25 }
 0x2ce   : > { %v6277_v25 = vadd.f32 %v2018_v58, %v1970_v45  ;;  %v2867_v58 = vmul.f32 %v2838_v50, %v1954_v2 }
 0x2cf   : > { %v2198_v30 = vpop.permute.xlu1 %2197  ;;  %v6247_v1 = vpop.permute.xlu0 %2201 }
 0x2d0   : > { %v2227_v13 = vmul.f32 %v2198_v30, %v1954_v2  ;;  %7042 = vst [vmem:[#allocation70_spill] sm:$0xff] %v6277_v25  ;;  %v2050_v19 = vmul.f32 %v6277_v25, %v6277_v25 }
 0x2d1   : > { %2863 = vrot.lane.b32.xlu1 %v6001_v38, %s4998_s25 }
 0x2d3   : > { %v2630_v29 = vpop.permute.xlu1 %2629  ;;  %v6256_v15 = vpop.permute.xlu0 %2633 }
 0x2d5   : > { %2064 = vadd.xlane.f32.xlu0 %v2048_v59  ;;  %v6270_v59 = vadd.f32 %v2865_v20, %v2817_v22  ;;  %v2659_v20 = vmul.f32 %v2630_v29, %v1954_v2  ;;  %v6282_v22 = vadd.f32 %v2227_v13, %v2179_v7  ;;  %v1939_v13 = vld [vmem:[%s5383_s21 + $0x18] sm:$0xff]  ;;  %v6305_v2 = vadd.f32 %v2867_v58, %v2819_v40  ;;  %v7049_v40 = vld [vmem:[#allocation37_spill] sm:$0xff] }
 0x2d6   : > { %v2178_v58 = vmul.f32 %v1937_v54, %v7049_v40  ;;  %v1956_v40 = vld [vmem:[%s5390_s17 + $0x20] sm:$0xff] }
 0x2d7   : > { %v1991_v3 = vpop.permute.xlu1 %1990  ;;  %v6263_v38 = vpop.permute.xlu0 %2841  ;;  %7041 = vst [vmem:[#allocation69_spill] sm:$0xff] %v6270_v59  ;;  %v2897_v26 = vmul.f32 %v6270_v59, %v6270_v59  ;;  %7043 = vst [vmem:[#allocation71_spill] sm:$0xff] %v6282_v22  ;;  %v1953_v59 = vld [vmem:[%s5390_s17 + $0x8] sm:$0xff]  ;;  %v2259_v36 = vmul.f32 %v6282_v22, %v6282_v22 }
 0x2d8   : > { %v2017_v7 = vmul.f32 %v6222_v23, %v1953_v59  ;;  %7045 = vst [vmem:[#allocation73_spill] sm:$0xff] %v6305_v2  ;;  %v2226_v28 = vmul.f32 %v6226_v39, %v1953_v59 }
 0x2d9   : > { %2273 = vadd.xlane.f32.xlu0 %v2257_v4 }
 0x2db   : > { %v2200_v49 = vpop.permute.xlu1 %2199  ;;  %v6273_v32 = vpop.permute.xlu0 %1996 }
 0x2dd   : > { %2705 = vadd.xlane.f32.xlu0 %v2689_v61  ;;  %v2611_v61 = vmul.f32 %v1938_v55, %v5847_v11 }
 0x2df   : > { %v2632_v12 = vpop.permute.xlu1 %2631  ;;  %v6284_v30 = vpop.permute.xlu0 %2205  ;;  %v6292_v29 = vadd.f32 %v2659_v20, %v2611_v61  ;;  %v1969_v20 = vmul.f32 %v1937_v54, %v5765_v27  ;;  %v7046_v61 = vld [vmem:[#allocation43_spill] sm:$0xff] }
 0x2e0   : > { %v1971_v22 = vmul.f32 %v1939_v13, %v7046_v61  ;;  %v7050_v61 = vld [vmem:[#allocation46_spill] sm:$0xff] }
 0x2e1   : > { %2913 = vadd.xlane.f32.xlu0 %v2897_v26  ;;  %7044 = vst [vmem:[#allocation72_spill] sm:$0xff] %v6292_v29  ;;  %v1955_v26 = vld [vmem:[%s5390_s17 + $0x18] sm:$0xff]  ;;  %v2691_v50 = vmul.f32 %v6292_v29, %v6292_v29  ;;  %v6310_v55 = vadd.f32 %v2017_v7, %v1969_v20  ;;  %v6324_v7 = vadd.f32 %v2226_v28, %v2178_v58 }
 0x2e2   : > { %v2019_v11 = vmul.f32 %v1991_v3, %v1955_v26  ;;  %v2228_v23 = vmul.f32 %v2200_v49, %v1955_v26  ;;  %v2899_v3 = vmul.f32 %v6305_v2, %v6305_v2  ;;  %v2658_v49 = vmul.f32 %v6230_v17, %v1953_v59  ;;  %v7052_v2 = vld [vmem:[#allocation38_spill] sm:$0xff] }
 0x2e3   : > { %v2840_v4 = vpop.permute.xlu1 %2839  ;;  %v6299_v25 = vpop.permute.xlu0 %2637  ;;  %7047 = vst [vmem:[#allocation43_spill] sm:$0xff] %v6310_v55  ;;  %v2049_v39 = vmul.f32 %v6310_v55, %v6310_v55  ;;  %7051 = vst [vmem:[#allocation37_spill] sm:$0xff] %v6324_v7  ;;  %v2660_v20 = vmul.f32 %v2632_v12, %v1955_v26  ;;  %v2610_v6 = vmul.f32 %v1937_v54, %v7052_v2  ;;  %v1940_v55 = vld [vmem:[%s5383_s21 + $0x20] sm:$0xff] }
 0x2e4   : > { %v6316_v44 = vadd.f32 %v2019_v11, %v1971_v22  ;;  %v2866_v28 = vmul.f32 %v6234_v8, %v1953_v59  ;;  %v2258_v17 = vmul.f32 %v6324_v7, %v6324_v7  ;;  %v2020_v12 = vmul.f32 %v6240_v24, %v1956_v40  ;;  %v7056_v8 = vld [vmem:[#allocation40_spill] sm:$0xff] }
 0x2e5   : > { %2068 = vadd.xlane.f32.xlu0 %v2050_v19  ;;  %v1972_v59 = vmul.f32 %v1940_v55, %v7056_v8  ;;  %v2868_v7 = vmul.f32 %v2840_v4, %v1955_v26  ;;  %v1941_v4 = vld [vmem:[%s5383_s21 + $0x28] sm:$0xff] }
 0x2e6   : > { %7048 = vst [vmem:[#allocation74_spill] sm:$0xff] %v6316_v44  ;;  %v2051_v22 = vmul.f32 %v6316_v44, %v6316_v44 }
 0x2e7   : > { %v6288_v45 = vpop.permute.xlu1 %1994  ;;  %v6319_v27 = vpop.permute.xlu0 %2845 }
 0x2e9   : > { %2277 = vadd.xlane.f32.xlu0 %v2259_v36 }
 0x2eb   : > { %v6301_v19 = vpop.permute.xlu1 %2203  ;;  %v6338_v58 = vpop.permute.xlu0 %2000 }
 0x2ed   : > { %2709 = vadd.xlane.f32.xlu0 %v2691_v50  ;;  %v2180_v50 = vmul.f32 %v1939_v13, %v7050_v61  ;;  %v7053_v61 = vld [vmem:[#allocation48_spill] sm:$0xff] }
 0x2ef   : > { %v6312_v36 = vpop.permute.xlu1 %2635  ;;  %v6331_v11 = vadd.f32 %v2228_v23, %v2180_v50  ;;  %v6349_v50 = vadd.f32 %v2658_v49, %v2610_v6  ;;  %v6362_v49 = vadd.f32 %v2020_v12, %v1972_v59 }
 0x2f1   : > { %2917 = vadd.xlane.f32.xlu0 %v2899_v3  ;;  %v2612_v3 = vmul.f32 %v1939_v13, %v7053_v61  ;;  %v2260_v2 = vmul.f32 %v6331_v11, %v6331_v11  ;;  %7054 = vst [vmem:[#allocation46_spill] sm:$0xff] %v6349_v50  ;;  %v2229_v61 = vmul.f32 %v6247_v1, %v1956_v40  ;;  %7058 = vst [vmem:[#allocation48_spill] sm:$0xff] %v6362_v49 }
 0x2f2   : > { %v2690_v6 = vmul.f32 %v6349_v50, %v6349_v50  ;;  %v2052_v59 = vmul.f32 %v6362_v49, %v6362_v49  ;;  %v1942_v49 = vld [vmem:[%s5383_s21 + $0x30] sm:$0xff] }
 0x2f3   : > { %v6327_v29 = vpop.permute.xlu1 %2843  ;;  %v6347_v23 = vadd.f32 %v2660_v20, %v2612_v3 }
 0x2f5   : > { %2070 = vadd.xlane.f32.xlu0 %v2051_v22  ;;  %2066 = vadd.xlane.f32.xlu1 %v2049_v39  ;;  %v7055_v39 = vld [vmem:[#allocation39_spill] sm:$0xff]  ;;  %v2692_v20 = vmul.f32 %v6347_v23, %v6347_v23 }
 0x2f6   : > { %v2818_v22 = vmul.f32 %v1937_v54, %v7055_v39  ;;  %v7059_v54 = vld [vmem:[#allocation41_spill] sm:$0xff]  ;;  %v1957_v39 = vld [vmem:[%s5390_s17 + $0x28] sm:$0xff] }
 0x2f7   : > { %v6343_v44 = vpop.permute.xlu1 %1998  ;;  %v2181_v3 = vmul.f32 %v1940_v55, %v7059_v54  ;;  %v2021_v12 = vmul.f32 %v6288_v45, %v1957_v39 }
 0x2f8   : > { %v6354_v24 = vadd.f32 %v2866_v28, %v2818_v22  ;;  %v2661_v22 = vmul.f32 %v6256_v15, %v1956_v40 }
 0x2f9   : > { %2279 = vadd.xlane.f32.xlu0 %v2260_v2  ;;  %2275 = vadd.xlane.f32.xlu1 %v2258_v17  ;;  %v6366_v2 = vpop.permute.xlu0 %2209  ;;  %v7060_v17 = vld [vmem:[#allocation50_spill] sm:$0xff]  ;;  %v6370_v26 = vadd.f32 %v2229_v61, %v2181_v3  ;;  %v2869_v3 = vmul.f32 %v6263_v38, %v1956_v40 }
 0x2fa   : > { %7057 = vst [vmem:[#allocation38_spill] sm:$0xff] %v6354_v24  ;;  %v2820_v1 = vmul.f32 %v1939_v13, %v7060_v17  ;;  %v2898_v28 = vmul.f32 %v6354_v24, %v6354_v24  ;;  %v7062_v13 = vld [vmem:[#allocation42_spill] sm:$0xff]  ;;  %v1958_v24 = vld [vmem:[%s5390_s17 + $0x30] sm:$0xff] }
 0x2fb   : > { %v6356_v35 = vpop.permute.xlu1 %2207  ;;  %7061 = vst [vmem:[#allocation39_spill] sm:$0xff] %v6370_v26  ;;  %v2261_v15 = vmul.f32 %v6370_v26, %v6370_v26  ;;  %v7066_v38 = vld [vmem:[#allocation54_spill] sm:$0xff] }
 0x2fc   : > { %v6380_v54 = vadd.f32 %v2868_v7, %v2820_v1  ;;  %v2230_v7 = vmul.f32 %v6301_v19, %v1957_v39  ;;  %v2182_v40 = vmul.f32 %v1941_v4, %v7066_v38  ;;  %v2662_v19 = vmul.f32 %v6312_v36, %v1957_v39 }
 0x2fd   : > { %2711 = vadd.xlane.f32.xlu0 %v2692_v20  ;;  %2707 = vadd.xlane.f32.xlu1 %v2690_v6  ;;  %v2613_v20 = vmul.f32 %v1940_v55, %v7062_v13  ;;  %v7063_v6 = vld [vmem:[#allocation51_spill] sm:$0xff]  ;;  %v6385_v17 = vpop.permute.xlu0 %2641  ;;  %v2870_v38 = vmul.f32 %v6327_v29, %v1957_v39 }
 0x2fe   : > { %v1973_v61 = vmul.f32 %v1941_v4, %v7063_v6  ;;  %v2900_v13 = vmul.f32 %v6380_v54, %v6380_v54 }
 0x2ff   : > { %v6376_v8 = vpop.permute.xlu1 %2639  ;;  %v6389_v45 = vadd.f32 %v2661_v22, %v2613_v20  ;;  %v2022_v22 = vmul.f32 %v6273_v32, %v1958_v24  ;;  %v6405_v20 = vadd.f32 %v2230_v7, %v2182_v40 }
 0x300   : > { %v6397_v6 = vadd.f32 %v2021_v12, %v1973_v61  ;;  %v7068_v61 = vld [vmem:[#allocation45_spill] sm:$0xff] }
 0x301   : > { %2072 = vadd.xlane.f32.xlu0 %v2052_v59  ;;  %2915 = vadd.xlane.f32.xlu1 %v2898_v28  ;;  %7064 = vst [vmem:[#allocation40_spill] sm:$0xff] %v6389_v45  ;;  %v7065_v28 = vld [vmem:[#allocation44_spill] sm:$0xff]  ;;  %v2693_v12 = vmul.f32 %v6389_v45, %v6389_v45 }
 0x302   : > { %v2821_v59 = vmul.f32 %v1940_v55, %v7065_v28  ;;  %v2053_v55 = vmul.f32 %v6397_v6, %v6397_v6  ;;  %v2231_v28 = vmul.f32 %v6284_v30, %v1958_v24  ;;  %v1959_v45 = vld [vmem:[%s5390_s17 + $0x38] sm:$0xff] }
 0x303   : > { %v6393_v1 = vpop.permute.xlu1 %2847 }
 0x304   : > { %v6402_v26 = vadd.f32 %v2869_v3, %v2821_v59  ;;  %v7069_v3 = vld [vmem:[#allocation56_spill] sm:$0xff] }
 0x305   : > { %2281 = vadd.xlane.f32.xlu0 %v2261_v15  ;;  %2919 = vadd.xlane.f32.xlu1 %v2900_v13  ;;  %v1974_v15 = vmul.f32 %v1942_v49, %v7068_v61  ;;  %v6415_v13 = vpop.permute.xlu0 %2849  ;;  %v2614_v32 = vmul.f32 %v1941_v4, %v7069_v3  ;;  %v2262_v61 = vmul.f32 %v6405_v20, %v6405_v20  ;;  %v7072_v3 = vld [vmem:[#allocation58_spill] sm:$0xff] }
 0x306   : > { %7067 = vst [vmem:[#allocation41_spill] sm:$0xff] %v6402_v26  ;;  %v2901_v36 = vmul.f32 %v6402_v26, %v6402_v26  ;;  %v2663_v26 = vmul.f32 %v6299_v25, %v1958_v24  ;;  %v7076_v25 = vld [vmem:[#allocation63_spill] sm:$0xff] }
 0x307   : > { %v6408_v50 = vpop.permute.xlu1 %2002  ;;  %v6418_v7 = vadd.f32 %v2022_v22, %v1974_v15  ;;  %v6423_v59 = vadd.f32 %v2662_v19, %v2614_v32  ;;  %v1943_v15 = vld [vmem:[%s5383_s21 + $0x38] sm:$0xff]  ;;  %v2023_v32 = vmul.f32 %v6343_v44, %v1959_v45  ;;  %v2232_v44 = vmul.f32 %v6356_v35, %v1959_v45 }
 0x309   : > { %2713 = vadd.xlane.f32.xlu0 %v2693_v12  ;;  %2074 = vadd.xlane.f32.xlu1 %v2053_v55  ;;  %7070 = vst [vmem:[#allocation50_spill] sm:$0xff] %v6418_v7  ;;  %7071 = vst [vmem:[#allocation42_spill] sm:$0xff] %v6423_v59  ;;  %v2822_v12 = vmul.f32 %v1941_v4, %v7072_v3  ;;  %v7073_v55 = vld [vmem:[#allocation47_spill] sm:$0xff]  ;;  %v6435_v30 = vpop.permute.xlu0 %2004  ;;  %v2054_v29 = vmul.f32 %v6418_v7, %v6418_v7 }
 0x30a   : > { %v2183_v22 = vmul.f32 %v1942_v49, %v7073_v55  ;;  %v1975_v55 = vmul.f32 %v1943_v15, %v7076_v25  ;;  %v7078_v25 = vld [vmem:[#allocation52_spill] sm:$0xff] }
 0x30b   : > { %v6426_v40 = vpop.permute.xlu1 %2211  ;;  %v6441_v19 = vadd.f32 %v2870_v38, %v2822_v12 }
 0x30c   : > { %v6439_v39 = vadd.f32 %v2231_v28, %v2183_v22  ;;  %v2871_v28 = vmul.f32 %v6319_v27, %v1958_v24  ;;  %v6453_v38 = vadd.f32 %v2023_v32, %v1975_v55  ;;  %v1944_v27 = vld [vmem:[%s5383_s21 + $0x40] sm:$0xff] }
 0x30d   : > { %2921 = vadd.xlane.f32.xlu0 %v2901_v36  ;;  %2283 = vadd.xlane.f32.xlu1 %v2262_v61  ;;  %v2694_v36 = vmul.f32 %v6423_v59, %v6423_v59  ;;  %v7075_v61 = vld [vmem:[#allocation49_spill] sm:$0xff]  ;;  %v2823_v59 = vmul.f32 %v1942_v49, %v7078_v25 }
 0x30e   : > { %7074 = vst [vmem:[#allocation51_spill] sm:$0xff] %v6439_v39  ;;  %v2615_v3 = vmul.f32 %v1942_v49, %v7075_v61  ;;  %v2263_v22 = vmul.f32 %v6439_v39, %v6439_v39  ;;  %v2902_v61 = vmul.f32 %v6441_v19, %v6441_v19  ;;  %v2664_v49 = vmul.f32 %v6376_v8, %v1959_v45  ;;  %v1945_v39 = vld [vmem:[%s5383_s21 + $0x48] sm:$0xff] }
 0x30f   : > { %v6444_v4 = vpop.permute.xlu1 %2643  ;;  %v6468_v24 = vadd.f32 %v2871_v28, %v2823_v59 }
 0x310   : > { %v6450_v7 = vadd.f32 %v2663_v26, %v2615_v3  ;;  %v2184_v26 = vmul.f32 %v1943_v15, %v6025_v56  ;;  %v2055_v56 = vmul.f32 %v6453_v38, %v6453_v38 }
 0x311   : > { %2076 = vadd.xlane.f32.xlu0 %v2054_v29  ;;  %2715 = vadd.xlane.f32.xlu1 %v2694_v36  ;;  %v1960_v29 = vld [vmem:[%s5390_s17 + $0x40] sm:$0xff]  ;;  %v6464_v36 = vpop.permute.xlu0 %2213 }
 0x312   : > { %7077 = vst [vmem:[#allocation44_spill] sm:$0xff] %v6450_v7  ;;  %v2695_v35 = vmul.f32 %v6450_v7, %v6450_v7  ;;  %v2024_v32 = vmul.f32 %v6338_v58, %v1960_v29  ;;  %v6473_v3 = vadd.f32 %v2232_v44, %v2184_v26  ;;  %v2233_v28 = vmul.f32 %v6366_v2, %v1960_v29 }
 0x313   : > { %v6456_v12 = vpop.permute.xlu1 %2851  ;;  %v2903_v44 = vmul.f32 %v6468_v24, %v6468_v24  ;;  %v2872_v26 = vmul.f32 %v6393_v1, %v1959_v45  ;;  %v2824_v2 = vmul.f32 %v1943_v15, %v6071_v60 }
 0x315   : > { %2285 = vadd.xlane.f32.xlu0 %v2263_v22  ;;  %2923 = vadd.xlane.f32.xlu1 %v2902_v61  ;;  %v2616_v22 = vmul.f32 %v1943_v15, %v6051_v62  ;;  %v7079_v61 = vld [vmem:[#allocation53_spill] sm:$0xff]  ;;  %v6483_v58 = vpop.permute.xlu0 %2645  ;;  %v2264_v62 = vmul.f32 %v6473_v3, %v6473_v3 }
 0x316   : > { %v1976_v59 = vmul.f32 %v1944_v27, %v7079_v61  ;;  %v7080_v61 = vld [vmem:[#allocation55_spill] sm:$0xff] }
 0x317   : > { %v6476_v55 = vpop.permute.xlu1 %2006  ;;  %v6489_v25 = vadd.f32 %v2664_v49, %v2616_v22  ;;  %v2185_v7 = vmul.f32 %v1944_v27, %v7080_v61  ;;  %v2665_v49 = vmul.f32 %v6385_v17, %v1960_v29  ;;  %v6503_v22 = vadd.f32 %v2872_v26, %v2824_v2  ;;  %v7082_v61 = vld [vmem:[#allocation57_spill] sm:$0xff]  ;;  %v1962_v26 = vld [vmem:[%s5390_s17 + $0x50] sm:$0xff] }
 0x318   : > { %v6487_v8 = vadd.f32 %v2024_v32, %v1976_v59  ;;  %v2617_v60 = vmul.f32 %v1944_v27, %v7082_v61 }
 0x319   : > { %2717 = vadd.xlane.f32.xlu0 %v2695_v35  ;;  %2078 = vadd.xlane.f32.xlu1 %v2055_v56  ;;  %v1961_v35 = vld [vmem:[%s5390_s17 + $0x48] sm:$0xff]  ;;  %v6500_v32 = vadd.f32 %v2233_v28, %v2185_v7  ;;  %v2696_v59 = vmul.f32 %v6489_v25, %v6489_v25  ;;  %v2854_v15 = vpop.permute.xlu0 %2853  ;;  %v2873_v28 = vmul.f32 %v6415_v13, %v1960_v29 }
 0x31a   : > { %v2025_v45 = vmul.f32 %v6408_v50, %v1961_v35  ;;  %v2056_v1 = vmul.f32 %v6487_v8, %v6487_v8  ;;  %v6512_v7 = vadd.f32 %v2665_v49, %v2617_v60  ;;  %v2234_v2 = vmul.f32 %v6426_v40, %v1961_v35 }
 0x31b   : > { %v6496_v56 = vpop.permute.xlu1 %2215  ;;  %7081 = vst [vmem:[#allocation54_spill] sm:$0xff] %v6500_v32  ;;  %v2265_v50 = vmul.f32 %v6500_v32, %v6500_v32  ;;  %v2904_v61 = vmul.f32 %v6503_v22, %v6503_v22  ;;  %v2186_v49 = vmul.f32 %v1945_v39, %v6101_v63  ;;  %v2026_v60 = vmul.f32 %v6435_v30, %v1962_v26 }
 0x31c   : > { %v2697_v13 = vmul.f32 %v6512_v7, %v6512_v7  ;;  %v2666_v40 = vmul.f32 %v6444_v4, %v1961_v35  ;;  %v2618_v30 = vmul.f32 %v1945_v39, %v6126_v47  ;;  %v1963_v47 = vld [vmem:[%s5390_s17 + $0x58] sm:$0xff] }
 0x31d   : > { %2925 = vadd.xlane.f32.xlu0 %v2903_v44  ;;  %2287 = vadd.xlane.f32.xlu1 %v2264_v62  ;;  %v1977_v44 = vmul.f32 %v1945_v39, %v6086_v34  ;;  %v7083_v34 = vld [vmem:[#allocation64_spill] sm:$0xff]  ;;  %v2009_v32 = vpop.permute.xlu0 %2008 }
 0x31f   : > { %v6514_v17 = vpop.permute.xlu1 %2647  ;;  %v6520_v62 = vadd.f32 %v2025_v45, %v1977_v44  ;;  %v6533_v45 = vadd.f32 %v2234_v2, %v2186_v49  ;;  %v6543_v2 = vadd.f32 %v2666_v40, %v2618_v30  ;;  %v2826_v49 = vmul.f32 %v1945_v39, %v6137_v31 }
 0x321   : > { %2080 = vadd.xlane.f32.xlu0 %v2056_v1  ;;  %2719 = vadd.xlane.f32.xlu1 %v2696_v59  ;;  %v2825_v1 = vmul.f32 %v1944_v27, %v7083_v34  ;;  %v1946_v59 = vld [vmem:[%s5383_s21 + $0x50] sm:$0xff]  ;;  %v2057_v27 = vmul.f32 %v6520_v62, %v6520_v62 }
 0x322   : > { %v1978_v63 = vmul.f32 %v1946_v59, %v6029_v5  ;;  %v2266_v5 = vmul.f32 %v6533_v45, %v6533_v45  ;;  %v2187_v34 = vmul.f32 %v1946_v59, %v6045_v37  ;;  %v2027_v37 = vmul.f32 %v6476_v55, %v1963_v47 }
 0x323   : > { %v6531_v29 = vadd.f32 %v2873_v28, %v2825_v1  ;;  %v2856_v44 = vpop.permute.xlu1 %2855  ;;  %v2235_v28 = vmul.f32 %v6464_v36, %v1962_v26  ;;  %v2218_v1 = vpop.permute.xlu0 %2217  ;;  %v2619_v31 = vmul.f32 %v1946_v59, %v6065_v53  ;;  %v2236_v55 = vmul.f32 %v6496_v56, %v1963_v47 }
 0x324   : > { %v2827_v53 = vmul.f32 %v1946_v59, %v6092_v46 }
 0x325   : > { %2289 = vadd.xlane.f32.xlu0 %v2265_v50  ;;  %2927 = vadd.xlane.f32.xlu1 %v2904_v61  ;;  %v6540_v50 = vadd.f32 %v2026_v60, %v1978_v63  ;;  %v2874_v61 = vmul.f32 %v6456_v12, %v1961_v35  ;;  %v2905_v4 = vmul.f32 %v6531_v29, %v6531_v29  ;;  %v1947_v60 = vld [vmem:[%s5383_s21 + $0x58] sm:$0xff] }
 0x326   : > { %v6554_v36 = vadd.f32 %v2235_v28, %v2187_v34  ;;  %v2667_v35 = vmul.f32 %v6483_v58, %v1962_v26  ;;  %v1979_v39 = vmul.f32 %v1947_v60, %v6158_v9  ;;  %v2875_v63 = vmul.f32 %v2854_v15, %v1962_v26  ;;  %v1948_v15 = vld [vmem:[%s5383_s21 + $0x60] sm:$0xff] }
 0x327   : > { %v2058_v12 = vmul.f32 %v6540_v50, %v6540_v50  ;;  %v6559_v40 = vadd.f32 %v2874_v61, %v2826_v49  ;;  %v2650_v30 = vpop.permute.xlu0 %2649  ;;  %v1964_v61 = vld [vmem:[%s5390_s17 + $0x60] sm:$0xff]  ;;  %v2188_v34 = vmul.f32 %v1947_v60, %v6178_v16  ;;  %v1980_v59 = vmul.f32 %v1948_v15, %v6105_v52  ;;  %v1965_v52 = vld [vmem:[%s5390_s17 + $0x68] sm:$0xff] }
 0x328   : > { %v2267_v28 = vmul.f32 %v6554_v36, %v6554_v36  ;;  %v6568_v58 = vadd.f32 %v2667_v35, %v2619_v31  ;;  %v6579_v26 = vadd.f32 %v2875_v63, %v2827_v53  ;;  %v2028_v49 = vmul.f32 %v2009_v32, %v1964_v61 }
 0x329   : > { %2721 = vadd.xlane.f32.xlu0 %v2697_v13  ;;  %2082 = vadd.xlane.f32.xlu1 %v2057_v27  ;;  %v2011_v13 = vpop.permute.xlu1 %2010  ;;  %v2698_v27 = vmul.f32 %v6543_v2, %v6543_v2  ;;  %v2668_v35 = vmul.f32 %v6514_v17, %v1963_v47  ;;  %v2237_v31 = vmul.f32 %v2218_v1, %v1964_v61 }
 0x32a   : > { %v2699_v56 = vmul.f32 %v6568_v58, %v6568_v58  ;;  %v6590_v32 = vadd.f32 %v2028_v49, %v1980_v59  ;;  %v2907_v17 = vmul.f32 %v6579_v26, %v6579_v26  ;;  %v2876_v63 = vmul.f32 %v2856_v44, %v1963_v47 }
 0x32b   : > { %v2858_v16 = vpop.permute.xlu0 %2857  ;;  %v2669_v53 = vmul.f32 %v2650_v30, %v1964_v61  ;;  %v2029_v47 = vmul.f32 %v2011_v13, %v1965_v52 }
 0x32c   : > { %v2060_v49 = vmul.f32 %v6590_v32, %v6590_v32 }
 0x32d   : > { %2929 = vadd.xlane.f32.xlu0 %v2905_v4  ;;  %2291 = vadd.xlane.f32.xlu1 %v2266_v5  ;;  %v6571_v4 = vadd.f32 %v2027_v37, %v1979_v39  ;;  %v2906_v5 = vmul.f32 %v6559_v40, %v6559_v40  ;;  %v2220_v9 = vpop.permute.xlu1 %2219  ;;  %v2620_v37 = vmul.f32 %v1947_v60, %v6190_v0 }
 0x32e   : > { %v2189_v0 = vmul.f32 %v1948_v15, %v6120_v41  ;;  %v2238_v59 = vmul.f32 %v2220_v9, %v1965_v52 }
 0x32f   : > { %v2059_v46 = vmul.f32 %v6571_v4, %v6571_v4  ;;  %v6594_v39 = vadd.f32 %v2668_v35, %v2620_v37 }
 0x330   : > { %v6604_v1 = vadd.f32 %v2237_v31, %v2189_v0 }
 0x331   : > { %2084 = vadd.xlane.f32.xlu0 %v2058_v12  ;;  %2723 = vadd.xlane.f32.xlu1 %v2698_v27  ;;  %v6581_v12 = vadd.f32 %v2236_v55, %v2188_v34  ;;  %v2652_v27 = vpop.permute.xlu1 %2651  ;;  %v2828_v55 = vmul.f32 %v1947_v60, %v6202_v48  ;;  %v2013_v34 = vpop.permute.xlu0 %2012  ;;  %v2700_v35 = vmul.f32 %v6594_v39, %v6594_v39 }
 0x332   : > { %v2621_v48 = vmul.f32 %v1948_v15, %v6141_v10  ;;  %v2269_v13 = vmul.f32 %v6604_v1, %v6604_v1  ;;  %v2829_v10 = vmul.f32 %v1948_v15, %v6164_v33  ;;  %v2670_v0 = vmul.f32 %v2652_v27, %v1965_v52 }
 0x333   : > { %v6606_v44 = vadd.f32 %v2876_v63, %v2828_v55  ;;  %v1950_v63 = vld [vmem:[%s5383_s21 + $0x70] sm:$0xff] }
 0x334   : > { %v6612_v30 = vadd.f32 %v2669_v53, %v2621_v48 }
 0x335   : > { %2293 = vadd.xlane.f32.xlu0 %v2267_v28  ;;  %2931 = vadd.xlane.f32.xlu1 %v2906_v5  ;;  %v2268_v28 = vmul.f32 %v6581_v12, %v6581_v12  ;;  %v1949_v5 = vld [vmem:[%s5383_s21 + $0x68] sm:$0xff]  ;;  %v2860_v41 = vpop.permute.xlu1 %2859  ;;  %v2908_v37 = vmul.f32 %v6606_v44, %v6606_v44  ;;  %v2222_v31 = vpop.permute.xlu0 %2221 }
 0x336   : > { %v1981_v60 = vmul.f32 %v1949_v5, %v6210_v21  ;;  %v2190_v21 = vmul.f32 %v1949_v5, %v5951_v14  ;;  %v2701_v9 = vmul.f32 %v6612_v30, %v6612_v30  ;;  %v2622_v15 = vmul.f32 %v1949_v5, %v5954_v42 }
 0x337   : > { %v1982_v14 = vmul.f32 %v1950_v63, %v6172_v43  ;;  %v2878_v27 = vmul.f32 %v2860_v41, %v1965_v52  ;;  %v2191_v42 = vmul.f32 %v1950_v63, %v6184_v18  ;;  %v2623_v18 = vmul.f32 %v1950_v63, %v6196_v57 }
 0x338   : > { %v6628_v55 = vadd.f32 %v2238_v59, %v2190_v21  ;;  %v1951_v59 = vld [vmem:[%s5383_s21 + $0x78] sm:$0xff] }
 0x339   : > { %2725 = vadd.xlane.f32.xlu0 %v2699_v56  ;;  %2086 = vadd.xlane.f32.xlu1 %v2059_v46  ;;  %v2877_v56 = vmul.f32 %v2858_v16, %v1964_v61  ;;  %v6614_v46 = vadd.f32 %v2029_v47, %v1981_v60  ;;  %v2015_v61 = vpop.permute.xlu1 %2014  ;;  %v1967_v60 = vld [vmem:[%s5390_s17 + $0x78] sm:$0xff] }
 0x33a   : > { %v2270_v48 = vmul.f32 %v6628_v55, %v6628_v55 }
 0x33b   : > { %v2061_v33 = vmul.f32 %v6614_v46, %v6614_v46 }
 0x33d   : > { %2933 = vadd.xlane.f32.xlu0 %v2907_v17  ;;  %2295 = vadd.xlane.f32.xlu1 %v2268_v28  ;;  %v1966_v17 = vld [vmem:[%s5390_s17 + $0x70] sm:$0xff]  ;;  %v6624_v28 = vadd.f32 %v2877_v56, %v2829_v10  ;;  %v2224_v43 = vpop.permute.xlu1 %2223  ;;  %v2830_v56 = vmul.f32 %v1949_v5, %v5957_v51 }
 0x33e   : > { %v2030_v16 = vmul.f32 %v2013_v34, %v1966_v17  ;;  %v2239_v53 = vmul.f32 %v2222_v31, %v1966_v17  ;;  %v2031_v31 = vmul.f32 %v2015_v61, %v1967_v60 }
 0x33f   : > { %v2909_v47 = vmul.f32 %v6624_v28, %v6624_v28  ;;  %v6648_v10 = vadd.f32 %v2878_v27, %v2830_v56 }
 0x340   : > { %v6636_v34 = vadd.f32 %v2030_v16, %v1982_v14 }
 0x341   : > { %2088 = vadd.xlane.f32.xlu0 %v2060_v49  ;;  %2727 = vadd.xlane.f32.xlu1 %v2700_v35  ;;  %v2654_v49 = vpop.permute.xlu0 %2653  ;;  %v6638_v35 = vadd.f32 %v2670_v0, %v2622_v15  ;;  %v2656_v16 = vpop.permute.xlu1 %2655  ;;  %v2240_v15 = vmul.f32 %v2224_v43, %v1967_v60  ;;  %v2910_v14 = vmul.f32 %v6648_v10, %v6648_v10 }
 0x342   : > { %7084 = vst [vmem:[#allocation45_spill] sm:$0xff] %v6636_v34  ;;  %v2062_v52 = vmul.f32 %v6636_v34, %v6636_v34 }
 0x343   : > { %v2702_v41 = vmul.f32 %v6638_v35, %v6638_v35 }
 0x345   : > { %2297 = vadd.xlane.f32.xlu0 %v2269_v13  ;;  %2935 = vadd.xlane.f32.xlu1 %v2908_v37  ;;  %v6646_v13 = vadd.f32 %v2239_v53, %v2191_v42  ;;  %v2671_v37 = vmul.f32 %v2654_v49, %v1966_v17  ;;  %v2862_v21 = vpop.permute.xlu0 %2861  ;;  %v7089_v53 = vld [vmem:[#allocation65_spill] sm:$0xff]  ;;  %v7090_v49 = vld [vmem:[#allocation60_spill] sm:$0xff]  ;;  %v2864_v56 = vpop.permute.xlu1 %2863 }
 0x346   : > { %v2879_v61 = vmul.f32 %v2862_v21, %v1966_v17  ;;  %v2831_v57 = vmul.f32 %v1950_v63, %v7089_v53  ;;  %v2672_v17 = vmul.f32 %v2656_v16, %v1967_v60  ;;  %v7095_v21 = vld [vmem:[#allocation62_spill] sm:$0xff] }
 0x347   : > { %7085 = vst [vmem:[#allocation56_spill] sm:$0xff] %v6646_v13  ;;  %v6656_v5 = vadd.f32 %v2671_v37, %v2623_v18  ;;  %v2271_v0 = vmul.f32 %v6646_v13, %v6646_v13  ;;  %v7093_v37 = vld [vmem:[#allocation61_spill] sm:$0xff] }
 0x349   : > { %2729 = vadd.xlane.f32.xlu0 %v2701_v9  ;;  %2090 = vadd.xlane.f32.xlu1 %v2061_v33  ;;  %v7086_v9 = vld [vmem:[#allocation59_spill] sm:$0xff]  ;;  %7087 = vst [vmem:[#allocation58_spill] sm:$0xff] %v6656_v5  ;;  %v2703_v27 = vmul.f32 %v6656_v5, %v6656_v5 }
 0x34a   : > { %v1983_v51 = vmul.f32 %v1951_v59, %v7086_v9  ;;  %v2832_v9 = vmul.f32 %v1951_v59, %v7095_v21 }
 0x34c   : > { %v6660_v33 = vadd.f32 %v2031_v31, %v1983_v51  ;;  %v2624_v31 = vmul.f32 %v1951_v59, %v7093_v37 }
 0x34d   : > { %2937 = vadd.xlane.f32.xlu0 %v2909_v47  ;;  %2299 = vadd.xlane.f32.xlu1 %v2270_v48  ;;  %v2192_v47 = vmul.f32 %v1951_v59, %v7090_v49  ;;  %v6668_v48 = vadd.f32 %v2879_v61, %v2831_v57 }
 0x34e   : > { %7088 = vst [vmem:[#allocation47_spill] sm:$0xff] %v6660_v33  ;;  %v2063_v43 = vmul.f32 %v6660_v33, %v6660_v33  ;;  %v6675_v63 = vadd.f32 %v2672_v17, %v2624_v31 }
 0x34f   : > { %7091 = vst [vmem:[#allocation49_spill] sm:$0xff] %v6668_v48  ;;  %v6670_v42 = vadd.f32 %v2240_v15, %v2192_v47 }
 0x350   : > { %7094 = vst [vmem:[#allocation52_spill] sm:$0xff] %v6675_v63 }
 0x351   : > { %2092 = vadd.xlane.f32.xlu0 %v2062_v52  ;;  %2731 = vadd.xlane.f32.xlu1 %v2702_v41  ;;  %7092 = vst [vmem:[#allocation63_spill] sm:$0xff] %v6670_v42  ;;  %v2880_v52 = vmul.f32 %v2864_v56, %v1967_v60  ;;  %v2911_v41 = vmul.f32 %v6668_v48, %v6668_v48 }
 0x352   : > { %v2272_v18 = vmul.f32 %v6670_v42, %v6670_v42 }
 0x353   : > { %v6682_v16 = vadd.f32 %v2880_v52, %v2832_v9 }
 0x355   : > { %2301 = vadd.xlane.f32.xlu0 %v2271_v0  ;;  %2939 = vadd.xlane.f32.xlu1 %v2910_v14  ;;  %7096 = vst [vmem:[#allocation53_spill] sm:$0xff] %v6682_v16  ;;  %v2704_v0 = vmul.f32 %v6675_v63, %v6675_v63  ;;  %v2912_v60 = vmul.f32 %v6682_v16, %v6682_v16 }
 0x359   : > { %2733 = vadd.xlane.f32.xlu0 %v2703_v27  ;;  %2094 = vadd.xlane.f32.xlu1 %v2063_v43 }
 0x35d   : > { %2941 = vadd.xlane.f32.xlu0 %v2911_v41  ;;  %2303 = vadd.xlane.f32.xlu1 %v2272_v18 }
 0x35e   : > { %v2065_v51 = vpop.xlane.xlu0 %2064 }
 0x35f   : > { %v2097_v47 = vmul.f32 0.0078125, %v2065_v51 }
 0x361   : > { %2735 = vadd.xlane.f32.xlu1 %v2704_v0  ;;  %v2113_v37 = vadd.f32 1e-06, %v2097_v47 }
 0x362   : > { %v2274_v61 = vpop.xlane.xlu0 %2273 }
 0x363   : > { %v2305_v27 = vmul.f32 0.0078125, %v2274_v61 }
 0x365   : > { %2943 = vadd.xlane.f32.xlu1 %v2912_v60  ;;  %v2321_v31 = vadd.f32 1e-06, %v2305_v27 }
 0x366   : > { %v2706_v15 = vpop.xlane.xlu0 %2705 }
 0x367   : > { %v2737_v17 = vmul.f32 0.0078125, %v2706_v15 }
 0x369   : > { %v2753_v41 = vadd.f32 1e-06, %v2737_v17 }
 0x36a   : > { %v2914_v14 = vpop.xlane.xlu0 %2913 }
 0x36b   : > { %v2945_v27 = vmul.f32 0.0078125, %v2914_v14 }
 0x36e   : > { %v2069_v53 = vpop.xlane.xlu0 %2068 }
 0x36f   : > { %v2099_v49 = vmul.f32 0.0078125, %v2069_v53 }
 0x371   : > { %v2115_v43 = vadd.f32 1e-06, %v2099_v49 }
 0x372   : > { %v2278_v57 = vpop.xlane.xlu0 %2277 }
 0x373   : > { %v2307_v52 = vmul.f32 0.0078125, %v2278_v57  ;;  %4623 = vrsqrt.f32 %v2115_v43 }
 0x374   : > { %4625 = vrsqrt.f32 %v2113_v37 }
 0x375   : > { %4627 = vrsqrt.f32 %v2321_v31  ;;  %v2323_v16 = vadd.f32 1e-06, %v2307_v52 }
 0x376   : > { %v2710_v59 = vpop.xlane.xlu0 %2709  ;;  %4629 = vrsqrt.f32 %v2753_v41 }
 0x377   : > { %v2739_v18 = vmul.f32 0.0078125, %v2710_v59 }
 0x379   : > { %v2755_v51 = vadd.f32 1e-06, %v2739_v18  ;;  %v2961_v18 = vadd.f32 1e-06, %v2945_v27 }
 0x37a   : > { %v2918_v56 = vpop.xlane.xlu0 %2917 }
 0x37e   : > { %v2071_v21 = vpop.xlane.xlu0 %2070  ;;  %v2067_v9 = vpop.xlane.xlu1 %2066 }
 0x37f   : > { %v2100_v0 = vmul.f32 0.0078125, %v2071_v21  ;;  %v2098_v60 = vmul.f32 0.0078125, %v2067_v9  ;;  %v2947_v21 = vmul.f32 0.0078125, %v2918_v56 }
 0x381   : > { %v2116_v53 = vadd.f32 1e-06, %v2100_v0  ;;  %v2114_v48 = vadd.f32 1e-06, %v2098_v60  ;;  %v4624_v60 = vpop.eup %4623 }
 0x382   : > { %v2280_v61 = vpop.xlane.xlu0 %2279  ;;  %v2276_v15 = vpop.xlane.xlu1 %2275 }
 0x383   : > { %4631 = vrsqrt.f32 %v2116_v53  ;;  %v2308_v49 = vmul.f32 0.0078125, %v2280_v61  ;;  %v2306_v47 = vmul.f32 0.0078125, %v2276_v15  ;;  %v4626_v53 = vpop.eup %4625  ;;  %v7097_v61 = vld [vmem:[#allocation70_spill] sm:$0xff] }
 0x384   : > { %4633 = vrsqrt.f32 %v2114_v48  ;;  %v2147_v15 = vmul.f32 %v4624_v60, %v7097_v61 }
 0x385   : > { %4635 = vrsqrt.f32 %v2323_v16  ;;  %v2324_v57 = vadd.f32 1e-06, %v2308_v49  ;;  %v2322_v59 = vadd.f32 1e-06, %v2306_v47  ;;  %v2963_v49 = vadd.f32 1e-06, %v2947_v21 }
 0x386   : > { %4637 = vrsqrt.f32 %v2755_v51  ;;  %v2712_v17 = vpop.xlane.xlu0 %2711  ;;  %v2708_v43 = vpop.xlane.xlu1 %2707 }
 0x387   : > { %4639 = vrsqrt.f32 %v2324_v57  ;;  %v2740_v37 = vmul.f32 0.0078125, %v2712_v17  ;;  %v2738_v31 = vmul.f32 0.0078125, %v2708_v43  ;;  %v4628_v51 = vpop.eup %4627  ;;  %v7098_v43 = vld [vmem:[#allocation66_spill] sm:$0xff] }
 0x388   : > { %4641 = vrsqrt.f32 %v2322_v59  ;;  %v4630_v59 = vpop.eup %4629 }
 0x389   : > { %v2756_v52 = vadd.f32 1e-06, %v2740_v37  ;;  %v2754_v41 = vadd.f32 1e-06, %v2738_v31  ;;  %v2145_v37 = vmul.f32 %v4626_v53, %v7098_v43 }
 0x38a   : > { %v2073_v9 = vpop.xlane.xlu0 %2072  ;;  %v2916_v0 = vpop.xlane.xlu1 %2915 }
 0x38b   : > { %4643 = vrsqrt.f32 %v2756_v52  ;;  %v2101_v48 = vmul.f32 0.0078125, %v2073_v9  ;;  %v2946_v16 = vmul.f32 0.0078125, %v2916_v0  ;;  %v7099_v52 = vld [vmem:[#allocation74_spill] sm:$0xff]  ;;  %v2161_v53 = vmul.f32 0.088388346, %v2145_v37 }
 0x38c   : > { %4645 = vrsqrt.f32 %v2754_v41 }
 0x38d   : > { %v2962_v14 = vadd.f32 1e-06, %v2946_v16  ;;  %4647 = vrsqrt.f32 %v2961_v18  ;;  %v2117_v17 = vadd.f32 1e-06, %v2101_v48  ;;  %v2163_v16 = vmul.f32 0.088388346, %v2147_v15 }
 0x38e   : > { %v2282_v47 = vpop.xlane.xlu0 %2281  ;;  %v2920_v57 = vpop.xlane.xlu1 %2919  ;;  %v7100_v18 = vld [vmem:[#allocation43_spill] sm:$0xff] }
 0x38f   : > { %v2948_v27 = vmul.f32 0.0078125, %v2920_v57  ;;  %4649 = vrsqrt.f32 %v2962_v14  ;;  %v2309_v60 = vmul.f32 0.0078125, %v2282_v47  ;;  %v7101_v14 = vld [vmem:[#allocation67_spill] sm:$0xff] }
 0x390   : > { %v4632_v56 = vpop.eup %4631  ;;  %4651 = vrsqrt.f32 %v2963_v49  ;;  %v2353_v43 = vmul.f32 %v4628_v51, %v7101_v14  ;;  %v7102_v15 = vld [vmem:[#allocation71_spill] sm:$0xff] }
 0x391   : > { %v4634_v31 = vpop.eup %4633  ;;  %v2148_v9 = vmul.f32 %v4632_v56, %v7099_v52  ;;  %v2964_v41 = vadd.f32 1e-06, %v2948_v27  ;;  %4653 = vrsqrt.f32 %v2117_v17  ;;  %v7104_v17 = vld [vmem:[#allocation37_spill] sm:$0xff] }
 0x392   : > { %v4636_v0 = vpop.eup %4635  ;;  %v2146_v63 = vmul.f32 %v4634_v31, %v7100_v18  ;;  %v2714_v21 = vpop.xlane.xlu0 %2713  ;;  %v7103_v18 = vld [vmem:[#allocation72_spill] sm:$0xff] }
 0x393   : > { %v2075_v61 = vpop.xlane.xlu1 %2074  ;;  %v4638_v5 = vpop.eup %4637  ;;  %v2164_v42 = vmul.f32 0.088388346, %v2148_v9  ;;  %v2741_v48 = vmul.f32 0.0078125, %v2714_v21  ;;  %4655 = vrsqrt.f32 %v2964_v41  ;;  %v2355_v49 = vmul.f32 %v4636_v0, %v7102_v15 }
 0x394   : > { %v2102_v57 = vmul.f32 0.0078125, %v2075_v61  ;;  %v4640_v13 = vpop.eup %4639  ;;  %v2162_v56 = vmul.f32 0.088388346, %v2146_v63  ;;  %v2787_v33 = vmul.f32 %v4638_v5, %v7103_v18  ;;  %v2325_v61 = vadd.f32 1e-06, %v2309_v60  ;;  %v7107_v18 = vld [vmem:[#allocation69_spill] sm:$0xff] }
 0x395   : > { %v4642_v27 = vpop.eup %4641  ;;  %v4005_v52 = vpack.c.bf16 %v2164_v42, %v2163_v16  ;;  %v2356_v47 = vmul.f32 %v4640_v13, %v6331_v11  ;;  %v2757_v51 = vadd.f32 1e-06, %v2741_v48  ;;  %v7105_v11 = vld [vmem:[#allocation68_spill] sm:$0xff]  ;;  %v7106_v48 = vld [vmem:[#allocation46_spill] sm:$0xff] }
 0x396   : > { %v2118_v31 = vadd.f32 1e-06, %v2102_v57  ;;  %v4000_v9 = vpack.c.bf16 %v2162_v56, %v2161_v53  ;;  %v2354_v21 = vmul.f32 %v4642_v27, %v7104_v17  ;;  %v2922_v34 = vpop.xlane.xlu0 %2921  ;;  %v2785_v13 = vmul.f32 %v4630_v59, %v7105_v11 }
 0x397   : > { %v2284_v37 = vpop.xlane.xlu1 %2283  ;;  %4237 = vst [vmem:[%s6698_s5 + $0x8] sm:$0xff] %v4005_v52   ;;  %v4045_v63 = vpack.c.bf16 %v2356_v47, %v2355_v49  ;;  %v2949_v60 = vmul.f32 0.0078125, %v2922_v34  ;;  %v2803_v53 = vmul.f32 0.088388346, %v2787_v33 }
 0x398   : > { %v2310_v42 = vmul.f32 0.0078125, %v2284_v37  ;;  %v4644_v41 = vpop.eup %4643  ;;  %4001 = vst [vmem:[%s6698_s5] sm:$0xff] %v4000_v9   ;;  %v4040_v5 = vpack.c.bf16 %v2354_v21, %v2353_v43  ;;  %4657 = vrsqrt.f32 %v2118_v31  ;;  %v2801_v52 = vmul.f32 0.088388346, %v2785_v13  ;;  %v7108_v21 = vld [vmem:[#allocation38_spill] sm:$0xff] }
 0x399   : > { %v4646_v0 = vpop.eup %4645  ;;  %4244 = vst [vmem:[%s6704_s7 + $0x8] sm:$0xff] %v4045_v63   ;;  %v2788_v16 = vmul.f32 %v4644_v41, %v6347_v23  ;;  %4659 = vrsqrt.f32 %v2325_v61  ;;  %v2965_v31 = vadd.f32 1e-06, %v2949_v60  ;;  %v7109_v60 = vld [vmem:[#allocation73_spill] sm:$0xff] }
 0x39a   : > { %v2326_v57 = vadd.f32 1e-06, %v2310_v42  ;;  %4041 = vst [vmem:[%s6704_s7] sm:$0xff] %v4040_v5   ;;  %v2786_v14 = vmul.f32 %v4646_v0, %v7106_v48  ;;  %v2077_v56 = vpop.xlane.xlu0 %2076  ;;  %v4648_v27 = vpop.eup %4647  ;;  %4661 = vrsqrt.f32 %v2757_v51 }
 0x39b   : > { %v2716_v59 = vpop.xlane.xlu1 %2715  ;;  %v2804_v43 = vmul.f32 0.088388346, %v2788_v16  ;;  %v2103_v15 = vmul.f32 0.0078125, %v2077_v56  ;;  %v2993_v9 = vmul.f32 %v4648_v27, %v7107_v18  ;;  %v7110_v27 = vld [vmem:[#allocation48_spill] sm:$0xff] }
 0x39c   : > { %v2742_v49 = vmul.f32 0.0078125, %v2716_v59  ;;  %v2802_v47 = vmul.f32 0.088388346, %v2786_v14  ;;  %4663 = vrsqrt.f32 %v2326_v57  ;;  %v4650_v23 = vpop.eup %4649 }
 0x39d   : > { %v4125_v34 = vpack.c.bf16 %v2804_v43, %v2803_v53  ;;  %v2994_v61 = vmul.f32 %v4650_v23, %v7108_v21  ;;  %v4652_v51 = vpop.eup %4651  ;;  %v2119_v42 = vadd.f32 1e-06, %v2103_v15 }
 0x39e   : > { %v2758_v33 = vadd.f32 1e-06, %v2742_v49  ;;  %v4120_v17 = vpack.c.bf16 %v2802_v47, %v2801_v52  ;;  %v2286_v37 = vpop.xlane.xlu0 %2285  ;;  %v4654_v11 = vpop.eup %4653  ;;  %v2995_v57 = vmul.f32 %v4652_v51, %v7109_v60 }
 0x39f   : > { %v2924_v63 = vpop.xlane.xlu1 %2923  ;;  %4259 = vst [vmem:[%s6698_s5 + $0x48] sm:$0xff] %v4125_v34   ;;  %v4160_v13 = vpack.c.bf16 %v2994_v61, %v2993_v9  ;;  %v2311_v0 = vmul.f32 0.0078125, %v2286_v37  ;;  %v2149_v43 = vmul.f32 %v4654_v11, %v7110_v27 }
 0x3a0   : > { %v2950_v41 = vmul.f32 0.0078125, %v2924_v63  ;;  %4258 = vst [vmem:[%s6698_s5 + $0x40] sm:$0xff] %v4120_v17   ;;  %4665 = vrsqrt.f32 %v2758_v33  ;;  %v4656_v5 = vpop.eup %4655  ;;  %v7111_v63 = vld [vmem:[#allocation39_spill] sm:$0xff] }
 0x3a1   : > { %4667 = vrsqrt.f32 %v2965_v31  ;;  %4266 = vst [vmem:[%s6704_s7 + $0x40] sm:$0xff] %v4160_v13   ;;  %v2996_v53 = vmul.f32 %v4656_v5, %v6380_v54  ;;  %v2327_v52 = vadd.f32 1e-06, %v2311_v0  ;;  %v2165_v17 = vmul.f32 0.088388346, %v2149_v43 }
 0x3a2   : > { %v2966_v16 = vadd.f32 1e-06, %v2950_v41  ;;  %v2718_v48 = vpop.xlane.xlu0 %2717  ;;  %4669 = vrsqrt.f32 %v2119_v42 }
 0x3a3   : > { %v2079_v14 = vpop.xlane.xlu1 %2078  ;;  %v2743_v56 = vmul.f32 0.0078125, %v2718_v48  ;;  %v4165_v15 = vpack.c.bf16 %v2996_v53, %v2995_v57 }
 0x3a4   : > { %v2104_v59 = vmul.f32 0.0078125, %v2079_v14  ;;  %4671 = vrsqrt.f32 %v2966_v16  ;;  %v7112_v16 = vld [vmem:[#allocation40_spill] sm:$0xff] }
 0x3a5   : > { %v4658_v49 = vpop.eup %4657  ;;  %4267 = vst [vmem:[%s6704_s7 + $0x48] sm:$0xff] %v4165_v15   ;;  %v2759_v18 = vadd.f32 1e-06, %v2743_v56  ;;  %v7113_v56 = vld [vmem:[#allocation42_spill] sm:$0xff] }
 0x3a6   : > { %v2120_v47 = vadd.f32 1e-06, %v2104_v59  ;;  %v2150_v23 = vmul.f32 %v4658_v49, %v6397_v6  ;;  %v2926_v34 = vpop.xlane.xlu0 %2925  ;;  %v4660_v33 = vpop.eup %4659 }
 0x3a7   : > { %v2288_v31 = vpop.xlane.xlu1 %2287  ;;  %v4662_v9 = vpop.eup %4661  ;;  %v2357_v51 = vmul.f32 %v4660_v33, %v7111_v63  ;;  %v2951_v6 = vmul.f32 0.0078125, %v2926_v34 }
 0x3a8   : > { %v2312_v54 = vmul.f32 0.0078125, %v2288_v31  ;;  %v2166_v21 = vmul.f32 0.088388346, %v2150_v23  ;;  %4673 = vrsqrt.f32 %v2120_v47  ;;  %v2789_v60 = vmul.f32 %v4662_v9, %v7112_v16  ;;  %v7114_v31 = vld [vmem:[#allocation41_spill] sm:$0xff] }
 0x3a9   : > { %v4664_v61 = vpop.eup %4663  ;;  %4675 = vrsqrt.f32 %v2327_v52  ;;  %v2967_v27 = vadd.f32 1e-06, %v2951_v6 }
 0x3aa   : > { %v2328_v37 = vadd.f32 1e-06, %v2312_v54  ;;  %v4010_v42 = vpack.c.bf16 %v2166_v21, %v2165_v17  ;;  %v2358_v41 = vmul.f32 %v4664_v61, %v6405_v20  ;;  %v2081_v11 = vpop.xlane.xlu0 %2080  ;;  %4677 = vrsqrt.f32 %v2759_v18 }
 0x3ab   : > { %v2720_v13 = vpop.xlane.xlu1 %2719  ;;  %v2105_v5 = vmul.f32 0.0078125, %v2081_v11  ;;  %v2805_v47 = vmul.f32 0.088388346, %v2789_v60 }
 0x3ac   : > { %v2744_v0 = vmul.f32 0.0078125, %v2720_v13  ;;  %4238 = vst [vmem:[%s6698_s5 + $0x10] sm:$0xff] %v4010_v42   ;;  %v4050_v57 = vpack.c.bf16 %v2358_v41, %v2357_v51  ;;  %4679 = vrsqrt.f32 %v2328_v37  ;;  %v7115_v51 = vld [vmem:[#allocation50_spill] sm:$0xff] }
 0x3ad   : > { %v4666_v53 = vpop.eup %4665  ;;  %v2121_v15 = vadd.f32 1e-06, %v2105_v5 }
 0x3ae   : > { %v2760_v48 = vadd.f32 1e-06, %v2744_v0  ;;  %v4668_v14 = vpop.eup %4667  ;;  %4245 = vst [vmem:[%s6704_s7 + $0x10] sm:$0xff] %v4050_v57   ;;  %v2790_v59 = vmul.f32 %v4666_v53, %v7113_v56  ;;  %v2290_v43 = vpop.xlane.xlu0 %2289 }
 0x3af   : > { %v2928_v20 = vpop.xlane.xlu1 %2927  ;;  %v4670_v52 = vpop.eup %4669  ;;  %v2997_v33 = vmul.f32 %v4668_v14, %v7114_v31  ;;  %v2313_v17 = vmul.f32 0.0078125, %v2290_v43 }
 0x3b0   : > { %v2952_v49 = vmul.f32 0.0078125, %v2928_v20  ;;  %v2806_v23 = vmul.f32 0.088388346, %v2790_v59  ;;  %4681 = vrsqrt.f32 %v2760_v48  ;;  %v2151_v42 = vmul.f32 %v4670_v52, %v7115_v51  ;;  %v7116_v59 = vld [vmem:[#allocation51_spill] sm:$0xff] }
 0x3b1   : > { %v4672_v34 = vpop.eup %4671  ;;  %4683 = vrsqrt.f32 %v2967_v27  ;;  %v2329_v0 = vadd.f32 1e-06, %v2313_v17 }
 0x3b2   : > { %v2968_v18 = vadd.f32 1e-06, %v2952_v49  ;;  %v4130_v54 = vpack.c.bf16 %v2806_v23, %v2805_v47  ;;  %v2998_v9 = vmul.f32 %v4672_v34, %v6441_v19  ;;  %v2722_v21 = vpop.xlane.xlu0 %2721  ;;  %4685 = vrsqrt.f32 %v2121_v15  ;;  %v7117_v34 = vld [vmem:[#allocation44_spill] sm:$0xff] }
 0x3b3   : > { %v2083_v61 = vpop.xlane.xlu1 %2082  ;;  %v2745_v37 = vmul.f32 0.0078125, %v2722_v21  ;;  %v2167_v48 = vmul.f32 0.088388346, %v2151_v42 }
 0x3b4   : > { %v2106_v63 = vmul.f32 0.0078125, %v2083_v61  ;;  %4260 = vst [vmem:[%s6698_s5 + $0x50] sm:$0xff] %v4130_v54   ;;  %v4170_v41 = vpack.c.bf16 %v2998_v9, %v2997_v33  ;;  %4687 = vrsqrt.f32 %v2968_v18 }
 0x3b5   : > { %v4674_v6 = vpop.eup %4673  ;;  %v2761_v60 = vadd.f32 1e-06, %v2745_v37 }
 0x3b6   : > { %v2122_v11 = vadd.f32 1e-06, %v2106_v63  ;;  %v4676_v13 = vpop.eup %4675  ;;  %4268 = vst [vmem:[%s6704_s7 + $0x50] sm:$0xff] %v4170_v41   ;;  %v2152_v5 = vmul.f32 %v4674_v6, %v6453_v38  ;;  %v2930_v19 = vpop.xlane.xlu0 %2929 }
 0x3b7   : > { %v2292_v16 = vpop.xlane.xlu1 %2291  ;;  %v4678_v53 = vpop.eup %4677  ;;  %v2359_v27 = vmul.f32 %v4676_v13, %v7116_v59  ;;  %v2953_v38 = vmul.f32 0.0078125, %v2930_v19 }
 0x3b8   : > { %v2314_v57 = vmul.f32 0.0078125, %v2292_v16  ;;  %v2168_v14 = vmul.f32 0.088388346, %v2152_v5  ;;  %4689 = vrsqrt.f32 %v2122_v11  ;;  %v2791_v31 = vmul.f32 %v4678_v53, %v7117_v34  ;;  %v7118_v34 = vld [vmem:[#allocation54_spill] sm:$0xff] }
 0x3b9   : > { %v4680_v56 = vpop.eup %4679  ;;  %4691 = vrsqrt.f32 %v2329_v0  ;;  %v2969_v17 = vadd.f32 1e-06, %v2953_v38 }
 0x3ba   : > { %v2330_v43 = vadd.f32 1e-06, %v2314_v57  ;;  %v4015_v20 = vpack.c.bf16 %v2168_v14, %v2167_v48  ;;  %v2360_v15 = vmul.f32 %v4680_v56, %v6473_v3  ;;  %v2085_v49 = vpop.xlane.xlu0 %2084  ;;  %4693 = vrsqrt.f32 %v2761_v60 }
 0x3bb   : > { %v2724_v52 = vpop.xlane.xlu1 %2723  ;;  %v2107_v47 = vmul.f32 0.0078125, %v2085_v49  ;;  %v2807_v42 = vmul.f32 0.088388346, %v2791_v31 }
 0x3bc   : > { %v2746_v23 = vmul.f32 0.0078125, %v2724_v52  ;;  %4239 = vst [vmem:[%s6698_s5 + $0x18] sm:$0xff] %v4015_v20   ;;  %v4055_v33 = vpack.c.bf16 %v2360_v15, %v2359_v27  ;;  %4695 = vrsqrt.f32 %v2330_v43 }
 0x3bd   : > { %v4682_v18 = vpop.eup %4681  ;;  %v2123_v37 = vadd.f32 1e-06, %v2107_v47 }
 0x3be   : > { %v2762_v54 = vadd.f32 1e-06, %v2746_v23  ;;  %4246 = vst [vmem:[%s6704_s7 + $0x18] sm:$0xff] %v4055_v33   ;;  %v2792_v9 = vmul.f32 %v4682_v18, %v6489_v25  ;;  %v2294_v21 = vpop.xlane.xlu0 %2293  ;;  %v4684_v61 = vpop.eup %4683 }
 0x3bf   : > { %v2932_v3 = vpop.xlane.xlu1 %2931  ;;  %v4686_v51 = vpop.eup %4685  ;;  %v2315_v11 = vmul.f32 0.0078125, %v2294_v21  ;;  %v2999_v5 = vmul.f32 %v4684_v61, %v6468_v24 }
 0x3c0   : > { %v2954_v63 = vmul.f32 0.0078125, %v2932_v3  ;;  %v2808_v41 = vmul.f32 0.088388346, %v2792_v9  ;;  %4697 = vrsqrt.f32 %v2762_v54  ;;  %v2153_v53 = vmul.f32 %v4686_v51, %v6487_v8 }
 0x3c1   : > { %v4688_v6 = vpop.eup %4687  ;;  %4699 = vrsqrt.f32 %v2969_v17  ;;  %v2331_v56 = vadd.f32 1e-06, %v2315_v11 }
 0x3c2   : > { %v2970_v13 = vadd.f32 1e-06, %v2954_v63  ;;  %v4135_v0 = vpack.c.bf16 %v2808_v41, %v2807_v42  ;;  %v3000_v25 = vmul.f32 %v4688_v6, %v6503_v22  ;;  %v2726_v19 = vpop.xlane.xlu0 %2725  ;;  %4701 = vrsqrt.f32 %v2123_v37 }
 0x3c3   : > { %v2087_v16 = vpop.xlane.xlu1 %2086  ;;  %v2747_v60 = vmul.f32 0.0078125, %v2726_v19  ;;  %v2169_v49 = vmul.f32 0.088388346, %v2153_v53 }
 0x3c4   : > { %v2108_v57 = vmul.f32 0.0078125, %v2087_v16  ;;  %4261 = vst [vmem:[%s6698_s5 + $0x58] sm:$0xff] %v4135_v0   ;;  %v4175_v48 = vpack.c.bf16 %v3000_v25, %v2999_v5  ;;  %4703 = vrsqrt.f32 %v2970_v13 }
 0x3c5   : > { %v4690_v14 = vpop.eup %4689  ;;  %v2763_v20 = vadd.f32 1e-06, %v2747_v60 }
 0x3c6   : > { %v2124_v59 = vadd.f32 1e-06, %v2108_v57  ;;  %4269 = vst [vmem:[%s6704_s7 + $0x58] sm:$0xff] %v4175_v48   ;;  %v2154_v24 = vmul.f32 %v4690_v14, %v6520_v62  ;;  %v2934_v27 = vpop.xlane.xlu0 %2933  ;;  %v4692_v22 = vpop.eup %4691 }
 0x3c7   : > { %v2296_v43 = vpop.xlane.xlu1 %2295  ;;  %v4694_v38 = vpop.eup %4693  ;;  %v2955_v47 = vmul.f32 0.0078125, %v2934_v27  ;;  %v2361_v31 = vmul.f32 %v4692_v22, %v7118_v34 }
 0x3c8   : > { %v2316_v15 = vmul.f32 0.0078125, %v2296_v43  ;;  %v2170_v52 = vmul.f32 0.088388346, %v2154_v24  ;;  %4705 = vrsqrt.f32 %v2124_v59  ;;  %v2793_v21 = vmul.f32 %v4694_v38, %v6512_v7 }
 0x3c9   : > { %v4696_v8 = vpop.eup %4695  ;;  %4707 = vrsqrt.f32 %v2331_v56  ;;  %v2971_v37 = vadd.f32 1e-06, %v2955_v47 }
 0x3ca   : > { %v2332_v23 = vadd.f32 1e-06, %v2316_v15  ;;  %v4020_v33 = vpack.c.bf16 %v2170_v52, %v2169_v49  ;;  %v2362_v62 = vmul.f32 %v4696_v8, %v6533_v45  ;;  %v2089_v18 = vpop.xlane.xlu0 %2088  ;;  %4709 = vrsqrt.f32 %v2763_v20 }
 0x3cb   : > { %v2728_v54 = vpop.xlane.xlu1 %2727  ;;  %v2109_v9 = vmul.f32 0.0078125, %v2089_v18  ;;  %v2809_v5 = vmul.f32 0.088388346, %v2793_v21 }
 0x3cc   : > { %v2748_v17 = vmul.f32 0.0078125, %v2728_v54  ;;  %4240 = vst [vmem:[%s6698_s5 + $0x20] sm:$0xff] %v4020_v33   ;;  %v4060_v3 = vpack.c.bf16 %v2362_v62, %v2361_v31  ;;  %4711 = vrsqrt.f32 %v2332_v23 }
 0x3cd   : > { %v4698_v61 = vpop.eup %4697  ;;  %v2125_v45 = vadd.f32 1e-06, %v2109_v9 }
 0x3ce   : > { %v2764_v63 = vadd.f32 1e-06, %v2748_v17  ;;  %4247 = vst [vmem:[%s6704_s7 + $0x20] sm:$0xff] %v4060_v3   ;;  %v2794_v51 = vmul.f32 %v4698_v61, %v6543_v2  ;;  %v2298_v42 = vpop.xlane.xlu0 %2297  ;;  %v4700_v6 = vpop.eup %4699 }
 0x3cf   : > { %v2936_v41 = vpop.xlane.xlu1 %2935  ;;  %v4702_v13 = vpop.eup %4701  ;;  %v3001_v19 = vmul.f32 %v4700_v6, %v6531_v29  ;;  %v2317_v2 = vmul.f32 0.0078125, %v2298_v42 }
 0x3d0   : > { %v2956_v11 = vmul.f32 0.0078125, %v2936_v41  ;;  %v2810_v0 = vmul.f32 0.088388346, %v2794_v51  ;;  %4713 = vrsqrt.f32 %v2764_v63  ;;  %v2155_v56 = vmul.f32 %v4702_v13, %v6540_v50 }
 0x3d1   : > { %v4704_v7 = vpop.eup %4703  ;;  %4715 = vrsqrt.f32 %v2971_v37  ;;  %v2333_v22 = vadd.f32 1e-06, %v2317_v2 }
 0x3d2   : > { %v2972_v25 = vadd.f32 1e-06, %v2956_v11  ;;  %v4140_v16 = vpack.c.bf16 %v2810_v0, %v2809_v5  ;;  %v3002_v60 = vmul.f32 %v4704_v7, %v6559_v40  ;;  %v2730_v57 = vpop.xlane.xlu0 %2729  ;;  %4717 = vrsqrt.f32 %v2125_v45 }
 0x3d3   : > { %v2091_v53 = vpop.xlane.xlu1 %2090  ;;  %v2749_v48 = vmul.f32 0.0078125, %v2730_v57  ;;  %v2171_v52 = vmul.f32 0.088388346, %v2155_v56 }
 0x3d4   : > { %v2110_v14 = vmul.f32 0.0078125, %v2091_v53  ;;  %4262 = vst [vmem:[%s6698_s5 + $0x60] sm:$0xff] %v4140_v16   ;;  %v4180_v59 = vpack.c.bf16 %v3002_v60, %v3001_v19  ;;  %4719 = vrsqrt.f32 %v2972_v25 }
 0x3d5   : > { %v4706_v24 = vpop.eup %4705  ;;  %v2765_v15 = vadd.f32 1e-06, %v2749_v48 }
 0x3d6   : > { %v2126_v27 = vadd.f32 1e-06, %v2110_v14  ;;  %v4708_v43 = vpop.eup %4707  ;;  %4270 = vst [vmem:[%s6704_s7 + $0x60] sm:$0xff] %v4180_v59   ;;  %v2156_v29 = vmul.f32 %v4706_v24, %v6571_v4  ;;  %v2938_v20 = vpop.xlane.xlu0 %2937 }
 0x3d7   : > { %v2300_v40 = vpop.xlane.xlu1 %2299  ;;  %v4710_v49 = vpop.eup %4709  ;;  %v2363_v47 = vmul.f32 %v4708_v43, %v6554_v36  ;;  %v2957_v4 = vmul.f32 0.0078125, %v2938_v20 }
 0x3d8   : > { %v2318_v38 = vmul.f32 0.0078125, %v2300_v40  ;;  %v2172_v8 = vmul.f32 0.088388346, %v2156_v29  ;;  %4721 = vrsqrt.f32 %v2126_v27  ;;  %v2795_v9 = vmul.f32 %v4710_v49, %v6568_v58 }
 0x3d9   : > { %v4712_v50 = vpop.eup %4711  ;;  %4723 = vrsqrt.f32 %v2333_v22  ;;  %v2973_v37 = vadd.f32 1e-06, %v2957_v4 }
 0x3da   : > { %v2334_v23 = vadd.f32 1e-06, %v2318_v38  ;;  %v4025_v34 = vpack.c.bf16 %v2172_v8, %v2171_v52  ;;  %v2364_v31 = vmul.f32 %v4712_v50, %v6581_v12  ;;  %v2093_v33 = vpop.xlane.xlu0 %2092  ;;  %4725 = vrsqrt.f32 %v2765_v15 }
 0x3db   : > { %v2732_v62 = vpop.xlane.xlu1 %2731  ;;  %v2111_v18 = vmul.f32 0.0078125, %v2093_v33  ;;  %v2811_v6 = vmul.f32 0.088388346, %v2795_v9 }
 0x3dc   : > { %v2750_v54 = vmul.f32 0.0078125, %v2732_v62  ;;  %4241 = vst [vmem:[%s6698_s5 + $0x28] sm:$0xff] %v4025_v34   ;;  %v4065_v17 = vpack.c.bf16 %v2364_v31, %v2363_v47  ;;  %4727 = vrsqrt.f32 %v2334_v23 }
 0x3dd   : > { %v4714_v21 = vpop.eup %4713  ;;  %v2127_v51 = vadd.f32 1e-06, %v2111_v18 }
 0x3de   : > { %v2766_v3 = vadd.f32 1e-06, %v2750_v54  ;;  %v4716_v36 = vpop.eup %4715  ;;  %4248 = vst [vmem:[%s6704_s7 + $0x28] sm:$0xff] %v4065_v17   ;;  %v2796_v61 = vmul.f32 %v4714_v21, %v6594_v39  ;;  %v2302_v12 = vpop.xlane.xlu0 %2301  ;;  %v7119_v21 = vld [vmem:[#allocation45_spill] sm:$0xff] }
 0x3df   : > { %v2940_v63 = vpop.xlane.xlu1 %2939  ;;  %v4718_v41 = vpop.eup %4717  ;;  %v3003_v11 = vmul.f32 %v4716_v36, %v6579_v26  ;;  %v2319_v39 = vmul.f32 0.0078125, %v2302_v12 }
 0x3e0   : > { %v2958_v42 = vmul.f32 0.0078125, %v2940_v63  ;;  %v2812_v45 = vmul.f32 0.088388346, %v2796_v61  ;;  %4729 = vrsqrt.f32 %v2766_v3  ;;  %v2157_v60 = vmul.f32 %v4718_v41, %v6590_v32  ;;  %v7120_v61 = vld [vmem:[#allocation47_spill] sm:$0xff] }
 0x3e1   : > { %v4720_v58 = vpop.eup %4719  ;;  %4731 = vrsqrt.f32 %v2973_v37  ;;  %v2335_v48 = vadd.f32 1e-06, %v2319_v39  ;;  %v7124_v39 = vld [vmem:[#allocation52_spill] sm:$0xff] }
 0x3e2   : > { %v2974_v13 = vadd.f32 1e-06, %v2958_v42  ;;  %v4145_v5 = vpack.c.bf16 %v2812_v45, %v2811_v6  ;;  %v3004_v0 = vmul.f32 %v4720_v58, %v6606_v44  ;;  %v2734_v7 = vpop.xlane.xlu0 %2733  ;;  %4733 = vrsqrt.f32 %v2127_v51  ;;  %v7122_v45 = vld [vmem:[#allocation63_spill] sm:$0xff] }
 0x3e3   : > { %v2095_v25 = vpop.xlane.xlu1 %2094  ;;  %v2751_v19 = vmul.f32 0.0078125, %v2734_v7  ;;  %v2173_v43 = vmul.f32 0.088388346, %v2157_v60 }
 0x3e4   : > { %v2112_v16 = vmul.f32 0.0078125, %v2095_v25  ;;  %4263 = vst [vmem:[%s6698_s5 + $0x68] sm:$0xff] %v4145_v5   ;;  %v4185_v2 = vpack.c.bf16 %v3004_v0, %v3003_v11  ;;  %4735 = vrsqrt.f32 %v2974_v13  ;;  %v7123_v11 = vld [vmem:[#allocation58_spill] sm:$0xff] }
 0x3e5   : > { %v4722_v57 = vpop.eup %4721  ;;  %v2767_v59 = vadd.f32 1e-06, %v2751_v19 }
 0x3e6   : > { %v2128_v53 = vadd.f32 1e-06, %v2112_v16  ;;  %4271 = vst [vmem:[%s6704_s7 + $0x68] sm:$0xff] %v4185_v2   ;;  %v2158_v26 = vmul.f32 %v4722_v57, %v6614_v46  ;;  %v2942_v14 = vpop.xlane.xlu0 %2941  ;;  %v4724_v56 = vpop.eup %4723  ;;  %v7125_v2 = vld [vmem:[#allocation49_spill] sm:$0xff] }
 0x3e7   : > { %v2304_v44 = vpop.xlane.xlu1 %2303  ;;  %v4726_v27 = vpop.eup %4725  ;;  %v2959_v22 = vmul.f32 0.0078125, %v2942_v14  ;;  %v2365_v40 = vmul.f32 %v4724_v56, %v6604_v1 }
 0x3e8   : > { %v2320_v24 = vmul.f32 0.0078125, %v2304_v44  ;;  %v2174_v29 = vmul.f32 0.088388346, %v2158_v26  ;;  %4737 = vrsqrt.f32 %v2128_v53  ;;  %v2797_v52 = vmul.f32 %v4726_v27, %v6612_v30  ;;  %v7126_v26 = vld [vmem:[#allocation53_spill] sm:$0xff] }
 0x3e9   : > { %v4728_v32 = vpop.eup %4727  ;;  %4739 = vrsqrt.f32 %v2335_v48  ;;  %v2975_v47 = vadd.f32 1e-06, %v2959_v22 }
 0x3ea   : > { %v2336_v20 = vadd.f32 1e-06, %v2320_v24  ;;  %v4030_v15 = vpack.c.bf16 %v2174_v29, %v2173_v43  ;;  %v2366_v46 = vmul.f32 %v4728_v32, %v6628_v55  ;;  %4741 = vrsqrt.f32 %v2767_v59 }
 0x3eb   : > { %v2736_v38 = vpop.xlane.xlu1 %2735  ;;  %v2813_v33 = vmul.f32 0.088388346, %v2797_v52 }
 0x3ec   : > { %v2752_v49 = vmul.f32 0.0078125, %v2736_v38  ;;  %4242 = vst [vmem:[%s6698_s5 + $0x30] sm:$0xff] %v4030_v15   ;;  %v4070_v8 = vpack.c.bf16 %v2366_v46, %v2365_v40  ;;  %4743 = vrsqrt.f32 %v2336_v20 }
 0x3ed   : > { %v4730_v50 = vpop.eup %4729 }
 0x3ee   : > { %v2768_v23 = vadd.f32 1e-06, %v2752_v49  ;;  %4249 = vst [vmem:[%s6704_s7 + $0x30] sm:$0xff] %v4070_v8   ;;  %v2798_v34 = vmul.f32 %v4730_v50, %v6638_v35  ;;  %v4732_v31 = vpop.eup %4731 }
 0x3ef   : > { %v2944_v1 = vpop.xlane.xlu1 %2943  ;;  %v4734_v4 = vpop.eup %4733  ;;  %v3005_v54 = vmul.f32 %v4732_v31, %v6624_v28  ;;  %v7121_v28 = vld [vmem:[#allocation56_spill] sm:$0xff] }
 0x3f0   : > { %4745 = vrsqrt.f32 %v2768_v23  ;;  %v2960_v55 = vmul.f32 0.0078125, %v2944_v1  ;;  %v2814_v62 = vmul.f32 0.088388346, %v2798_v34  ;;  %v2159_v35 = vmul.f32 %v4734_v4, %v7119_v21 }
 0x3f1   : > { %v4736_v18 = vpop.eup %4735  ;;  %4747 = vrsqrt.f32 %v2975_v47 }
 0x3f2   : > { %v2976_v30 = vadd.f32 1e-06, %v2960_v55  ;;  %v4150_v9 = vpack.c.bf16 %v2814_v62, %v2813_v33  ;;  %v3006_v17 = vmul.f32 %v4736_v18, %v6648_v10  ;;  %v2175_v51 = vmul.f32 0.088388346, %v2159_v35 }
 0x3f4   : > { %4749 = vrsqrt.f32 %v2976_v30  ;;  %4264 = vst [vmem:[%s6698_s5 + $0x70] sm:$0xff] %v4150_v9   ;;  %v4190_v3 = vpack.c.bf16 %v3006_v17, %v3005_v54 }
 0x3f5   : > { %v4738_v36 = vpop.eup %4737 }
 0x3f6   : > { %4272 = vst [vmem:[%s6704_s7 + $0x70] sm:$0xff] %v4190_v3   ;;  %v2160_v37 = vmul.f32 %v4738_v36, %v7120_v61  ;;  %v4740_v12 = vpop.eup %4739 }
 0x3f7   : > { %v4742_v63 = vpop.eup %4741  ;;  %v2367_v6 = vmul.f32 %v4740_v12, %v7121_v28 }
 0x3f8   : > { %v2176_v42 = vmul.f32 0.088388346, %v2160_v37  ;;  %v2799_v13 = vmul.f32 %v4742_v63, %v7123_v11 }
 0x3f9   : > { %v4744_v41 = vpop.eup %4743 }
 0x3fa   : > { %v4035_v10 = vpack.c.bf16 %v2176_v42, %v2175_v51  ;;  %v2368_v58 = vmul.f32 %v4744_v41, %v7122_v45  ;;  %v2815_v19 = vmul.f32 0.088388346, %v2799_v13 }
 0x3fc   : > { %4243 = vst [vmem:[%s6698_s5 + $0x38] sm:$0xff] %v4035_v10   ;;  %v4075_v0 = vpack.c.bf16 %v2368_v58, %v2367_v6 }
 0x3fd   : > { %v4746_v5 = vpop.eup %4745 }
 0x3fe   : > { %v2800_v7 = vmul.f32 %v4746_v5, %v7124_v39  ;;  %v4748_v25 = vpop.eup %4747  ;;  %4250 = vst [vmem:[%s6704_s7 + $0x38] sm:$0xff] %v4075_v0  }
 0x3ff   : > { %v3007_v57 = vmul.f32 %v4748_v25, %v7125_v2 }
 0x400   : > { %v2816_v16 = vmul.f32 0.088388346, %v2800_v7 }
 0x401   : > { %v4750_v60 = vpop.eup %4749 }
 0x402   : > { %v4155_v53 = vpack.c.bf16 %v2816_v16, %v2815_v19  ;;  %v3008_v48 = vmul.f32 %v4750_v60, %v7126_v26 }
 0x404   : > { %4265 = vst [vmem:[%s6698_s5 + $0x78] sm:$0xff] %v4155_v53   ;;  %v4195_v14 = vpack.c.bf16 %v3008_v48, %v3007_v57 }
 0x406   : > { %4273 = vst [vmem:[%s6704_s7 + $0x78] sm:$0xff] %v4195_v14  }
 0x407   : > { %s7127_s16 = sld [smem:[#allocation35_spill]]  ;;  %s6793_s15 = sshll.u32 %s7004_s24, 10 }
 0x408   : > { %s3286_s20 = sshll.u32 %s6698_s5, 4  ;;  %s7128_s27 = sld [smem:[#allocation79_spill]]  ;;  %s3287_s20 = int_to_ptr.vmem [resolvable:$true] %s3286_s20 }
 0x409   : > { %s4999_s19 = smov 1024   ;;  %s5000_s22 = smov 2048  }
 0x40a   : > { %s5001_s23 = smov 16   ;;  %s5002_s21 = smov 64  }
 0x40b   : > { %s5003_s24 = smov 4   ;;  %s5004_s17 = smov 131072  }
 0x40c   : > { %s5005_s1 = smov 0  }
 0x40d   : > { %p7129_p4 = scmp.ne.s32.totalorder %s7127_s16, 0 }
 0x40e   : > { %s3275_s30 = scalar_lea.hbm %s7128_s27, %s6793_s15 }
 0x40f   : > { %4328 = sst [smem:[#allocation18]] (%p7129_p4), %s4999_s19 }
 0x410   : > { %4329 = sst [smem:[#allocation18 + $0x1]] (%p7129_p4), %s5000_s22 }
 0x411   : > { %4330 = sst [smem:[#allocation18 + $0x2]] (%p7129_p4), %s5001_s23 }
 0x412   : > { %4331 = sst [smem:[#allocation18 + $0x3]] (%p7129_p4), %s5002_s21 }
 0x413   : > { %4332 = sst [smem:[#allocation18 + $0x4]] (%p7129_p4), %s5002_s21 }
 0x414   : > { %4333 = sst [smem:[#allocation18 + $0x5]] (%p7129_p4), %s5003_s24 }
 0x415   : > { %4334 = dma.general (%p7129_p4), %s3287_s20, 2048, %s3275_s30, %s3253_s26, %s5004_s17, [#allocation18], %s5005_s1, 0  }
 0x416   : > { %s7130_s28 = sld [smem:[#allocation80_spill]]  ;;  %s3325_s8 = sshll.u32 %s6704_s7, 4  ;;  %s3326_s8 = int_to_ptr.vmem [resolvable:$true] %s3325_s8 }
 0x417   : > { %s5006_s25 = smov 1024   ;;  %s5007_s5 = smov 2048  }
 0x418   : > { %4335 = sst [smem:[#allocation20]] (%p7129_p4), %s5006_s25  ;;  %s5008_s26 = smov 16  }
 0x419   : > { %4336 = sst [smem:[#allocation20 + $0x1]] (%p7129_p4), %s5007_s5  ;;  %s5009_s20 = smov 64  }
 0x41a   : > { %4337 = sst [smem:[#allocation20 + $0x2]] (%p7129_p4), %s5008_s26  ;;  %s5010_s29 = smov 4  }
 0x41b   : > { %4338 = sst [smem:[#allocation20 + $0x3]] (%p7129_p4), %s5009_s20  ;;  %s5011_s18 = smov 131072  }
 0x41c   : > { %s3314_s3 = scalar_lea.hbm %s7130_s28, %s6793_s15  ;;  %4339 = sst [smem:[#allocation20 + $0x4]] (%p7129_p4), %s5009_s20 }
 0x41d   : > { %4340 = sst [smem:[#allocation20 + $0x5]] (%p7129_p4), %s5010_s29  ;;  %s5012_s7 = smov 0  }
 0x41e   : > { %4341 = dma.general (%p7129_p4), %s3326_s8, 2048, %s3314_s3, %s3258_s11, %s5011_s18, [#allocation20], %s5012_s7, 0  }
 0x41f   : > { %s7131_s19 = sld [smem:[#allocation81_spill]]  ;;  %s3364_s23 = sshll.u32 %s6054_s12, 4  ;;  %s3365_s23 = int_to_ptr.vmem [resolvable:$true] %s3364_s23 }
 0x420   : > { %s5013_s21 = smov 1024   ;;  %s5014_s24 = smov 2048  }
 0x421   : > { %4342 = sst [smem:[#allocation22]] (%p7129_p4), %s5013_s21  ;;  %s5015_s17 = smov 16  }
 0x422   : > { %4343 = sst [smem:[#allocation22 + $0x1]] (%p7129_p4), %s5014_s24  ;;  %s5016_s1 = smov 64  }
 0x423   : > { %4344 = sst [smem:[#allocation22 + $0x2]] (%p7129_p4), %s5015_s17  ;;  %s5017_s10 = smov 4  }
 0x424   : > { %4345 = sst [smem:[#allocation22 + $0x3]] (%p7129_p4), %s5016_s1  ;;  %s5019_s12 = smov 0  }
 0x425   : > { %s3353_s22 = scalar_lea.hbm %s7131_s19, %s6793_s15  ;;  %4346 = sst [smem:[#allocation22 + $0x4]] (%p7129_p4), %s5016_s1 }
 0x426   : > { %4347 = sst [smem:[#allocation22 + $0x5]] (%p7129_p4), %s5017_s10  ;;  %s5018_s15 = smov 131072  }
 0x427   : > { %4348 = dma.general (%p7129_p4), %s3365_s23, 2048, %s3353_s22, %s3258_s11, %s5018_s15, [#allocation22], %s5019_s12, 0  }
 0x428 PF: > { %s7132_s13 = sld [smem:[#allocation29_spill]] }
 0x429   : > { %s7133_s28 = sld [smem:[#allocation36_spill]] }
 0x42a   : > { %s7134_s3 = sld [smem:[#allocation31_spill]] }
 0x42e   : > { %s3392_s8 = sand.u32 1, %s7132_s13  }
 0x42f   : > { %p7135_p9 = scmp.ne.s32.totalorder %s7133_s28, 0  ;;  %s3393_s25 = scalar_lea.sflag [#allocation4], %s3392_s8 }
 0x430   : > { %p7136_p12 = scmp.ge.s32.totalorder %s7134_s3, 2 }
 0x432   : > { %p4373_p3 = pnand %p7136_p12, %p7135_p9 }
 0x434   : > { %p4374_p10 = pneg %p4373_p3 }
 0x436   : > { %4963 = dma.done.wait (%p4374_p10), %s3393_s25, 2048  }
 0x437   : > { %4965 = vsyncadd (%p4374_p10), %s3393_s25, 4294965248  ;;  %s7137_s5 = sadd.s32 4294967294, %s7134_s3  }
 0x438   : > { %s3401_s26 = sand.u32 1, %s7137_s5  }
 0x439   : > { %s3402_s20 = scalar_lea.sflag [#allocation15], %s3401_s26 }
 0x43a   : > { %4967 = dma.done.wait (%p4374_p10), %s3402_s20, 4096  }
 0x43b   : > { %4969 = vsyncadd (%p4374_p10), %s3402_s20, 4294963200  ;;  %s7138_s16 = sld [smem:[#allocation32_spill]]  ;;  %s7141_s13 = smov %s4976_s14 }
 0x43c   : > { %s7139_s9 = sld [smem:[#allocation30_spill]] }
 0x43d   : > { %s7140_s15 = sld [smem:[#allocation33_spill]] }
 0x441   : > { %p34_p13 = scmp.ge.s32.totalorder %s7138_s16, 4  }
 0x442   : > { %s7142_s14 = smov %s7139_s9 }
 0x443   :  { %36 = sbr.rel (!%p34_p13) target bundleno = 20 (0x14), region = 199 }
 0x448   :  { %3416 = vsyncpa [#allocation3], 1 }
 0x449   :  { %3418 = vsyncpa [#allocation3 + $0x1], 1 }
 0x44a   :  { %3419 = vsyncpa [#allocation6], 1 }
 0x44b   :  { %3421 = vsyncpa [#allocation6 + $0x1], 1 }
 0x44c   :  { %3422 = vsyncpa [#allocation9], 1 }
 0x44d   :  { %3424 = vsyncpa [#allocation9 + $0x1], 1 }
 0x44e   :  { %3425 = vsyncpa [#allocation12], 1 }
 0x44f   :  { %3426 = vsyncpa [#allocation4], 1 }
 0x450   :  { %3428 = vsyncpa [#allocation4 + $0x1], 1 }
 0x451   :  { %3429 = vsyncpa [#allocation15], 1 }
 0x452   :  { %3431 = vsyncpa [#allocation15 + $0x1], 1 }

</bundles_post_ra>
